<compile_context>
chip_gen: v5e
topology: v5e:2x2
jax: 0.10.0
libtpu: 0.0.40
codegen_flags: <defaults>
</compile_context>

<pallas_src>
import jax
import jax.numpy as jnp
from jax import lax
from jax.experimental import pallas as pl
from jax.experimental.pallas import tpu as pltpu

_LANE = 128
_TARGET_BLOCK_BYTES = 4 * 1024 * 1024   # per-block DMA size (double-buffered by Pallas)
_ACC_ROWS = 64                          # accumulator block rows: 8 f32 vregs => 8 indep. add chains
_SMALL_N_FALLBACK = 65536               # below this, plain XLA log+sum beats a pallas_call dispatch


def _round_up(a, b):
    return ((a + b - 1) // b) * b


def _tensorcores_per_chip():
    """Best-effort TensorCores-per-chip query (v7x has 2). Defaults to 1 if unknown."""
    # TODO(synk): replace attribute probing with the canonical TpuInfo field for
    # TensorCores-per-chip once that schema is settled; unknown -> safe value 1.
    try:
        info = pltpu.get_tpu_info()
    except Exception:
        return 1
    for attr in ("num_tensorcores", "tensorcores_per_chip",
                 "num_cores_per_chip", "cores_per_chip"):
        v = getattr(info, attr, None)
        if isinstance(v, int) and 1 <= v <= 8:
            return v
    return 1


def _make_kernel(rows_valid, block_rows, acc_rows, tiles_per_split, needs_mask):
    folds = block_rows // acc_rows

    def fold(vals):
        if folds == 1:
            return vals
        # (block_rows, 128) -> (acc_rows, 128): pure VPU adds with acc_rows/8
        # independent accumulation chains; no cross-lane (XLU) work.
        return jnp.sum(vals.reshape(folds, acc_rows, _LANE), axis=0)

    def kernel(x_ref, acc_ref):
        j = pl.program_id(1)

        @pl.when(j == 0)
        def _():
            acc_ref[...] = jnp.zeros_like(acc_ref)

        xv = x_ref[...].astype(jnp.float32)

        if not needs_mask:
            acc_ref[...] += fold(jnp.log(xv))
        else:
            c = pl.program_id(0)
            cell = c * tiles_per_split + j              # logical (unclamped) tile id
            base_row = cell * block_rows
            is_tail = base_row + block_rows > rows_valid

            @pl.when(base_row + block_rows <= rows_valid)
            def _():                                    # fully in-range block: no masking cost
                acc_ref[...] += fold(jnp.log(xv))

            @pl.when(is_tail)
            def _():                                    # ragged tail / phantom cell
                # Out-of-range rows -> 1.0 BEFORE log, so they contribute exactly 0.
                row_ids = base_row + lax.broadcasted_iota(
                    jnp.int32, (block_rows, 1), 0)
                xm = jnp.where(row_ids < rows_valid, xv, 1.0)
                acc_ref[...] += fold(jnp.log(xm))

    return kernel


def log_loss(x, negation=True):
    """Pallas equivalent of Log_loss.forward: (-)sum(log(x))."""
    xf = jnp.ravel(x)                        # native dtype: minimal HBM traffic
    n = xf.shape[0]

    if n < _SMALL_N_FALLBACK:
        # pallas_call fixed cost + separate epilogue op dominate at this scale.
        loss = jnp.sum(jnp.log(xf.astype(jnp.float32)))
        return (-loss if negation else loss).astype(x.dtype)

    # Largest 128-aligned prefix goes through the kernel; the (<128-element)
    # remainder is summed directly in the wrapper (no full-tensor pad/copy).
    n_main = (n // _LANE) * _LANE
    rows = n_main // _LANE
    x2 = xf[:n_main].reshape(rows, _LANE)

    itemsize = jnp.dtype(x.dtype).itemsize
    target_rows = max(_ACC_ROWS, _TARGET_BLOCK_BYTES // (_LANE * itemsize))
    block_rows = min(target_rows, _round_up(rows, _ACC_ROWS))
    tiles_total = pl.cdiv(rows, block_rows)

    num_splits = 2 if (_tensorcores_per_chip() >= 2 and tiles_total >= 2) else 1
    tiles_per_split = pl.cdiv(tiles_total, num_splits)
    has_phantom = num_splits * tiles_per_split != tiles_total
    covered_rows = num_splits * tiles_per_split * block_rows
    needs_mask = covered_rows != rows

    kernel = _make_kernel(rows, block_rows, _ACC_ROWS, tiles_per_split, needs_mask)

    def in_index_map(c, j):
        cell = c * tiles_per_split + j
        if has_phantom:
            # Clamp phantom cells to the last real tile so the DMA stays
            # in-bounds; their contribution is masked to zero in the kernel
            # (the mask uses the unclamped logical cell id).
            cell = jnp.minimum(cell, tiles_total - 1)
        return (cell, 0)

    if num_splits > 1:
        # Real per-TensorCore split (v7x); plain "parallel" does not change codegen.
        dim_sem = (pltpu.CORE_PARALLEL, pltpu.ARBITRARY)
    else:
        dim_sem = ("arbitrary", "arbitrary")

    partials = pl.pallas_call(
        kernel,
        out_shape=jax.ShapeDtypeStruct((num_splits * _ACC_ROWS, _LANE), jnp.float32),
        grid_spec=pltpu.PrefetchScalarGridSpec(
            num_scalar_prefetch=0,
            grid=(num_splits, tiles_per_split),
            in_specs=[pl.BlockSpec((block_rows, _LANE), in_index_map)],
            out_specs=pl.BlockSpec((_ACC_ROWS, _LANE), lambda c, j: (c, 0)),
        ),
        compiler_params=pltpu.CompilerParams(dimension_semantics=dim_sem),
    )(x2)

    loss = jnp.sum(partials)                 # tiny (<= 16K-elem) epilogue reduction in XLA
    if n_main < n:
        loss = loss + jnp.sum(jnp.log(xf[n_main:].astype(jnp.float32)))
    if negation:
        loss = -loss
    return loss.astype(x.dtype)


if __name__ == "__main__":
    # Small NCHW-like input (exercises the small-input fallback), strictly
    # positive so log is well-defined.
    x = jax.random.uniform(
        jax.random.PRNGKey(0), (2, 4, 16, 16), dtype=jnp.float32,
        minval=0.1, maxval=2.0)
    loss_neg = jax.block_until_ready(log_loss(x, negation=True))
    loss_pos = jax.block_until_ready(log_loss(x, negation=False))
    ref_neg = -jnp.sum(jnp.log(x))
    assert jnp.allclose(loss_neg, ref_neg, rtol=1e-5, atol=1e-5), (loss_neg, ref_neg)
    assert jnp.allclose(loss_pos, -ref_neg, rtol=1e-5, atol=1e-5), (loss_pos, -ref_neg)

    # Single-tile Pallas path with a ragged row tail (1500 rows, 1536-row block).
    x_mid = jax.random.uniform(
        jax.random.PRNGKey(1), (2, 4, 250, 192), dtype=jnp.float32,
        minval=0.1, maxval=2.0)
    got = jax.block_until_ready(log_loss(x_mid, negation=True))
    ref = -jnp.sum(jnp.log(x_mid))
    assert jnp.allclose(got, ref, rtol=1e-4, atol=1e-2), (got, ref)

    # Multi-tile Pallas path (24576 rows = 3 x 8192-row blocks, exact fit).
    x_big = jax.random.uniform(
        jax.random.PRNGKey(2), (4, 4, 512, 384), dtype=jnp.float32,
        minval=0.1, maxval=2.0)
    got = jax.block_until_ready(log_loss(x_big, negation=True))
    ref = -jnp.sum(jnp.log(x_big))
    assert jnp.allclose(got, ref, rtol=2e-4, atol=1e-1), (got, ref)

    # Non-128-multiple element count: kernel prefix + <128-element wrapper tail.
    x_rag = jax.random.uniform(
        jax.random.PRNGKey(3), (1, 1, 257, 300), dtype=jnp.float32,
        minval=0.1, maxval=2.0)
    got = jax.block_until_ready(log_loss(x_rag, negation=True))
    ref = -jnp.sum(jnp.log(x_rag))
    assert jnp.allclose(got, ref, rtol=1e-4, atol=1e-2), (got, ref)

    print("KERNEL_OK")
</pallas_src>

<mosaic_0001>
module attributes {stable_mosaic.version = 11 : i64} {
  func.func @kernel(%arg0: i32, %arg1: i32, %arg2: memref<3008x128xf32, #tpu.memory_space<vmem>>, %arg3: memref<64x128xf32, #tpu.memory_space<vmem>>) attributes {dimension_semantics = [#tpu.dimension_semantics<arbitrary>, #tpu.dimension_semantics<arbitrary>], iteration_bounds = array<i64: 1, 1>, scalar_prefetch = 0 : i64, scratch_operands = 0 : i64, tpu.core_type = #tpu.core_type<tc>, window_params = [{transform_indices = @transform_0, window_bounds = array<i64: 3008, 128>}, {transform_indices = @transform_1, window_bounds = array<i64: 64, 128>}]} {
    %c0_i32 = arith.constant 0 : i32
    %0 = arith.cmpi eq, %arg1, %c0_i32 : i32
    %1 = arith.extui %0 : i1 to i32
    %c0_i32_0 = arith.constant 0 : i32
    %2 = arith.cmpi ne, %1, %c0_i32_0 : i32
    scf.if %2 {
      %cst = arith.constant 0.000000e+00 : f32
      %15 = vector.broadcast %cst : f32 to vector<64x128xf32>
      %c0_7 = arith.constant 0 : index
      %c0_8 = arith.constant 0 : index
      %16 = vector.load %arg3[%c0_7, %c0_8] : memref<64x128xf32, #tpu.memory_space<vmem>>, vector<64x128xf32>
      tpu.vector_store %arg3[%c0_7, %c0_8], %15 {strides = array<i32>} : memref<64x128xf32, #tpu.memory_space<vmem>>, vector<64x128xf32>,
    } else {
    }
    %c0 = arith.constant 0 : index
    %c0_1 = arith.constant 0 : index
    %3 = vector.load %arg2[%c0, %c0_1] : memref<3008x128xf32, #tpu.memory_space<vmem>>, vector<3008x128xf32>
    %c1_i32 = arith.constant 1 : i32
    %4 = arith.muli %arg0, %c1_i32 : i32
    %5 = arith.addi %4, %arg1 : i32
    %c3008_i32 = arith.constant 3008 : i32
    %6 = arith.muli %5, %c3008_i32 : i32
    %c3008_i32_2 = arith.constant 3008 : i32
    %7 = arith.addi %6, %c3008_i32_2 : i32
    %c3000_i32 = arith.constant 3000 : i32
    %8 = arith.cmpi sgt, %7, %c3000_i32 : i32
    %c3008_i32_3 = arith.constant 3008 : i32
    %9 = arith.addi %6, %c3008_i32_3 : i32
    %c3000_i32_4 = arith.constant 3000 : i32
    %10 = arith.cmpi sle, %9, %c3000_i32_4 : i32
    %11 = arith.extui %10 : i1 to i32
    %c0_i32_5 = arith.constant 0 : i32
    %12 = arith.cmpi ne, %11, %c0_i32_5 : i32
    scf.if %12 {
      %c0_7 = arith.constant 0 : index
      %c0_8 = arith.constant 0 : index
      %15 = vector.load %arg3[%c0_7, %c0_8] : memref<64x128xf32, #tpu.memory_space<vmem>>, vector<64x128xf32>
      %16 = math.log %3 : vector<3008x128xf32>
      %17 = vector.shape_cast %16 : vector<3008x128xf32> to vector<47x64x128xf32>
      %cst = arith.constant dense<0.000000e+00> : vector<64x128xf32>
      %18 = vector.multi_reduction <add>, %17, %cst [0] : vector<47x64x128xf32> to vector<64x128xf32>
      %19 = arith.addf %15, %18 : vector<64x128xf32>
      %c0_9 = arith.constant 0 : index
      %c0_10 = arith.constant 0 : index
      %20 = vector.load %arg3[%c0_9, %c0_10] : memref<64x128xf32, #tpu.memory_space<vmem>>, vector<64x128xf32>
      tpu.vector_store %arg3[%c0_9, %c0_10], %19 {strides = array<i32>} : memref<64x128xf32, #tpu.memory_space<vmem>>, vector<64x128xf32>,
    } else {
    }
    %13 = arith.extui %8 : i1 to i32
    %c0_i32_6 = arith.constant 0 : i32
    %14 = arith.cmpi ne, %13, %c0_i32_6 : i32
    scf.if %14 {
      %15 = tpu.iota {dimensions = array<i32: 0>} : vector<3008x1xi32>
      %16 = vector.broadcast %6 : i32 to vector<3008x1xi32>
      %17 = arith.addi %16, %15 : vector<3008x1xi32>
      %c3000_i32_7 = arith.constant 3000 : i32
      %18 = vector.broadcast %c3000_i32_7 : i32 to vector<3008x1xi32>
      %19 = arith.cmpi slt, %17, %18 : vector<3008x1xi32>
      %cst = arith.constant 1.000000e+00 : f32
      %20 = vector.shape_cast %19 : vector<3008x1xi1> to vector<3008x1xi1>
      %21 = vector.broadcast %20 : vector<3008x1xi1> to vector<3008x128xi1>
      %22 = vector.broadcast %cst : f32 to vector<3008x128xf32>
      %23 = arith.select %21, %3, %22 : vector<3008x128xi1>, vector<3008x128xf32>
      %c0_8 = arith.constant 0 : index
      %c0_9 = arith.constant 0 : index
      %24 = vector.load %arg3[%c0_8, %c0_9] : memref<64x128xf32, #tpu.memory_space<vmem>>, vector<64x128xf32>
      %25 = math.log %23 : vector<3008x128xf32>
      %26 = vector.shape_cast %25 : vector<3008x128xf32> to vector<47x64x128xf32>
      %cst_10 = arith.constant dense<0.000000e+00> : vector<64x128xf32>
      %27 = vector.multi_reduction <add>, %26, %cst_10 [0] : vector<47x64x128xf32> to vector<64x128xf32>
      %28 = arith.addf %24, %27 : vector<64x128xf32>
      %c0_11 = arith.constant 0 : index
      %c0_12 = arith.constant 0 : index
      %29 = vector.load %arg3[%c0_11, %c0_12] : memref<64x128xf32, #tpu.memory_space<vmem>>, vector<64x128xf32>
      tpu.vector_store %arg3[%c0_11, %c0_12], %28 {strides = array<i32>} : memref<64x128xf32, #tpu.memory_space<vmem>>, vector<64x128xf32>,
    } else {
    }
    return
  }
  func.func @transform_0(%arg0: i32, %arg1: i32) -> (i32, i32) {
    %c1_i32 = arith.constant 1 : i32
    %0 = arith.muli %arg0, %c1_i32 : i32
    %1 = arith.addi %0, %arg1 : i32
    %c0_i32 = arith.constant 0 : i32
    %c0_i32_0 = arith.constant 0 : i32
    return %1, %c0_i32 : i32, i32
  }
  func.func @transform_1(%arg0: i32, %arg1: i32) -> (i32, i32) {
    %c0_i32 = arith.constant 0 : i32
    %c0_i32_0 = arith.constant 0 : i32
    return %arg0, %c0_i32 : i32, i32
  }
}

</mosaic_0001>

<bundles_post_ra>
// kernel: tpu_custom_call.1
= control target key start
LH: loop header
LB: loop body
LE: loop exit
PB: predicated region body
PF: predicated region fallthrough
CT: control target
= control target key end

     0   :  { %6 = vsyncpa [#allocation3], 0  ;;  %s7690_s0 = inlined_call_operand.hbm [shape: f32[3000,128], index: 0, kind: input, shape index: {}]   ;;  %s7691_s1 = inlined_call_operand.hbm [shape: f32[64,128], index: 1, kind: output, shape index: {}]  }
   0x1   :  { %7 = vsyncpa [#allocation4], 0 }
   0x2   :  { %16 = vsyncadd [#allocation3], 128  ;;  %s21_s8 = sshll.u32 %s7690_s0, 4  ;;  %s5812_s9 = smov [#allocation2]   ;;  %s22_s8 = int_to_ptr.hbm [resolvable:$true] %s21_s8 }
   0x3   :  { %s23_s10 = sshll.u32 %s5812_s9, 4  ;;  %s5813_s11 = smov 128   ;;  %s24_s10 = int_to_ptr.vmem [resolvable:$true] %s23_s10 }
   0x4   :  { %s5814_s12 = smov 8  }
   0x5   :  { %29 = dma.hbm_to_vmem [thread:$0]  %s22_s8, 48000, %s24_s10, [#allocation3], %s5813_s11, %s5813_s11, %s5814_s12  }
   0x6   :  { %5808 = dma.done.wait [#allocation3], 48128  }
   0x7   :  { %5809 = vsyncadd [#allocation3], 4294919168  ;;  %v50_v0 = vld [vmem:[#allocation2] sm:$0xff]  ;;  %v51_v1 = vld [vmem:[#allocation2 + $0x8] sm:$0xff]  ;;  %s5816_s0 = smov [#allocation5]   ;;  %s4989_s16 = sshll.u32 %s7691_s1, 4  ;;  %s4990_s16 = int_to_ptr.hbm [resolvable:$true] %s4989_s16 }
   0x8   :  { %v52_v2 = vld [vmem:[#allocation2 + $0x10] sm:$0xff]  ;;  %v53_v3 = vld [vmem:[#allocation2 + $0x18] sm:$0xff]  ;;  %5008 = vlog2.f32 %v50_v0  ;;  %v54_v4 = vld [vmem:[#allocation2 + $0x20] sm:$0xff]  ;;  %s4987_s13 = sshll.u32 %s5816_s0, 4  ;;  %s4988_s13 = int_to_ptr.vmem [resolvable:$true] %s4987_s13 }
   0x9   :  { %5010 = vlog2.f32 %v51_v1  ;;  %v55_v5 = vld [vmem:[#allocation2 + $0x28] sm:$0xff]  ;;  %v56_v6 = vld [vmem:[#allocation2 + $0x30] sm:$0xff]  ;;  %v57_v7 = vld [vmem:[#allocation2 + $0x38] sm:$0xff] }
   0xa   :  { %5012 = vlog2.f32 %v52_v2  ;;  %v58_v8 = vld [vmem:[#allocation2 + $0x40] sm:$0xff]  ;;  %v59_v10 = vld [vmem:[#allocation2 + $0x48] sm:$0xff]  ;;  %v60_v12 = vld [vmem:[#allocation2 + $0x50] sm:$0xff] }
   0xb   :  { %5014 = vlog2.f32 %v53_v3  ;;  %v61_v14 = vld [vmem:[#allocation2 + $0x58] sm:$0xff]  ;;  %v62_v16 = vld [vmem:[#allocation2 + $0x60] sm:$0xff]  ;;  %v63_v18 = vld [vmem:[#allocation2 + $0x68] sm:$0xff] }
   0xc   :  { %5016 = vlog2.f32 %v54_v4  ;;  %v64_v20 = vld [vmem:[#allocation2 + $0x70] sm:$0xff]  ;;  %v65_v22 = vld [vmem:[#allocation2 + $0x78] sm:$0xff]  ;;  %v66_v24 = vld [vmem:[#allocation2 + $0x80] sm:$0xff] }
   0xd   :  { %5018 = vlog2.f32 %v55_v5  ;;  %v67_v26 = vld [vmem:[#allocation2 + $0x88] sm:$0xff]  ;;  %v68_v28 = vld [vmem:[#allocation2 + $0x90] sm:$0xff]  ;;  %v69_v30 = vld [vmem:[#allocation2 + $0x98] sm:$0xff] }
   0xe   :  { %v5833_v9 = vpop.eup %5008  ;;  %5020 = vlog2.f32 %v56_v6  ;;  %v70_v32 = vld [vmem:[#allocation2 + $0xa0] sm:$0xff]  ;;  %v71_v34 = vld [vmem:[#allocation2 + $0xa8] sm:$0xff]  ;;  %v72_v36 = vld [vmem:[#allocation2 + $0xb0] sm:$0xff] }
   0xf   :  { %v5835_v11 = vpop.eup %5010  ;;  %5022 = vlog2.f32 %v57_v7  ;;  %v73_v38 = vld [vmem:[#allocation2 + $0xb8] sm:$0xff]  ;;  %v74_v40 = vld [vmem:[#allocation2 + $0xc0] sm:$0xff]  ;;  %v75_v42 = vld [vmem:[#allocation2 + $0xc8] sm:$0xff] }
  0x10   :  { %v5837_v13 = vpop.eup %5012  ;;  %5024 = vlog2.f32 %v58_v8  ;;  %v76_v44 = vld [vmem:[#allocation2 + $0xd0] sm:$0xff]  ;;  %v77_v46 = vld [vmem:[#allocation2 + $0xd8] sm:$0xff]  ;;  %v78_v48 = vld [vmem:[#allocation2 + $0xe0] sm:$0xff] }
  0x11   :  { %v5839_v15 = vpop.eup %5014  ;;  %5026 = vlog2.f32 %v59_v10  ;;  %v79_v50 = vld [vmem:[#allocation2 + $0xe8] sm:$0xff]  ;;  %v80_v52 = vld [vmem:[#allocation2 + $0xf0] sm:$0xff]  ;;  %v81_v54 = vld [vmem:[#allocation2 + $0xf8] sm:$0xff] }
  0x12   :  { %v5841_v17 = vpop.eup %5016  ;;  %5028 = vlog2.f32 %v60_v12  ;;  %v82_v56 = vld [vmem:[#allocation2 + $0x100] sm:$0xff]  ;;  %v83_v58 = vld [vmem:[#allocation2 + $0x108] sm:$0xff]  ;;  %v84_v60 = vld [vmem:[#allocation2 + $0x110] sm:$0xff] }
  0x13   :  { %v5843_v19 = vpop.eup %5018  ;;  %5030 = vlog2.f32 %v61_v14  ;;  %v85_v62 = vld [vmem:[#allocation2 + $0x118] sm:$0xff]  ;;  %v86_v0 = vld [vmem:[#allocation2 + $0x120] sm:$0xff]  ;;  %v87_v2 = vld [vmem:[#allocation2 + $0x128] sm:$0xff] }
  0x14   :  { %v5845_v21 = vpop.eup %5020  ;;  %5032 = vlog2.f32 %v62_v16  ;;  %v88_v4 = vld [vmem:[#allocation2 + $0x130] sm:$0xff]  ;;  %v89_v6 = vld [vmem:[#allocation2 + $0x138] sm:$0xff]  ;;  %v90_v8 = vld [vmem:[#allocation2 + $0x140] sm:$0xff] }
  0x15   :  { %v5847_v23 = vpop.eup %5022  ;;  %5034 = vlog2.f32 %v63_v18  ;;  %v91_v12 = vld [vmem:[#allocation2 + $0x148] sm:$0xff]  ;;  %v92_v16 = vld [vmem:[#allocation2 + $0x150] sm:$0xff] }
  0x16   :  { %v5849_v25 = vpop.eup %5024  ;;  %5036 = vlog2.f32 %v64_v20  ;;  %v93_v20 = vld [vmem:[#allocation2 + $0x158] sm:$0xff] }
  0x17   :  { %v5851_v27 = vpop.eup %5026  ;;  %5038 = vlog2.f32 %v65_v22 }
  0x18   :  { %v5853_v29 = vpop.eup %5028  ;;  %5040 = vlog2.f32 %v66_v24  ;;  %v94_v24 = vld [vmem:[#allocation2 + $0x160] sm:$0xff] }
  0x19   :  { %v5855_v31 = vpop.eup %5030  ;;  %5042 = vlog2.f32 %v67_v26 }
  0x1a   :  { %v5857_v33 = vpop.eup %5032  ;;  %5044 = vlog2.f32 %v68_v28  ;;  %v95_v28 = vld [vmem:[#allocation2 + $0x168] sm:$0xff] }
  0x1b   :  { %v5859_v35 = vpop.eup %5034  ;;  %5046 = vlog2.f32 %v69_v30 }
  0x1c   :  { %v5861_v37 = vpop.eup %5036  ;;  %5048 = vlog2.f32 %v70_v32  ;;  %v96_v32 = vld [vmem:[#allocation2 + $0x170] sm:$0xff] }
  0x1d   :  { %v5863_v39 = vpop.eup %5038  ;;  %5050 = vlog2.f32 %v71_v34 }
  0x1e   :  { %v5865_v41 = vpop.eup %5040  ;;  %5052 = vlog2.f32 %v72_v36  ;;  %v97_v36 = vld [vmem:[#allocation2 + $0x178] sm:$0xff] }
  0x1f   :  { %v5867_v43 = vpop.eup %5042  ;;  %5054 = vlog2.f32 %v73_v38 }
  0x20   :  { %v5869_v45 = vpop.eup %5044  ;;  %5056 = vlog2.f32 %v74_v40  ;;  %v98_v40 = vld [vmem:[#allocation2 + $0x180] sm:$0xff] }
  0x21   :  { %v5871_v47 = vpop.eup %5046  ;;  %5058 = vlog2.f32 %v75_v42 }
  0x22   :  { %v5873_v49 = vpop.eup %5048  ;;  %5060 = vlog2.f32 %v76_v44  ;;  %v99_v44 = vld [vmem:[#allocation2 + $0x188] sm:$0xff] }
  0x23   :  { %v5875_v51 = vpop.eup %5050  ;;  %5062 = vlog2.f32 %v77_v46 }
  0x24   :  { %v5877_v53 = vpop.eup %5052  ;;  %5064 = vlog2.f32 %v78_v48  ;;  %v100_v48 = vld [vmem:[#allocation2 + $0x190] sm:$0xff] }
  0x25   :  { %v5879_v55 = vpop.eup %5054  ;;  %5066 = vlog2.f32 %v79_v50 }
  0x26   :  { %v5881_v57 = vpop.eup %5056  ;;  %5068 = vlog2.f32 %v80_v52  ;;  %v101_v52 = vld [vmem:[#allocation2 + $0x198] sm:$0xff] }
  0x27   :  { %v5883_v59 = vpop.eup %5058  ;;  %5070 = vlog2.f32 %v81_v54 }
  0x28   :  { %v5885_v61 = vpop.eup %5060  ;;  %5072 = vlog2.f32 %v82_v56  ;;  %v102_v56 = vld [vmem:[#allocation2 + $0x1a0] sm:$0xff] }
  0x29   :  { %v5887_v63 = vpop.eup %5062  ;;  %5074 = vlog2.f32 %v83_v58 }
  0x2a   :  { %v5889_v1 = vpop.eup %5064  ;;  %5076 = vlog2.f32 %v84_v60  ;;  %v103_v60 = vld [vmem:[#allocation2 + $0x1a8] sm:$0xff] }
  0x2b   :  { %v5891_v3 = vpop.eup %5066  ;;  %5078 = vlog2.f32 %v85_v62 }
  0x2c   :  { %v5893_v5 = vpop.eup %5068  ;;  %5080 = vlog2.f32 %v86_v0  ;;  %v104_v0 = vld [vmem:[#allocation2 + $0x1b0] sm:$0xff] }
  0x2d   :  { %v5895_v7 = vpop.eup %5070  ;;  %5082 = vlog2.f32 %v87_v2 }
  0x2e   :  { %v5897_v10 = vpop.eup %5072  ;;  %5084 = vlog2.f32 %v88_v4  ;;  %v105_v4 = vld [vmem:[#allocation2 + $0x1b8] sm:$0xff] }
  0x2f   :  { %v5899_v14 = vpop.eup %5074  ;;  %5086 = vlog2.f32 %v89_v6 }
  0x30   :  { %v5901_v18 = vpop.eup %5076  ;;  %5088 = vlog2.f32 %v90_v8  ;;  %v106_v8 = vld [vmem:[#allocation2 + $0x1c0] sm:$0xff] }
  0x31   :  { %v5903_v22 = vpop.eup %5078  ;;  %5090 = vlog2.f32 %v91_v12 }
  0x32   :  { %v5905_v26 = vpop.eup %5080  ;;  %5092 = vlog2.f32 %v92_v16  ;;  %v107_v16 = vld [vmem:[#allocation2 + $0x1c8] sm:$0xff] }
  0x33   :  { %v5907_v30 = vpop.eup %5082  ;;  %5094 = vlog2.f32 %v93_v20 }
  0x34   :  { %v5909_v34 = vpop.eup %5084  ;;  %5096 = vlog2.f32 %v94_v24  ;;  %v108_v24 = vld [vmem:[#allocation2 + $0x1d0] sm:$0xff] }
  0x35   :  { %v5911_v38 = vpop.eup %5086  ;;  %5098 = vlog2.f32 %v95_v28 }
  0x36   :  { %v5913_v42 = vpop.eup %5088  ;;  %5100 = vlog2.f32 %v96_v32  ;;  %v109_v32 = vld [vmem:[#allocation2 + $0x1d8] sm:$0xff] }
  0x37   :  { %v5915_v46 = vpop.eup %5090  ;;  %5102 = vlog2.f32 %v97_v36 }
  0x38   :  { %v5917_v50 = vpop.eup %5092  ;;  %5104 = vlog2.f32 %v98_v40  ;;  %v110_v40 = vld [vmem:[#allocation2 + $0x1e0] sm:$0xff] }
  0x39   :  { %v5919_v54 = vpop.eup %5094  ;;  %5106 = vlog2.f32 %v99_v44 }
  0x3a   :  { %v5921_v58 = vpop.eup %5096  ;;  %5108 = vlog2.f32 %v100_v48  ;;  %v111_v48 = vld [vmem:[#allocation2 + $0x1e8] sm:$0xff] }
  0x3b   :  { %v5923_v62 = vpop.eup %5098  ;;  %5110 = vlog2.f32 %v101_v52 }
  0x3c   :  { %v5925_v2 = vpop.eup %5100  ;;  %5112 = vlog2.f32 %v102_v56  ;;  %v112_v56 = vld [vmem:[#allocation2 + $0x1f0] sm:$0xff] }
  0x3d   :  { %v5927_v6 = vpop.eup %5102  ;;  %5114 = vlog2.f32 %v103_v60 }
  0x3e   :  { %v5929_v12 = vpop.eup %5104  ;;  %5116 = vlog2.f32 %v104_v0  ;;  %v113_v0 = vld [vmem:[#allocation2 + $0x1f8] sm:$0xff] }
  0x3f   :  { %v5931_v20 = vpop.eup %5106  ;;  %5118 = vlog2.f32 %v105_v4 }
  0x40   :  { %v5933_v28 = vpop.eup %5108  ;;  %5120 = vlog2.f32 %v106_v8 }
  0x41   :  { %7692 = vst [vmem:[#allocation8_spill] sm:$0xff] %v5933_v28  ;;  %v5935_v36 = vpop.eup %5110  ;;  %5122 = vlog2.f32 %v107_v16  ;;  %v114_v28 = vld [vmem:[#allocation2 + $0x200] sm:$0xff] }
  0x42   :  { %7693 = vst [vmem:[#allocation9_spill] sm:$0xff] %v5935_v36  ;;  %v5937_v44 = vpop.eup %5112  ;;  %5124 = vlog2.f32 %v108_v24  ;;  %v115_v36 = vld [vmem:[#allocation2 + $0x208] sm:$0xff] }
  0x43   :  { %7694 = vst [vmem:[#allocation10_spill] sm:$0xff] %v5937_v44  ;;  %v5939_v52 = vpop.eup %5114  ;;  %5126 = vlog2.f32 %v109_v32  ;;  %v116_v44 = vld [vmem:[#allocation2 + $0x210] sm:$0xff] }
  0x44   :  { %7695 = vst [vmem:[#allocation11_spill] sm:$0xff] %v5939_v52  ;;  %v5941_v60 = vpop.eup %5116  ;;  %5128 = vlog2.f32 %v110_v40  ;;  %v117_v52 = vld [vmem:[#allocation2 + $0x218] sm:$0xff] }
  0x45   :  { %7696 = vst [vmem:[#allocation12_spill] sm:$0xff] %v5941_v60  ;;  %v5943_v4 = vpop.eup %5118  ;;  %5130 = vlog2.f32 %v111_v48  ;;  %v118_v60 = vld [vmem:[#allocation2 + $0x220] sm:$0xff] }
  0x46   :  { %7697 = vst [vmem:[#allocation13_spill] sm:$0xff] %v5943_v4  ;;  %v5945_v8 = vpop.eup %5120  ;;  %5132 = vlog2.f32 %v112_v56  ;;  %v119_v4 = vld [vmem:[#allocation2 + $0x228] sm:$0xff] }
  0x47   :  { %7698 = vst [vmem:[#allocation14_spill] sm:$0xff] %v5945_v8  ;;  %v5947_v16 = vpop.eup %5122  ;;  %5134 = vlog2.f32 %v113_v0  ;;  %v120_v8 = vld [vmem:[#allocation2 + $0x230] sm:$0xff] }
  0x48   :  { %7699 = vst [vmem:[#allocation15_spill] sm:$0xff] %v5947_v16  ;;  %v5949_v24 = vpop.eup %5124  ;;  %5136 = vlog2.f32 %v114_v28  ;;  %v121_v16 = vld [vmem:[#allocation2 + $0x238] sm:$0xff] }
  0x49   :  { %7700 = vst [vmem:[#allocation16_spill] sm:$0xff] %v5949_v24  ;;  %v5951_v32 = vpop.eup %5126  ;;  %5138 = vlog2.f32 %v115_v36  ;;  %v122_v24 = vld [vmem:[#allocation2 + $0x240] sm:$0xff] }
  0x4a   :  { %7701 = vst [vmem:[#allocation17_spill] sm:$0xff] %v5951_v32  ;;  %v5953_v40 = vpop.eup %5128  ;;  %5140 = vlog2.f32 %v116_v44  ;;  %v123_v32 = vld [vmem:[#allocation2 + $0x248] sm:$0xff] }
  0x4b   :  { %7702 = vst [vmem:[#allocation18_spill] sm:$0xff] %v5953_v40  ;;  %v5955_v48 = vpop.eup %5130  ;;  %5142 = vlog2.f32 %v117_v52  ;;  %v124_v40 = vld [vmem:[#allocation2 + $0x250] sm:$0xff] }
  0x4c   :  { %7703 = vst [vmem:[#allocation19_spill] sm:$0xff] %v5955_v48  ;;  %v5957_v56 = vpop.eup %5132  ;;  %5144 = vlog2.f32 %v118_v60  ;;  %v125_v48 = vld [vmem:[#allocation2 + $0x258] sm:$0xff] }
  0x4d   :  { %7704 = vst [vmem:[#allocation20_spill] sm:$0xff] %v5957_v56  ;;  %v5959_v0 = vpop.eup %5134  ;;  %5146 = vlog2.f32 %v119_v4  ;;  %v126_v56 = vld [vmem:[#allocation2 + $0x260] sm:$0xff] }
  0x4e   :  { %7705 = vst [vmem:[#allocation21_spill] sm:$0xff] %v5959_v0  ;;  %v5961_v28 = vpop.eup %5136  ;;  %5148 = vlog2.f32 %v120_v8  ;;  %v127_v0 = vld [vmem:[#allocation2 + $0x268] sm:$0xff] }
  0x4f   :  { %7706 = vst [vmem:[#allocation22_spill] sm:$0xff] %v5961_v28  ;;  %v5963_v36 = vpop.eup %5138  ;;  %5150 = vlog2.f32 %v121_v16  ;;  %v128_v28 = vld [vmem:[#allocation2 + $0x270] sm:$0xff] }
  0x50   :  { %7707 = vst [vmem:[#allocation23_spill] sm:$0xff] %v5963_v36  ;;  %v5965_v44 = vpop.eup %5140  ;;  %5152 = vlog2.f32 %v122_v24  ;;  %v129_v36 = vld [vmem:[#allocation2 + $0x278] sm:$0xff] }
  0x51   :  { %7708 = vst [vmem:[#allocation24_spill] sm:$0xff] %v5965_v44  ;;  %v5967_v52 = vpop.eup %5142  ;;  %5154 = vlog2.f32 %v123_v32  ;;  %v130_v44 = vld [vmem:[#allocation2 + $0x280] sm:$0xff] }
  0x52   :  { %7709 = vst [vmem:[#allocation25_spill] sm:$0xff] %v5967_v52  ;;  %v5969_v60 = vpop.eup %5144  ;;  %5156 = vlog2.f32 %v124_v40  ;;  %v131_v52 = vld [vmem:[#allocation2 + $0x288] sm:$0xff] }
  0x53   :  { %7710 = vst [vmem:[#allocation26_spill] sm:$0xff] %v5969_v60  ;;  %v5971_v4 = vpop.eup %5146  ;;  %5158 = vlog2.f32 %v125_v48  ;;  %v132_v60 = vld [vmem:[#allocation2 + $0x290] sm:$0xff] }
  0x54   :  { %7711 = vst [vmem:[#allocation27_spill] sm:$0xff] %v5971_v4  ;;  %v5973_v8 = vpop.eup %5148  ;;  %5160 = vlog2.f32 %v126_v56  ;;  %v133_v4 = vld [vmem:[#allocation2 + $0x298] sm:$0xff] }
  0x55   :  { %7712 = vst [vmem:[#allocation28_spill] sm:$0xff] %v5973_v8  ;;  %v5975_v16 = vpop.eup %5150  ;;  %5162 = vlog2.f32 %v127_v0  ;;  %v134_v8 = vld [vmem:[#allocation2 + $0x2a0] sm:$0xff] }
  0x56   :  { %7713 = vst [vmem:[#allocation29_spill] sm:$0xff] %v5975_v16  ;;  %v5977_v24 = vpop.eup %5152  ;;  %5164 = vlog2.f32 %v128_v28  ;;  %v135_v16 = vld [vmem:[#allocation2 + $0x2a8] sm:$0xff] }
  0x57   :  { %7714 = vst [vmem:[#allocation30_spill] sm:$0xff] %v5977_v24  ;;  %v5979_v32 = vpop.eup %5154  ;;  %5166 = vlog2.f32 %v129_v36  ;;  %v136_v24 = vld [vmem:[#allocation2 + $0x2b0] sm:$0xff] }
  0x58   :  { %7715 = vst [vmem:[#allocation31_spill] sm:$0xff] %v5979_v32  ;;  %v5981_v40 = vpop.eup %5156  ;;  %5168 = vlog2.f32 %v130_v44  ;;  %v137_v32 = vld [vmem:[#allocation2 + $0x2b8] sm:$0xff] }
  0x59   :  { %7716 = vst [vmem:[#allocation32_spill] sm:$0xff] %v5981_v40  ;;  %v5983_v48 = vpop.eup %5158  ;;  %5170 = vlog2.f32 %v131_v52  ;;  %v138_v40 = vld [vmem:[#allocation2 + $0x2c0] sm:$0xff] }
  0x5a   :  { %7717 = vst [vmem:[#allocation33_spill] sm:$0xff] %v5983_v48  ;;  %v5985_v56 = vpop.eup %5160  ;;  %5172 = vlog2.f32 %v132_v60  ;;  %v139_v48 = vld [vmem:[#allocation2 + $0x2c8] sm:$0xff] }
  0x5b   :  { %7718 = vst [vmem:[#allocation34_spill] sm:$0xff] %v5985_v56  ;;  %v5987_v0 = vpop.eup %5162  ;;  %5174 = vlog2.f32 %v133_v4  ;;  %v140_v56 = vld [vmem:[#allocation2 + $0x2d0] sm:$0xff] }
  0x5c   :  { %7719 = vst [vmem:[#allocation35_spill] sm:$0xff] %v5987_v0  ;;  %v5989_v28 = vpop.eup %5164  ;;  %5176 = vlog2.f32 %v134_v8  ;;  %v141_v0 = vld [vmem:[#allocation2 + $0x2d8] sm:$0xff] }
  0x5d   :  { %7720 = vst [vmem:[#allocation36_spill] sm:$0xff] %v5989_v28  ;;  %v5991_v36 = vpop.eup %5166  ;;  %5178 = vlog2.f32 %v135_v16  ;;  %v142_v28 = vld [vmem:[#allocation2 + $0x2e0] sm:$0xff] }
  0x5e   :  { %7721 = vst [vmem:[#allocation37_spill] sm:$0xff] %v5991_v36  ;;  %v5993_v44 = vpop.eup %5168  ;;  %5180 = vlog2.f32 %v136_v24  ;;  %v143_v36 = vld [vmem:[#allocation2 + $0x2e8] sm:$0xff] }
  0x5f   :  { %7722 = vst [vmem:[#allocation38_spill] sm:$0xff] %v5993_v44  ;;  %v5995_v52 = vpop.eup %5170  ;;  %5182 = vlog2.f32 %v137_v32  ;;  %v144_v44 = vld [vmem:[#allocation2 + $0x2f0] sm:$0xff] }
  0x60   :  { %7723 = vst [vmem:[#allocation39_spill] sm:$0xff] %v5995_v52  ;;  %v5997_v60 = vpop.eup %5172  ;;  %5184 = vlog2.f32 %v138_v40  ;;  %v145_v52 = vld [vmem:[#allocation2 + $0x2f8] sm:$0xff] }
  0x61   :  { %7724 = vst [vmem:[#allocation40_spill] sm:$0xff] %v5997_v60  ;;  %v5999_v4 = vpop.eup %5174  ;;  %5186 = vlog2.f32 %v139_v48  ;;  %v146_v60 = vld [vmem:[#allocation2 + $0x300] sm:$0xff] }
  0x62   :  { %7725 = vst [vmem:[#allocation41_spill] sm:$0xff] %v5999_v4  ;;  %v6001_v8 = vpop.eup %5176  ;;  %5188 = vlog2.f32 %v140_v56  ;;  %v147_v4 = vld [vmem:[#allocation2 + $0x308] sm:$0xff] }
  0x63   :  { %7726 = vst [vmem:[#allocation42_spill] sm:$0xff] %v6001_v8  ;;  %v6003_v16 = vpop.eup %5178  ;;  %5190 = vlog2.f32 %v141_v0  ;;  %v148_v8 = vld [vmem:[#allocation2 + $0x310] sm:$0xff] }
  0x64   :  { %7727 = vst [vmem:[#allocation43_spill] sm:$0xff] %v6003_v16  ;;  %v6005_v24 = vpop.eup %5180  ;;  %5192 = vlog2.f32 %v142_v28  ;;  %v149_v16 = vld [vmem:[#allocation2 + $0x318] sm:$0xff] }
  0x65   :  { %7728 = vst [vmem:[#allocation44_spill] sm:$0xff] %v6005_v24  ;;  %v6007_v32 = vpop.eup %5182  ;;  %5194 = vlog2.f32 %v143_v36  ;;  %v150_v24 = vld [vmem:[#allocation2 + $0x320] sm:$0xff] }
  0x66   :  { %7729 = vst [vmem:[#allocation45_spill] sm:$0xff] %v6007_v32  ;;  %v6009_v40 = vpop.eup %5184  ;;  %5196 = vlog2.f32 %v144_v44  ;;  %v151_v32 = vld [vmem:[#allocation2 + $0x328] sm:$0xff] }
  0x67   :  { %7730 = vst [vmem:[#allocation46_spill] sm:$0xff] %v6009_v40  ;;  %v6011_v48 = vpop.eup %5186  ;;  %5198 = vlog2.f32 %v145_v52  ;;  %v152_v40 = vld [vmem:[#allocation2 + $0x330] sm:$0xff] }
  0x68   :  { %7731 = vst [vmem:[#allocation47_spill] sm:$0xff] %v6011_v48  ;;  %v6013_v56 = vpop.eup %5188  ;;  %5200 = vlog2.f32 %v146_v60  ;;  %v153_v48 = vld [vmem:[#allocation2 + $0x338] sm:$0xff] }
  0x69   :  { %7732 = vst [vmem:[#allocation48_spill] sm:$0xff] %v6013_v56  ;;  %v6015_v0 = vpop.eup %5190  ;;  %5202 = vlog2.f32 %v147_v4  ;;  %v154_v56 = vld [vmem:[#allocation2 + $0x340] sm:$0xff] }
  0x6a   :  { %7733 = vst [vmem:[#allocation49_spill] sm:$0xff] %v6015_v0  ;;  %v6017_v28 = vpop.eup %5192  ;;  %5204 = vlog2.f32 %v148_v8  ;;  %v155_v0 = vld [vmem:[#allocation2 + $0x348] sm:$0xff] }
  0x6b   :  { %7734 = vst [vmem:[#allocation50_spill] sm:$0xff] %v6017_v28  ;;  %v6019_v36 = vpop.eup %5194  ;;  %5206 = vlog2.f32 %v149_v16  ;;  %v156_v28 = vld [vmem:[#allocation2 + $0x350] sm:$0xff] }
  0x6c   :  { %7735 = vst [vmem:[#allocation51_spill] sm:$0xff] %v6019_v36  ;;  %v6021_v44 = vpop.eup %5196  ;;  %5208 = vlog2.f32 %v150_v24  ;;  %v157_v36 = vld [vmem:[#allocation2 + $0x358] sm:$0xff] }
  0x6d   :  { %7736 = vst [vmem:[#allocation52_spill] sm:$0xff] %v6021_v44  ;;  %v6023_v52 = vpop.eup %5198  ;;  %5210 = vlog2.f32 %v151_v32  ;;  %v158_v44 = vld [vmem:[#allocation2 + $0x360] sm:$0xff] }
  0x6e   :  { %7737 = vst [vmem:[#allocation53_spill] sm:$0xff] %v6023_v52  ;;  %v6025_v60 = vpop.eup %5200  ;;  %5212 = vlog2.f32 %v152_v40  ;;  %v159_v52 = vld [vmem:[#allocation2 + $0x368] sm:$0xff] }
  0x6f   :  { %7738 = vst [vmem:[#allocation54_spill] sm:$0xff] %v6025_v60  ;;  %v6027_v4 = vpop.eup %5202  ;;  %5214 = vlog2.f32 %v153_v48  ;;  %v160_v60 = vld [vmem:[#allocation2 + $0x370] sm:$0xff] }
  0x70   :  { %7739 = vst [vmem:[#allocation55_spill] sm:$0xff] %v6027_v4  ;;  %v6029_v8 = vpop.eup %5204  ;;  %5216 = vlog2.f32 %v154_v56  ;;  %v161_v4 = vld [vmem:[#allocation2 + $0x378] sm:$0xff] }
  0x71   :  { %7740 = vst [vmem:[#allocation56_spill] sm:$0xff] %v6029_v8  ;;  %v6031_v16 = vpop.eup %5206  ;;  %5218 = vlog2.f32 %v155_v0  ;;  %v162_v8 = vld [vmem:[#allocation2 + $0x380] sm:$0xff] }
  0x72   :  { %7741 = vst [vmem:[#allocation57_spill] sm:$0xff] %v6031_v16  ;;  %v6033_v24 = vpop.eup %5208  ;;  %5220 = vlog2.f32 %v156_v28  ;;  %v163_v16 = vld [vmem:[#allocation2 + $0x388] sm:$0xff] }
  0x73   :  { %7742 = vst [vmem:[#allocation58_spill] sm:$0xff] %v6033_v24  ;;  %v6035_v32 = vpop.eup %5210  ;;  %5222 = vlog2.f32 %v157_v36  ;;  %v164_v24 = vld [vmem:[#allocation2 + $0x390] sm:$0xff] }
  0x74   :  { %7743 = vst [vmem:[#allocation59_spill] sm:$0xff] %v6035_v32  ;;  %v6037_v40 = vpop.eup %5212  ;;  %5224 = vlog2.f32 %v158_v44  ;;  %v165_v32 = vld [vmem:[#allocation2 + $0x398] sm:$0xff] }
  0x75   :  { %7744 = vst [vmem:[#allocation60_spill] sm:$0xff] %v6037_v40  ;;  %v6039_v48 = vpop.eup %5214  ;;  %5226 = vlog2.f32 %v159_v52  ;;  %v166_v40 = vld [vmem:[#allocation2 + $0x3a0] sm:$0xff] }
  0x76   :  { %7745 = vst [vmem:[#allocation61_spill] sm:$0xff] %v6039_v48  ;;  %v6041_v56 = vpop.eup %5216  ;;  %5228 = vlog2.f32 %v160_v60  ;;  %v167_v48 = vld [vmem:[#allocation2 + $0x3a8] sm:$0xff] }
  0x77   :  { %7746 = vst [vmem:[#allocation62_spill] sm:$0xff] %v6041_v56  ;;  %v6043_v0 = vpop.eup %5218  ;;  %5230 = vlog2.f32 %v161_v4  ;;  %v168_v56 = vld [vmem:[#allocation2 + $0x3b0] sm:$0xff] }
  0x78   :  { %7747 = vst [vmem:[#allocation63_spill] sm:$0xff] %v6043_v0  ;;  %v6045_v28 = vpop.eup %5220  ;;  %5232 = vlog2.f32 %v162_v8  ;;  %v169_v0 = vld [vmem:[#allocation2 + $0x3b8] sm:$0xff] }
  0x79   :  { %7748 = vst [vmem:[#allocation64_spill] sm:$0xff] %v6045_v28  ;;  %v6047_v36 = vpop.eup %5222  ;;  %5234 = vlog2.f32 %v163_v16  ;;  %v170_v28 = vld [vmem:[#allocation2 + $0x3c0] sm:$0xff] }
  0x7a   :  { %7749 = vst [vmem:[#allocation65_spill] sm:$0xff] %v6047_v36  ;;  %v6049_v44 = vpop.eup %5224  ;;  %5236 = vlog2.f32 %v164_v24  ;;  %v171_v36 = vld [vmem:[#allocation2 + $0x3c8] sm:$0xff] }
  0x7b   :  { %7750 = vst [vmem:[#allocation66_spill] sm:$0xff] %v6049_v44  ;;  %v6051_v52 = vpop.eup %5226  ;;  %5238 = vlog2.f32 %v165_v32  ;;  %v172_v44 = vld [vmem:[#allocation2 + $0x3d0] sm:$0xff] }
  0x7c   :  { %7751 = vst [vmem:[#allocation67_spill] sm:$0xff] %v6051_v52  ;;  %v6053_v60 = vpop.eup %5228  ;;  %5240 = vlog2.f32 %v166_v40  ;;  %v173_v52 = vld [vmem:[#allocation2 + $0x3d8] sm:$0xff] }
  0x7d   :  { %7752 = vst [vmem:[#allocation68_spill] sm:$0xff] %v6053_v60  ;;  %v6055_v4 = vpop.eup %5230  ;;  %5242 = vlog2.f32 %v167_v48  ;;  %v174_v60 = vld [vmem:[#allocation2 + $0x3e0] sm:$0xff] }
  0x7e   :  { %7753 = vst [vmem:[#allocation69_spill] sm:$0xff] %v6055_v4  ;;  %v6057_v8 = vpop.eup %5232  ;;  %5244 = vlog2.f32 %v168_v56  ;;  %v175_v4 = vld [vmem:[#allocation2 + $0x3e8] sm:$0xff] }
  0x7f   :  { %7754 = vst [vmem:[#allocation70_spill] sm:$0xff] %v6057_v8  ;;  %v6059_v16 = vpop.eup %5234  ;;  %5246 = vlog2.f32 %v169_v0  ;;  %v176_v8 = vld [vmem:[#allocation2 + $0x3f0] sm:$0xff] }
  0x80   :  { %7755 = vst [vmem:[#allocation71_spill] sm:$0xff] %v6059_v16  ;;  %v6061_v24 = vpop.eup %5236  ;;  %5248 = vlog2.f32 %v170_v28  ;;  %v177_v16 = vld [vmem:[#allocation2 + $0x3f8] sm:$0xff] }
  0x81   :  { %7756 = vst [vmem:[#allocation72_spill] sm:$0xff] %v6061_v24  ;;  %v6063_v32 = vpop.eup %5238  ;;  %5250 = vlog2.f32 %v171_v36  ;;  %v178_v24 = vld [vmem:[#allocation2 + $0x400] sm:$0xff] }
  0x82   :  { %7757 = vst [vmem:[#allocation73_spill] sm:$0xff] %v6063_v32  ;;  %v6065_v40 = vpop.eup %5240  ;;  %5252 = vlog2.f32 %v172_v44  ;;  %v179_v32 = vld [vmem:[#allocation2 + $0x408] sm:$0xff] }
  0x83   :  { %7758 = vst [vmem:[#allocation74_spill] sm:$0xff] %v6065_v40  ;;  %v6067_v48 = vpop.eup %5242  ;;  %5254 = vlog2.f32 %v173_v52  ;;  %v180_v40 = vld [vmem:[#allocation2 + $0x410] sm:$0xff] }
  0x84   :  { %7759 = vst [vmem:[#allocation75_spill] sm:$0xff] %v6067_v48  ;;  %v6069_v56 = vpop.eup %5244  ;;  %5256 = vlog2.f32 %v174_v60  ;;  %v181_v48 = vld [vmem:[#allocation2 + $0x418] sm:$0xff] }
  0x85   :  { %7760 = vst [vmem:[#allocation76_spill] sm:$0xff] %v6069_v56  ;;  %v6071_v0 = vpop.eup %5246  ;;  %5258 = vlog2.f32 %v175_v4  ;;  %v182_v56 = vld [vmem:[#allocation2 + $0x420] sm:$0xff] }
  0x86   :  { %7761 = vst [vmem:[#allocation77_spill] sm:$0xff] %v6071_v0  ;;  %v6073_v28 = vpop.eup %5248  ;;  %5260 = vlog2.f32 %v176_v8  ;;  %v183_v0 = vld [vmem:[#allocation2 + $0x428] sm:$0xff] }
  0x87   :  { %7762 = vst [vmem:[#allocation78_spill] sm:$0xff] %v6073_v28  ;;  %v6075_v36 = vpop.eup %5250  ;;  %5262 = vlog2.f32 %v177_v16  ;;  %v184_v28 = vld [vmem:[#allocation2 + $0x430] sm:$0xff] }
  0x88   :  { %7763 = vst [vmem:[#allocation79_spill] sm:$0xff] %v6075_v36  ;;  %v6077_v44 = vpop.eup %5252  ;;  %5264 = vlog2.f32 %v178_v24  ;;  %v185_v36 = vld [vmem:[#allocation2 + $0x438] sm:$0xff] }
  0x89   :  { %7764 = vst [vmem:[#allocation80_spill] sm:$0xff] %v6077_v44  ;;  %v6079_v52 = vpop.eup %5254  ;;  %5266 = vlog2.f32 %v179_v32  ;;  %v186_v44 = vld [vmem:[#allocation2 + $0x440] sm:$0xff] }
  0x8a   :  { %7765 = vst [vmem:[#allocation81_spill] sm:$0xff] %v6079_v52  ;;  %v6081_v60 = vpop.eup %5256  ;;  %5268 = vlog2.f32 %v180_v40  ;;  %v187_v52 = vld [vmem:[#allocation2 + $0x448] sm:$0xff] }
  0x8b   :  { %7766 = vst [vmem:[#allocation82_spill] sm:$0xff] %v6081_v60  ;;  %v6083_v4 = vpop.eup %5258  ;;  %5270 = vlog2.f32 %v181_v48  ;;  %v188_v60 = vld [vmem:[#allocation2 + $0x450] sm:$0xff] }
  0x8c   :  { %7767 = vst [vmem:[#allocation83_spill] sm:$0xff] %v6083_v4  ;;  %v6085_v8 = vpop.eup %5260  ;;  %5272 = vlog2.f32 %v182_v56  ;;  %v189_v4 = vld [vmem:[#allocation2 + $0x458] sm:$0xff] }
  0x8d   :  { %7768 = vst [vmem:[#allocation84_spill] sm:$0xff] %v6085_v8  ;;  %v6087_v16 = vpop.eup %5262  ;;  %5274 = vlog2.f32 %v183_v0  ;;  %v190_v8 = vld [vmem:[#allocation2 + $0x460] sm:$0xff] }
  0x8e   :  { %7769 = vst [vmem:[#allocation85_spill] sm:$0xff] %v6087_v16  ;;  %v6089_v24 = vpop.eup %5264  ;;  %5276 = vlog2.f32 %v184_v28  ;;  %v191_v16 = vld [vmem:[#allocation2 + $0x468] sm:$0xff] }
  0x8f   :  { %7770 = vst [vmem:[#allocation86_spill] sm:$0xff] %v6089_v24  ;;  %v6091_v32 = vpop.eup %5266  ;;  %5278 = vlog2.f32 %v185_v36  ;;  %v192_v24 = vld [vmem:[#allocation2 + $0x470] sm:$0xff] }
  0x90   :  { %7771 = vst [vmem:[#allocation87_spill] sm:$0xff] %v6091_v32  ;;  %v6093_v40 = vpop.eup %5268  ;;  %5280 = vlog2.f32 %v186_v44  ;;  %v193_v32 = vld [vmem:[#allocation2 + $0x478] sm:$0xff] }
  0x91   :  { %7772 = vst [vmem:[#allocation88_spill] sm:$0xff] %v6093_v40  ;;  %v6095_v48 = vpop.eup %5270  ;;  %5282 = vlog2.f32 %v187_v52  ;;  %v194_v40 = vld [vmem:[#allocation2 + $0x480] sm:$0xff] }
  0x92   :  { %7773 = vst [vmem:[#allocation89_spill] sm:$0xff] %v6095_v48  ;;  %v6097_v56 = vpop.eup %5272  ;;  %5284 = vlog2.f32 %v188_v60  ;;  %v195_v48 = vld [vmem:[#allocation2 + $0x488] sm:$0xff] }
  0x93   :  { %7774 = vst [vmem:[#allocation90_spill] sm:$0xff] %v6097_v56  ;;  %v6099_v0 = vpop.eup %5274  ;;  %5286 = vlog2.f32 %v189_v4  ;;  %v196_v56 = vld [vmem:[#allocation2 + $0x490] sm:$0xff] }
  0x94   :  { %7775 = vst [vmem:[#allocation91_spill] sm:$0xff] %v6099_v0  ;;  %v6101_v28 = vpop.eup %5276  ;;  %5288 = vlog2.f32 %v190_v8  ;;  %v197_v0 = vld [vmem:[#allocation2 + $0x498] sm:$0xff] }
  0x95   :  { %7776 = vst [vmem:[#allocation92_spill] sm:$0xff] %v6101_v28  ;;  %v6103_v36 = vpop.eup %5278  ;;  %5290 = vlog2.f32 %v191_v16  ;;  %v198_v28 = vld [vmem:[#allocation2 + $0x4a0] sm:$0xff] }
  0x96   :  { %7777 = vst [vmem:[#allocation93_spill] sm:$0xff] %v6103_v36  ;;  %v6105_v44 = vpop.eup %5280  ;;  %5292 = vlog2.f32 %v192_v24  ;;  %v199_v36 = vld [vmem:[#allocation2 + $0x4a8] sm:$0xff] }
  0x97   :  { %7778 = vst [vmem:[#allocation94_spill] sm:$0xff] %v6105_v44  ;;  %v6107_v52 = vpop.eup %5282  ;;  %5294 = vlog2.f32 %v193_v32  ;;  %v200_v44 = vld [vmem:[#allocation2 + $0x4b0] sm:$0xff] }
  0x98   :  { %7779 = vst [vmem:[#allocation95_spill] sm:$0xff] %v6107_v52  ;;  %v6109_v60 = vpop.eup %5284  ;;  %5296 = vlog2.f32 %v194_v40  ;;  %v201_v52 = vld [vmem:[#allocation2 + $0x4b8] sm:$0xff] }
  0x99   :  { %7780 = vst [vmem:[#allocation96_spill] sm:$0xff] %v6109_v60  ;;  %v6111_v4 = vpop.eup %5286  ;;  %5298 = vlog2.f32 %v195_v48  ;;  %v202_v60 = vld [vmem:[#allocation2 + $0x4c0] sm:$0xff] }
  0x9a   :  { %7781 = vst [vmem:[#allocation97_spill] sm:$0xff] %v6111_v4  ;;  %v6113_v8 = vpop.eup %5288  ;;  %5300 = vlog2.f32 %v196_v56  ;;  %v203_v4 = vld [vmem:[#allocation2 + $0x4c8] sm:$0xff] }
  0x9b   :  { %7782 = vst [vmem:[#allocation98_spill] sm:$0xff] %v6113_v8  ;;  %v6115_v16 = vpop.eup %5290  ;;  %5302 = vlog2.f32 %v197_v0  ;;  %v204_v8 = vld [vmem:[#allocation2 + $0x4d0] sm:$0xff] }
  0x9c   :  { %7783 = vst [vmem:[#allocation99_spill] sm:$0xff] %v6115_v16  ;;  %v6117_v24 = vpop.eup %5292  ;;  %5304 = vlog2.f32 %v198_v28  ;;  %v205_v16 = vld [vmem:[#allocation2 + $0x4d8] sm:$0xff] }
  0x9d   :  { %7784 = vst [vmem:[#allocation100_spill] sm:$0xff] %v6117_v24  ;;  %v6119_v32 = vpop.eup %5294  ;;  %5306 = vlog2.f32 %v199_v36  ;;  %v206_v24 = vld [vmem:[#allocation2 + $0x4e0] sm:$0xff] }
  0x9e   :  { %7785 = vst [vmem:[#allocation101_spill] sm:$0xff] %v6119_v32  ;;  %v6121_v40 = vpop.eup %5296  ;;  %5308 = vlog2.f32 %v200_v44  ;;  %v207_v32 = vld [vmem:[#allocation2 + $0x4e8] sm:$0xff] }
  0x9f   :  { %7786 = vst [vmem:[#allocation102_spill] sm:$0xff] %v6121_v40  ;;  %v6123_v48 = vpop.eup %5298  ;;  %5310 = vlog2.f32 %v201_v52  ;;  %v208_v40 = vld [vmem:[#allocation2 + $0x4f0] sm:$0xff] }
  0xa0   :  { %7787 = vst [vmem:[#allocation103_spill] sm:$0xff] %v6123_v48  ;;  %v6125_v56 = vpop.eup %5300  ;;  %5312 = vlog2.f32 %v202_v60  ;;  %v209_v48 = vld [vmem:[#allocation2 + $0x4f8] sm:$0xff] }
  0xa1   :  { %7788 = vst [vmem:[#allocation104_spill] sm:$0xff] %v6125_v56  ;;  %v6127_v0 = vpop.eup %5302  ;;  %5314 = vlog2.f32 %v203_v4  ;;  %v210_v56 = vld [vmem:[#allocation2 + $0x500] sm:$0xff] }
  0xa2   :  { %7789 = vst [vmem:[#allocation105_spill] sm:$0xff] %v6127_v0  ;;  %v6129_v28 = vpop.eup %5304  ;;  %5316 = vlog2.f32 %v204_v8  ;;  %v211_v0 = vld [vmem:[#allocation2 + $0x508] sm:$0xff] }
  0xa3   :  { %7790 = vst [vmem:[#allocation106_spill] sm:$0xff] %v6129_v28  ;;  %v6131_v36 = vpop.eup %5306  ;;  %5318 = vlog2.f32 %v205_v16  ;;  %v212_v28 = vld [vmem:[#allocation2 + $0x510] sm:$0xff]  ;;  %v6144_v16 = vmul.f32 0.6931472, %v5833_v9  ;;  %v6160_v9 = vmul.f32 0.6931472, %v5841_v17 }
  0xa4   :  { %7791 = vst [vmem:[#allocation107_spill] sm:$0xff] %v6131_v36  ;;  %v6133_v44 = vpop.eup %5308  ;;  %5320 = vlog2.f32 %v206_v24  ;;  %v213_v36 = vld [vmem:[#allocation2 + $0x518] sm:$0xff]  ;;  %v6176_v17 = vmul.f32 0.6931472, %v5849_v25  ;;  %v6192_v25 = vmul.f32 0.6931472, %v5857_v33 }
  0xa5   :  { %v6135_v52 = vpop.eup %5310  ;;  %5322 = vlog2.f32 %v207_v32  ;;  %7795 = vst [vmem:[#allocation111_spill] sm:$0xff] %v6144_v16  ;;  %v6149_v32 = vmul.f32 0.6931472, %v5835_v11  ;;  %v216_v16 = vld [vmem:[#allocation2 + $0x530] sm:$0xff]  ;;  %v6165_v11 = vmul.f32 0.6931472, %v5843_v19 }
  0xa6   :  { %7792 = vst [vmem:[#allocation108_spill] sm:$0xff] %v6135_v52  ;;  %v6137_v60 = vpop.eup %5312  ;;  %5324 = vlog2.f32 %v208_v40  ;;  %v214_v52 = vld [vmem:[#allocation2 + $0x520] sm:$0xff]  ;;  %v6181_v19 = vmul.f32 0.6931472, %v5851_v27  ;;  %v6197_v27 = vmul.f32 0.6931472, %v5859_v35 }
  0xa7   :  { %7793 = vst [vmem:[#allocation109_spill] sm:$0xff] %v6137_v60  ;;  %v6139_v4 = vpop.eup %5314  ;;  %5326 = vlog2.f32 %v209_v48  ;;  %v6152_v60 = vmul.f32 0.6931472, %v5837_v13  ;;  %v215_v48 = vld [vmem:[#allocation2 + $0x528] sm:$0xff]  ;;  %v6168_v13 = vmul.f32 0.6931472, %v5845_v21 }
  0xa8   :  { %v6141_v8 = vpop.eup %5316  ;;  %5328 = vlog2.f32 %v210_v56  ;;  %7797 = vst [vmem:[#allocation113_spill] sm:$0xff] %v6160_v9  ;;  %v218_v9 = vld [vmem:[#allocation2 + $0x540] sm:$0xff]  ;;  %v6184_v21 = vmul.f32 0.6931472, %v5853_v29  ;;  %v6200_v29 = vmul.f32 0.6931472, %v5861_v37 }
  0xa9   :  { %7794 = vst [vmem:[#allocation110_spill] sm:$0xff] %v6141_v8  ;;  %v6146_v24 = vpop.eup %5318  ;;  %5330 = vlog2.f32 %v211_v0  ;;  %v6157_v8 = vmul.f32 0.6931472, %v5839_v15  ;;  %v6173_v15 = vmul.f32 0.6931472, %v5847_v23 }
  0xaa   :  { %7796 = vst [vmem:[#allocation112_spill] sm:$0xff] %v6152_v60  ;;  %v6154_v40 = vpop.eup %5320  ;;  %5332 = vlog2.f32 %v212_v28  ;;  %v217_v60 = vld [vmem:[#allocation2 + $0x538] sm:$0xff]  ;;  %v6189_v23 = vmul.f32 0.6931472, %v5855_v31  ;;  %v6205_v31 = vmul.f32 0.6931472, %v5863_v39 }
  0xab   :  { %v6162_v56 = vpop.eup %5322  ;;  %7798 = vst [vmem:[#allocation114_spill] sm:$0xff] %v6165_v11  ;;  %5334 = vlog2.f32 %v213_v36  ;;  %v221_v11 = vld [vmem:[#allocation2 + $0x558] sm:$0xff]  ;;  %v6208_v33 = vmul.f32 0.6931472, %v5865_v41  ;;  %v6213_v35 = vmul.f32 0.6931472, %v5867_v43 }
  0xac   :  { %7799 = vst [vmem:[#allocation115_spill] sm:$0xff] %v6168_v13  ;;  %v6170_v0 = vpop.eup %5324  ;;  %5336 = vlog2.f32 %v214_v52  ;;  %v219_v13 = vld [vmem:[#allocation2 + $0x548] sm:$0xff]  ;;  %v6216_v37 = vmul.f32 0.6931472, %v5869_v45  ;;  %v6221_v39 = vmul.f32 0.6931472, %v5871_v47 }
  0xad   :  { %7800 = vst [vmem:[#allocation116_spill] sm:$0xff] %v6173_v15  ;;  %v6178_v28 = vpop.eup %5326  ;;  %5338 = vlog2.f32 %v215_v48  ;;  %v220_v15 = vld [vmem:[#allocation2 + $0x550] sm:$0xff]  ;;  %v6224_v41 = vmul.f32 0.6931472, %v5873_v49  ;;  %v6229_v43 = vmul.f32 0.6931472, %v5875_v51 }
  0xae   :  { %v6186_v36 = vpop.eup %5328  ;;  %7801 = vst [vmem:[#allocation117_spill] sm:$0xff] %v6192_v25  ;;  %5340 = vlog2.f32 %v216_v16  ;;  %v222_v25 = vld [vmem:[#allocation2 + $0x560] sm:$0xff]  ;;  %v6232_v45 = vmul.f32 0.6931472, %v5877_v53  ;;  %v6237_v47 = vmul.f32 0.6931472, %v5879_v55 }
  0xaf   :  { %v6194_v52 = vpop.eup %5330  ;;  %7802 = vst [vmem:[#allocation118_spill] sm:$0xff] %v6197_v27  ;;  %5342 = vlog2.f32 %v217_v60  ;;  %v225_v27 = vld [vmem:[#allocation2 + $0x578] sm:$0xff]  ;;  %v6240_v49 = vmul.f32 0.6931472, %v5881_v57  ;;  %v6245_v51 = vmul.f32 0.6931472, %v5883_v59 }
  0xb0   :  { %7803 = vst [vmem:[#allocation119_spill] sm:$0xff] %v6200_v29  ;;  %v6202_v48 = vpop.eup %5332  ;;  %5344 = vlog2.f32 %v218_v9  ;;  %v223_v29 = vld [vmem:[#allocation2 + $0x568] sm:$0xff]  ;;  %v6248_v53 = vmul.f32 0.6931472, %v5885_v61  ;;  %v6253_v55 = vmul.f32 0.6931472, %v5887_v63 }
  0xb1   :  { %7804 = vst [vmem:[#allocation120_spill] sm:$0xff] %v6205_v31  ;;  %v6210_v16 = vpop.eup %5334  ;;  %5346 = vlog2.f32 %v219_v13  ;;  %v224_v31 = vld [vmem:[#allocation2 + $0x570] sm:$0xff]  ;;  %v6256_v57 = vmul.f32 0.6931472, %v5889_v1  ;;  %v6261_v59 = vmul.f32 0.6931472, %v5891_v3 }
  0xb2   :  { %v6218_v60 = vpop.eup %5336  ;;  %7805 = vst [vmem:[#allocation121_spill] sm:$0xff] %v6224_v41  ;;  %5348 = vlog2.f32 %v220_v15  ;;  %v226_v41 = vld [vmem:[#allocation2 + $0x580] sm:$0xff]  ;;  %v6264_v61 = vmul.f32 0.6931472, %v5893_v5  ;;  %v6269_v63 = vmul.f32 0.6931472, %v5895_v7 }
  0xb3   :  { %v6226_v9 = vpop.eup %5338  ;;  %7806 = vst [vmem:[#allocation122_spill] sm:$0xff] %v6229_v43  ;;  %5350 = vlog2.f32 %v221_v11  ;;  %v229_v43 = vld [vmem:[#allocation2 + $0x598] sm:$0xff]  ;;  %v6272_v1 = vmul.f32 0.6931472, %v5897_v10  ;;  %v6277_v3 = vmul.f32 0.6931472, %v5899_v14 }
  0xb4   :  { %7807 = vst [vmem:[#allocation123_spill] sm:$0xff] %v6232_v45  ;;  %v6234_v13 = vpop.eup %5340  ;;  %5352 = vlog2.f32 %v222_v25  ;;  %v227_v45 = vld [vmem:[#allocation2 + $0x588] sm:$0xff]  ;;  %v6280_v5 = vmul.f32 0.6931472, %v5901_v18  ;;  %v6285_v7 = vmul.f32 0.6931472, %v5903_v22 }
  0xb5   :  { %7808 = vst [vmem:[#allocation124_spill] sm:$0xff] %v6237_v47  ;;  %v6242_v15 = vpop.eup %5342  ;;  %5354 = vlog2.f32 %v223_v29  ;;  %v228_v47 = vld [vmem:[#allocation2 + $0x590] sm:$0xff]  ;;  %v6288_v10 = vmul.f32 0.6931472, %v5905_v26  ;;  %v6293_v14 = vmul.f32 0.6931472, %v5907_v30 }
  0xb6   :  { %v6250_v11 = vpop.eup %5344  ;;  %7809 = vst [vmem:[#allocation125_spill] sm:$0xff] %v6256_v57  ;;  %5356 = vlog2.f32 %v224_v31  ;;  %v230_v57 = vld [vmem:[#allocation2 + $0x5a0] sm:$0xff]  ;;  %v6296_v18 = vmul.f32 0.6931472, %v5909_v34  ;;  %v6301_v22 = vmul.f32 0.6931472, %v5911_v38 }
  0xb7   :  { %v6258_v25 = vpop.eup %5346  ;;  %7810 = vst [vmem:[#allocation126_spill] sm:$0xff] %v6261_v59  ;;  %5358 = vlog2.f32 %v225_v27  ;;  %v233_v59 = vld [vmem:[#allocation2 + $0x5b8] sm:$0xff]  ;;  %v6304_v26 = vmul.f32 0.6931472, %v5913_v42  ;;  %v6309_v30 = vmul.f32 0.6931472, %v5915_v46 }
  0xb8   :  { %7811 = vst [vmem:[#allocation127_spill] sm:$0xff] %v6264_v61  ;;  %v6266_v29 = vpop.eup %5348  ;;  %5360 = vlog2.f32 %v226_v41  ;;  %v231_v61 = vld [vmem:[#allocation2 + $0x5a8] sm:$0xff]  ;;  %v6312_v34 = vmul.f32 0.6931472, %v5917_v50  ;;  %v6317_v38 = vmul.f32 0.6931472, %v5919_v54 }
  0xb9   :  { %7812 = vst [vmem:[#allocation128_spill] sm:$0xff] %v6269_v63  ;;  %v6274_v31 = vpop.eup %5350  ;;  %5362 = vlog2.f32 %v227_v45  ;;  %v232_v63 = vld [vmem:[#allocation2 + $0x5b0] sm:$0xff]  ;;  %v6320_v42 = vmul.f32 0.6931472, %v5921_v58  ;;  %v6325_v46 = vmul.f32 0.6931472, %v5923_v62 }
  0xba   :  { %v6282_v27 = vpop.eup %5352  ;;  %7813 = vst [vmem:[#allocation129_spill] sm:$0xff] %v6288_v10  ;;  %5364 = vlog2.f32 %v228_v47  ;;  %v234_v10 = vld [vmem:[#allocation2 + $0x5c0] sm:$0xff]  ;;  %v6328_v50 = vmul.f32 0.6931472, %v5925_v2  ;;  %v6333_v54 = vmul.f32 0.6931472, %v5927_v6 }
  0xbb   :  { %v6290_v41 = vpop.eup %5354  ;;  %7814 = vst [vmem:[#allocation130_spill] sm:$0xff] %v6293_v14  ;;  %5366 = vlog2.f32 %v229_v43  ;;  %v237_v14 = vld [vmem:[#allocation2 + $0x5d8] sm:$0xff]  ;;  %v6336_v58 = vmul.f32 0.6931472, %v5929_v12  ;;  %v6341_v62 = vmul.f32 0.6931472, %v5931_v20 }
  0xbc   :  { %7815 = vst [vmem:[#allocation131_spill] sm:$0xff] %v6296_v18  ;;  %v6298_v45 = vpop.eup %5356  ;;  %5368 = vlog2.f32 %v230_v57  ;;  %v235_v18 = vld [vmem:[#allocation2 + $0x5c8] sm:$0xff]  ;;  %v7833_v12 = vld [vmem:[#allocation10_spill] sm:$0xff]  ;;  %v242_v20 = vld [vmem:[#allocation2 + $0x600] sm:$0xff] }
  0xbd   :  { %7816 = vst [vmem:[#allocation132_spill] sm:$0xff] %v6301_v22  ;;  %v6306_v47 = vpop.eup %5358  ;;  %5370 = vlog2.f32 %v231_v61  ;;  %v236_v22 = vld [vmem:[#allocation2 + $0x5d0] sm:$0xff]  ;;  %v7831_v6 = vld [vmem:[#allocation9_spill] sm:$0xff] }
  0xbe   :  { %7817 = vst [vmem:[#allocation133_spill] sm:$0xff] %v6309_v30  ;;  %v6314_v43 = vpop.eup %5360  ;;  %5372 = vlog2.f32 %v232_v63 }
  0xbf   :  { %7818 = vst [vmem:[#allocation134_spill] sm:$0xff] %v6312_v34  ;;  %v6322_v57 = vpop.eup %5362  ;;  %5374 = vlog2.f32 %v233_v59 }
  0xc0   :  { %7819 = vst [vmem:[#allocation135_spill] sm:$0xff] %v6317_v38  ;;  %v6330_v61 = vpop.eup %5364  ;;  %5376 = vlog2.f32 %v234_v10  ;;  %v240_v38 = vld [vmem:[#allocation2 + $0x5f0] sm:$0xff] }
  0xc1   :  { %7820 = vst [vmem:[#allocation136_spill] sm:$0xff] %v6320_v42  ;;  %v6338_v63 = vpop.eup %5366  ;;  %v238_v42 = vld [vmem:[#allocation2 + $0x5e0] sm:$0xff]  ;;  %5378 = vlog2.f32 %v235_v18 }
  0xc2   :  { %7821 = vst [vmem:[#allocation137_spill] sm:$0xff] %v6325_v46  ;;  %v7828_v46 = vld [vmem:[#allocation8_spill] sm:$0xff]  ;;  %v6346_v59 = vpop.eup %5368  ;;  %5380 = vlog2.f32 %v236_v22  ;;  %v7845_v22 = vld [vmem:[#allocation15_spill] sm:$0xff] }
  0xc3   :  { %7822 = vst [vmem:[#allocation138_spill] sm:$0xff] %v6328_v50  ;;  %v6344_v2 = vmul.f32 0.6931472, %v7828_v46  ;;  %v239_v50 = vld [vmem:[#allocation2 + $0x5e8] sm:$0xff]  ;;  %v6354_v10 = vpop.eup %5370  ;;  %v7838_v46 = vld [vmem:[#allocation12_spill] sm:$0xff]  ;;  %5382 = vlog2.f32 %v237_v14 }
  0xc4   :  { %7823 = vst [vmem:[#allocation139_spill] sm:$0xff] %v6330_v61  ;;  %v6360_v18 = vmul.f32 0.6931472, %v7838_v46  ;;  %5384 = vlog2.f32 %v238_v42  ;;  %v7850_v14 = vld [vmem:[#allocation17_spill] sm:$0xff]  ;;  %v7857_v42 = vld [vmem:[#allocation20_spill] sm:$0xff] }
  0xc5   :  { %7824 = vst [vmem:[#allocation140_spill] sm:$0xff] %v6333_v54  ;;  %v6349_v54 = vmul.f32 0.6931472, %v7831_v6  ;;  %v7841_v6 = vld [vmem:[#allocation13_spill] sm:$0xff]  ;;  %5386 = vlog2.f32 %v239_v50  ;;  %v7864_v50 = vld [vmem:[#allocation23_spill] sm:$0xff] }
  0xc6   :  { %7825 = vst [vmem:[#allocation141_spill] sm:$0xff] %v6336_v58  ;;  %v6352_v58 = vmul.f32 0.6931472, %v7833_v12  ;;  %v7843_v12 = vld [vmem:[#allocation14_spill] sm:$0xff]  ;;  %5388 = vlog2.f32 %v240_v38 }
  0xc7   :  { %7826 = vst [vmem:[#allocation142_spill] sm:$0xff] %v6338_v63  ;;  %v241_v63 = vld [vmem:[#allocation2 + $0x5f8] sm:$0xff]  ;;  %v7871_v38 = vld [vmem:[#allocation26_spill] sm:$0xff] }
  0xc8   :  { %7827 = vst [vmem:[#allocation143_spill] sm:$0xff] %v6341_v62  ;;  %v7836_v62 = vld [vmem:[#allocation11_spill] sm:$0xff]  ;;  %5390 = vlog2.f32 %v241_v63  ;;  %v7878_v63 = vld [vmem:[#allocation29_spill] sm:$0xff] }
  0xc9   :  { %7829 = vst [vmem:[#allocation8_spill] sm:$0xff] %v6344_v2  ;;  %v6357_v34 = vmul.f32 0.6931472, %v7836_v62  ;;  %v6362_v2 = vpop.eup %5372  ;;  %v244_v62 = vld [vmem:[#allocation2 + $0x610] sm:$0xff]  ;;  %5392 = vlog2.f32 %v242_v20  ;;  %v7885_v20 = vld [vmem:[#allocation32_spill] sm:$0xff] }
  0xca   :  { %7830 = vst [vmem:[#allocation144_spill] sm:$0xff] %v6346_v59  ;;  %v243_v59 = vld [vmem:[#allocation2 + $0x608] sm:$0xff]  ;;  %v6373_v61 = vpop.eup %5374 }
  0xcb   :  { %7832 = vst [vmem:[#allocation9_spill] sm:$0xff] %v6349_v54  ;;  %v6365_v54 = vmul.f32 0.6931472, %v7841_v6  ;;  %v6384_v6 = vpop.eup %5376  ;;  %5394 = vlog2.f32 %v243_v59  ;;  %v7892_v59 = vld [vmem:[#allocation35_spill] sm:$0xff] }
  0xcc   :  { %7834 = vst [vmem:[#allocation10_spill] sm:$0xff] %v6352_v58  ;;  %v6368_v58 = vmul.f32 0.6931472, %v7843_v12  ;;  %v245_v12 = vld [vmem:[#allocation2 + $0x618] sm:$0xff]  ;;  %5396 = vlog2.f32 %v244_v62  ;;  %v7899_v62 = vld [vmem:[#allocation38_spill] sm:$0xff] }
  0xcd   :  { %7835 = vst [vmem:[#allocation145_spill] sm:$0xff] %v6354_v10  ;;  %v6371_v10 = vmul.f32 0.6931472, %v7845_v22  ;;  %5398 = vlog2.f32 %v245_v12  ;;  %v7906_v12 = vld [vmem:[#allocation41_spill] sm:$0xff] }
  0xce   :  { %7837 = vst [vmem:[#allocation11_spill] sm:$0xff] %v6357_v34  ;;  %v7848_v34 = vld [vmem:[#allocation16_spill] sm:$0xff] }
  0xcf   :  { %7839 = vst [vmem:[#allocation12_spill] sm:$0xff] %v6360_v18  ;;  %v6376_v46 = vmul.f32 0.6931472, %v7848_v34  ;;  %v6379_v18 = vmul.f32 0.6931472, %v7850_v14  ;;  %v6395_v34 = vpop.eup %5378  ;;  %v246_v14 = vld [vmem:[#allocation2 + $0x620] sm:$0xff] }
  0xd0   :  { %7840 = vst [vmem:[#allocation146_spill] sm:$0xff] %v6362_v2  ;;  %v7852_v2 = vld [vmem:[#allocation18_spill] sm:$0xff]  ;;  %5400 = vlog2.f32 %v246_v14  ;;  %v7913_v14 = vld [vmem:[#allocation44_spill] sm:$0xff] }
  0xd1   :  { %7842 = vst [vmem:[#allocation13_spill] sm:$0xff] %v6365_v54  ;;  %v6382_v30 = vmul.f32 0.6931472, %v7852_v2  ;;  %v7855_v54 = vld [vmem:[#allocation19_spill] sm:$0xff] }
  0xd2   :  { %7844 = vst [vmem:[#allocation14_spill] sm:$0xff] %v6368_v58  ;;  %v6387_v22 = vmul.f32 0.6931472, %v7855_v54  ;;  %v6406_v54 = vpop.eup %5380 }
  0xd3   :  { %7846 = vst [vmem:[#allocation15_spill] sm:$0xff] %v6371_v10  ;;  %v6390_v10 = vmul.f32 0.6931472, %v7857_v42  ;;  %v247_v42 = vld [vmem:[#allocation2 + $0x628] sm:$0xff] }
  0xd4   :  { %7847 = vst [vmem:[#allocation147_spill] sm:$0xff] %v6373_v61  ;;  %v7859_v61 = vld [vmem:[#allocation21_spill] sm:$0xff]  ;;  %5402 = vlog2.f32 %v247_v42  ;;  %v7920_v42 = vld [vmem:[#allocation47_spill] sm:$0xff] }
  0xd5   :  { %7849 = vst [vmem:[#allocation16_spill] sm:$0xff] %v6376_v46  ;;  %v6393_v58 = vmul.f32 0.6931472, %v7859_v61 }
  0xd6   :  { %7851 = vst [vmem:[#allocation17_spill] sm:$0xff] %v6379_v18  ;;  %v7862_v18 = vld [vmem:[#allocation22_spill] sm:$0xff] }
  0xd7   :  { %7853 = vst [vmem:[#allocation18_spill] sm:$0xff] %v6382_v30  ;;  %v6398_v2 = vmul.f32 0.6931472, %v7862_v18  ;;  %v6401_v30 = vmul.f32 0.6931472, %v7864_v50  ;;  %v6417_v18 = vpop.eup %5382  ;;  %v248_v50 = vld [vmem:[#allocation2 + $0x630] sm:$0xff] }
  0xd8   :  { %7854 = vst [vmem:[#allocation148_spill] sm:$0xff] %v6384_v6  ;;  %v7866_v6 = vld [vmem:[#allocation24_spill] sm:$0xff]  ;;  %5404 = vlog2.f32 %v248_v50  ;;  %v7927_v50 = vld [vmem:[#allocation50_spill] sm:$0xff] }
  0xd9   :  { %7856 = vst [vmem:[#allocation19_spill] sm:$0xff] %v6387_v22  ;;  %v6404_v46 = vmul.f32 0.6931472, %v7866_v6  ;;  %v7873_v22 = vld [vmem:[#allocation27_spill] sm:$0xff] }
  0xda   :  { %7858 = vst [vmem:[#allocation20_spill] sm:$0xff] %v6390_v10  ;;  %v7869_v10 = vld [vmem:[#allocation25_spill] sm:$0xff] }
  0xdb   :  { %7860 = vst [vmem:[#allocation21_spill] sm:$0xff] %v6393_v58  ;;  %v6409_v61 = vmul.f32 0.6931472, %v7869_v10  ;;  %v6412_v58 = vmul.f32 0.6931472, %v7871_v38  ;;  %v6428_v10 = vpop.eup %5384  ;;  %v249_v38 = vld [vmem:[#allocation2 + $0x638] sm:$0xff] }
  0xdc   :  { %7861 = vst [vmem:[#allocation149_spill] sm:$0xff] %v6395_v34  ;;  %v6415_v34 = vmul.f32 0.6931472, %v7873_v22  ;;  %5406 = vlog2.f32 %v249_v38  ;;  %v7934_v38 = vld [vmem:[#allocation53_spill] sm:$0xff] }
  0xdd   :  { %7863 = vst [vmem:[#allocation22_spill] sm:$0xff] %v6398_v2 }
  0xde   :  { %7865 = vst [vmem:[#allocation23_spill] sm:$0xff] %v6401_v30  ;;  %v7876_v30 = vld [vmem:[#allocation28_spill] sm:$0xff] }
  0xdf   :  { %7867 = vst [vmem:[#allocation24_spill] sm:$0xff] %v6404_v46  ;;  %v6420_v6 = vmul.f32 0.6931472, %v7876_v30  ;;  %v6423_v46 = vmul.f32 0.6931472, %v7878_v63  ;;  %v6439_v30 = vpop.eup %5386  ;;  %v250_v63 = vld [vmem:[#allocation2 + $0x640] sm:$0xff] }
  0xe0   :  { %7868 = vst [vmem:[#allocation150_spill] sm:$0xff] %v6406_v54  ;;  %v7880_v54 = vld [vmem:[#allocation30_spill] sm:$0xff]  ;;  %5408 = vlog2.f32 %v250_v63  ;;  %v7941_v63 = vld [vmem:[#allocation56_spill] sm:$0xff] }
  0xe1   :  { %7870 = vst [vmem:[#allocation25_spill] sm:$0xff] %v6409_v61  ;;  %v6426_v2 = vmul.f32 0.6931472, %v7880_v54 }
  0xe2   :  { %7872 = vst [vmem:[#allocation26_spill] sm:$0xff] %v6412_v58  ;;  %v7883_v58 = vld [vmem:[#allocation31_spill] sm:$0xff] }
  0xe3   :  { %7874 = vst [vmem:[#allocation27_spill] sm:$0xff] %v6415_v34  ;;  %v6431_v22 = vmul.f32 0.6931472, %v7883_v58  ;;  %v6434_v34 = vmul.f32 0.6931472, %v7885_v20  ;;  %v6450_v58 = vpop.eup %5388  ;;  %v251_v20 = vld [vmem:[#allocation2 + $0x648] sm:$0xff] }
  0xe4   :  { %7875 = vst [vmem:[#allocation151_spill] sm:$0xff] %v6417_v18  ;;  %v7887_v18 = vld [vmem:[#allocation33_spill] sm:$0xff]  ;;  %5410 = vlog2.f32 %v251_v20  ;;  %v7948_v20 = vld [vmem:[#allocation59_spill] sm:$0xff] }
  0xe5   :  { %7877 = vst [vmem:[#allocation28_spill] sm:$0xff] %v6420_v6  ;;  %v6437_v61 = vmul.f32 0.6931472, %v7887_v18  ;;  %v6445_v6 = vmul.f32 0.6931472, %v7892_v59  ;;  %v252_v59 = vld [vmem:[#allocation2 + $0x650] sm:$0xff] }
  0xe6   :  { %7879 = vst [vmem:[#allocation29_spill] sm:$0xff] %v6423_v46  ;;  %v7890_v46 = vld [vmem:[#allocation34_spill] sm:$0xff]  ;;  %5412 = vlog2.f32 %v252_v59 }
  0xe7   :  { %7881 = vst [vmem:[#allocation30_spill] sm:$0xff] %v6426_v2  ;;  %v6442_v54 = vmul.f32 0.6931472, %v7890_v46  ;;  %v6461_v46 = vpop.eup %5390  ;;  %v7955_v59 = vld [vmem:[#allocation62_spill] sm:$0xff] }
  0xe8   :  { %7882 = vst [vmem:[#allocation152_spill] sm:$0xff] %v6428_v10  ;;  %v7894_v10 = vld [vmem:[#allocation36_spill] sm:$0xff] }
  0xe9   :  { %7884 = vst [vmem:[#allocation31_spill] sm:$0xff] %v6431_v22  ;;  %v6448_v2 = vmul.f32 0.6931472, %v7894_v10 }
  0xea   :  { %7886 = vst [vmem:[#allocation32_spill] sm:$0xff] %v6434_v34  ;;  %v7897_v34 = vld [vmem:[#allocation37_spill] sm:$0xff] }
  0xeb   :  { %7888 = vst [vmem:[#allocation33_spill] sm:$0xff] %v6437_v61  ;;  %v6453_v18 = vmul.f32 0.6931472, %v7897_v34  ;;  %v6456_v61 = vmul.f32 0.6931472, %v7899_v62  ;;  %v6472_v34 = vpop.eup %5392  ;;  %v253_v62 = vld [vmem:[#allocation2 + $0x658] sm:$0xff] }
  0xec   :  { %7889 = vst [vmem:[#allocation153_spill] sm:$0xff] %v6439_v30  ;;  %v7901_v30 = vld [vmem:[#allocation39_spill] sm:$0xff]  ;;  %5414 = vlog2.f32 %v253_v62  ;;  %v7962_v62 = vld [vmem:[#allocation65_spill] sm:$0xff] }
  0xed   :  { %7891 = vst [vmem:[#allocation34_spill] sm:$0xff] %v6442_v54  ;;  %v6459_v22 = vmul.f32 0.6931472, %v7901_v30  ;;  %v7908_v54 = vld [vmem:[#allocation42_spill] sm:$0xff] }
  0xee   :  { %7893 = vst [vmem:[#allocation35_spill] sm:$0xff] %v6445_v6  ;;  %v7904_v6 = vld [vmem:[#allocation40_spill] sm:$0xff] }
  0xef   :  { %7895 = vst [vmem:[#allocation36_spill] sm:$0xff] %v6448_v2  ;;  %v6464_v10 = vmul.f32 0.6931472, %v7904_v6  ;;  %v6467_v2 = vmul.f32 0.6931472, %v7906_v12  ;;  %v6483_v6 = vpop.eup %5394  ;;  %v254_v12 = vld [vmem:[#allocation2 + $0x660] sm:$0xff] }
  0xf0   :  { %7896 = vst [vmem:[#allocation154_spill] sm:$0xff] %v6450_v58  ;;  %v6470_v58 = vmul.f32 0.6931472, %v7908_v54  ;;  %5416 = vlog2.f32 %v254_v12  ;;  %v7969_v12 = vld [vmem:[#allocation68_spill] sm:$0xff] }
  0xf1   :  { %7898 = vst [vmem:[#allocation37_spill] sm:$0xff] %v6453_v18  ;;  %v7911_v18 = vld [vmem:[#allocation43_spill] sm:$0xff] }
  0xf2   :  { %7900 = vst [vmem:[#allocation38_spill] sm:$0xff] %v6456_v61  ;;  %v6475_v30 = vmul.f32 0.6931472, %v7911_v18  ;;  %v6494_v18 = vpop.eup %5396 }
  0xf3   :  { %7902 = vst [vmem:[#allocation39_spill] sm:$0xff] %v6459_v22  ;;  %v6478_v22 = vmul.f32 0.6931472, %v7913_v14  ;;  %v255_v14 = vld [vmem:[#allocation2 + $0x668] sm:$0xff] }
  0xf4   :  { %7903 = vst [vmem:[#allocation155_spill] sm:$0xff] %v6461_v46  ;;  %v7915_v46 = vld [vmem:[#allocation45_spill] sm:$0xff]  ;;  %5418 = vlog2.f32 %v255_v14  ;;  %v7976_v14 = vld [vmem:[#allocation71_spill] sm:$0xff] }
  0xf5   :  { %7905 = vst [vmem:[#allocation40_spill] sm:$0xff] %v6464_v10  ;;  %v6481_v61 = vmul.f32 0.6931472, %v7915_v46 }
  0xf6   :  { %7907 = vst [vmem:[#allocation41_spill] sm:$0xff] %v6467_v2  ;;  %v7918_v2 = vld [vmem:[#allocation46_spill] sm:$0xff] }
  0xf7   :  { %7909 = vst [vmem:[#allocation42_spill] sm:$0xff] %v6470_v58  ;;  %v6486_v54 = vmul.f32 0.6931472, %v7918_v2  ;;  %v6489_v58 = vmul.f32 0.6931472, %v7920_v42  ;;  %v6505_v2 = vpop.eup %5398  ;;  %v256_v42 = vld [vmem:[#allocation2 + $0x670] sm:$0xff] }
  0xf8   :  { %7910 = vst [vmem:[#allocation156_spill] sm:$0xff] %v6472_v34  ;;  %v7922_v34 = vld [vmem:[#allocation48_spill] sm:$0xff]  ;;  %5420 = vlog2.f32 %v256_v42  ;;  %v7983_v42 = vld [vmem:[#allocation74_spill] sm:$0xff] }
  0xf9   :  { %7912 = vst [vmem:[#allocation43_spill] sm:$0xff] %v6475_v30  ;;  %v6492_v10 = vmul.f32 0.6931472, %v7922_v34  ;;  %v7929_v30 = vld [vmem:[#allocation51_spill] sm:$0xff] }
  0xfa   :  { %7914 = vst [vmem:[#allocation44_spill] sm:$0xff] %v6478_v22  ;;  %v7925_v22 = vld [vmem:[#allocation49_spill] sm:$0xff] }
  0xfb   :  { %7916 = vst [vmem:[#allocation45_spill] sm:$0xff] %v6481_v61  ;;  %v6497_v46 = vmul.f32 0.6931472, %v7925_v22  ;;  %v6500_v61 = vmul.f32 0.6931472, %v7927_v50  ;;  %v6516_v22 = vpop.eup %5400  ;;  %v257_v50 = vld [vmem:[#allocation2 + $0x678] sm:$0xff] }
  0xfc   :  { %7917 = vst [vmem:[#allocation157_spill] sm:$0xff] %v6483_v6  ;;  %v6503_v6 = vmul.f32 0.6931472, %v7929_v30  ;;  %5422 = vlog2.f32 %v257_v50  ;;  %v7990_v50 = vld [vmem:[#allocation77_spill] sm:$0xff] }
  0xfd   :  { %7919 = vst [vmem:[#allocation46_spill] sm:$0xff] %v6486_v54 }
  0xfe   :  { %7921 = vst [vmem:[#allocation47_spill] sm:$0xff] %v6489_v58  ;;  %v7932_v58 = vld [vmem:[#allocation52_spill] sm:$0xff] }
  0xff   :  { %7923 = vst [vmem:[#allocation48_spill] sm:$0xff] %v6492_v10  ;;  %v6508_v34 = vmul.f32 0.6931472, %v7932_v58  ;;  %v6511_v10 = vmul.f32 0.6931472, %v7934_v38  ;;  %v6527_v58 = vpop.eup %5402  ;;  %v258_v38 = vld [vmem:[#allocation2 + $0x680] sm:$0xff] }
 0x100   :  { %7924 = vst [vmem:[#allocation158_spill] sm:$0xff] %v6494_v18  ;;  %v7936_v18 = vld [vmem:[#allocation54_spill] sm:$0xff]  ;;  %5424 = vlog2.f32 %v258_v38  ;;  %v7997_v38 = vld [vmem:[#allocation80_spill] sm:$0xff] }
 0x101   :  { %7926 = vst [vmem:[#allocation49_spill] sm:$0xff] %v6497_v46  ;;  %v6514_v54 = vmul.f32 0.6931472, %v7936_v18 }
 0x102   :  { %7928 = vst [vmem:[#allocation50_spill] sm:$0xff] %v6500_v61  ;;  %v7939_v61 = vld [vmem:[#allocation55_spill] sm:$0xff] }
 0x103   :  { %7930 = vst [vmem:[#allocation51_spill] sm:$0xff] %v6503_v6  ;;  %v6519_v30 = vmul.f32 0.6931472, %v7939_v61  ;;  %v6522_v6 = vmul.f32 0.6931472, %v7941_v63  ;;  %v6538_v61 = vpop.eup %5404  ;;  %v259_v63 = vld [vmem:[#allocation2 + $0x688] sm:$0xff] }
 0x104   :  { %7931 = vst [vmem:[#allocation159_spill] sm:$0xff] %v6505_v2  ;;  %v7943_v2 = vld [vmem:[#allocation57_spill] sm:$0xff]  ;;  %5426 = vlog2.f32 %v259_v63  ;;  %v8004_v63 = vld [vmem:[#allocation83_spill] sm:$0xff] }
 0x105   :  { %7933 = vst [vmem:[#allocation52_spill] sm:$0xff] %v6508_v34  ;;  %v6525_v46 = vmul.f32 0.6931472, %v7943_v2  ;;  %v6533_v34 = vmul.f32 0.6931472, %v7948_v20  ;;  %v260_v20 = vld [vmem:[#allocation2 + $0x690] sm:$0xff] }
 0x106   :  { %7935 = vst [vmem:[#allocation53_spill] sm:$0xff] %v6511_v10  ;;  %v7946_v10 = vld [vmem:[#allocation58_spill] sm:$0xff]  ;;  %5428 = vlog2.f32 %v260_v20 }
 0x107   :  { %7937 = vst [vmem:[#allocation54_spill] sm:$0xff] %v6514_v54  ;;  %v6530_v18 = vmul.f32 0.6931472, %v7946_v10  ;;  %v6549_v10 = vpop.eup %5406  ;;  %v8011_v20 = vld [vmem:[#allocation86_spill] sm:$0xff] }
 0x108   :  { %7938 = vst [vmem:[#allocation160_spill] sm:$0xff] %v6516_v22  ;;  %v7950_v22 = vld [vmem:[#allocation60_spill] sm:$0xff] }
 0x109   :  { %7940 = vst [vmem:[#allocation55_spill] sm:$0xff] %v6519_v30  ;;  %v6536_v54 = vmul.f32 0.6931472, %v7950_v22 }
 0x10a   :  { %7942 = vst [vmem:[#allocation56_spill] sm:$0xff] %v6522_v6  ;;  %v7953_v6 = vld [vmem:[#allocation61_spill] sm:$0xff] }
 0x10b   :  { %7944 = vst [vmem:[#allocation57_spill] sm:$0xff] %v6525_v46  ;;  %v6541_v2 = vmul.f32 0.6931472, %v7953_v6  ;;  %v6544_v46 = vmul.f32 0.6931472, %v7955_v59  ;;  %v6560_v6 = vpop.eup %5408  ;;  %v261_v59 = vld [vmem:[#allocation2 + $0x698] sm:$0xff] }
 0x10c   :  { %7945 = vst [vmem:[#allocation161_spill] sm:$0xff] %v6527_v58  ;;  %v7957_v58 = vld [vmem:[#allocation63_spill] sm:$0xff]  ;;  %5430 = vlog2.f32 %v261_v59  ;;  %v8018_v59 = vld [vmem:[#allocation89_spill] sm:$0xff] }
 0x10d   :  { %7947 = vst [vmem:[#allocation58_spill] sm:$0xff] %v6530_v18  ;;  %v6547_v30 = vmul.f32 0.6931472, %v7957_v58  ;;  %v7964_v18 = vld [vmem:[#allocation66_spill] sm:$0xff] }
 0x10e   :  { %7949 = vst [vmem:[#allocation59_spill] sm:$0xff] %v6533_v34  ;;  %v7960_v34 = vld [vmem:[#allocation64_spill] sm:$0xff] }
 0x10f   :  { %7951 = vst [vmem:[#allocation60_spill] sm:$0xff] %v6536_v54  ;;  %v6552_v22 = vmul.f32 0.6931472, %v7960_v34  ;;  %v6555_v54 = vmul.f32 0.6931472, %v7962_v62  ;;  %v6571_v34 = vpop.eup %5410  ;;  %v262_v62 = vld [vmem:[#allocation2 + $0x6a0] sm:$0xff] }
 0x110   :  { %7952 = vst [vmem:[#allocation162_spill] sm:$0xff] %v6538_v61  ;;  %v6558_v61 = vmul.f32 0.6931472, %v7964_v18  ;;  %5432 = vlog2.f32 %v262_v62  ;;  %v8025_v62 = vld [vmem:[#allocation92_spill] sm:$0xff] }
 0x111   :  { %7954 = vst [vmem:[#allocation61_spill] sm:$0xff] %v6541_v2  ;;  %v7967_v2 = vld [vmem:[#allocation67_spill] sm:$0xff] }
 0x112   :  { %7956 = vst [vmem:[#allocation62_spill] sm:$0xff] %v6544_v46  ;;  %v6563_v58 = vmul.f32 0.6931472, %v7967_v2  ;;  %v6582_v2 = vpop.eup %5412 }
 0x113   :  { %7958 = vst [vmem:[#allocation63_spill] sm:$0xff] %v6547_v30  ;;  %v6566_v30 = vmul.f32 0.6931472, %v7969_v12  ;;  %v263_v12 = vld [vmem:[#allocation2 + $0x6a8] sm:$0xff] }
 0x114   :  { %7959 = vst [vmem:[#allocation163_spill] sm:$0xff] %v6549_v10  ;;  %v7971_v10 = vld [vmem:[#allocation69_spill] sm:$0xff]  ;;  %5434 = vlog2.f32 %v263_v12  ;;  %v8032_v12 = vld [vmem:[#allocation95_spill] sm:$0xff] }
 0x115   :  { %7961 = vst [vmem:[#allocation64_spill] sm:$0xff] %v6552_v22  ;;  %v6569_v46 = vmul.f32 0.6931472, %v7971_v10 }
 0x116   :  { %7963 = vst [vmem:[#allocation65_spill] sm:$0xff] %v6555_v54  ;;  %v7974_v54 = vld [vmem:[#allocation70_spill] sm:$0xff] }
 0x117   :  { %7965 = vst [vmem:[#allocation66_spill] sm:$0xff] %v6558_v61  ;;  %v6574_v18 = vmul.f32 0.6931472, %v7974_v54  ;;  %v6577_v61 = vmul.f32 0.6931472, %v7976_v14  ;;  %v6593_v54 = vpop.eup %5414  ;;  %v264_v14 = vld [vmem:[#allocation2 + $0x6b0] sm:$0xff] }
 0x118   :  { %7966 = vst [vmem:[#allocation164_spill] sm:$0xff] %v6560_v6  ;;  %v7978_v6 = vld [vmem:[#allocation72_spill] sm:$0xff]  ;;  %5436 = vlog2.f32 %v264_v14  ;;  %v8039_v14 = vld [vmem:[#allocation98_spill] sm:$0xff] }
 0x119   :  { %7968 = vst [vmem:[#allocation67_spill] sm:$0xff] %v6563_v58  ;;  %v6580_v22 = vmul.f32 0.6931472, %v7978_v6  ;;  %v7985_v58 = vld [vmem:[#allocation75_spill] sm:$0xff] }
 0x11a   :  { %7970 = vst [vmem:[#allocation68_spill] sm:$0xff] %v6566_v30  ;;  %v7981_v30 = vld [vmem:[#allocation73_spill] sm:$0xff] }
 0x11b   :  { %7972 = vst [vmem:[#allocation69_spill] sm:$0xff] %v6569_v46  ;;  %v6585_v10 = vmul.f32 0.6931472, %v7981_v30  ;;  %v6588_v46 = vmul.f32 0.6931472, %v7983_v42  ;;  %v6604_v30 = vpop.eup %5416  ;;  %v265_v42 = vld [vmem:[#allocation2 + $0x6b8] sm:$0xff] }
 0x11c   :  { %7973 = vst [vmem:[#allocation165_spill] sm:$0xff] %v6571_v34  ;;  %v6591_v34 = vmul.f32 0.6931472, %v7985_v58  ;;  %5438 = vlog2.f32 %v265_v42  ;;  %v8046_v42 = vld [vmem:[#allocation101_spill] sm:$0xff] }
 0x11d   :  { %7975 = vst [vmem:[#allocation70_spill] sm:$0xff] %v6574_v18 }
 0x11e   :  { %7977 = vst [vmem:[#allocation71_spill] sm:$0xff] %v6577_v61  ;;  %v7988_v61 = vld [vmem:[#allocation76_spill] sm:$0xff] }
 0x11f   :  { %7979 = vst [vmem:[#allocation72_spill] sm:$0xff] %v6580_v22  ;;  %v6596_v6 = vmul.f32 0.6931472, %v7988_v61  ;;  %v6599_v22 = vmul.f32 0.6931472, %v7990_v50  ;;  %v6615_v61 = vpop.eup %5418  ;;  %v266_v50 = vld [vmem:[#allocation2 + $0x6c0] sm:$0xff] }
 0x120   :  { %7980 = vst [vmem:[#allocation166_spill] sm:$0xff] %v6582_v2  ;;  %v7992_v2 = vld [vmem:[#allocation78_spill] sm:$0xff]  ;;  %5440 = vlog2.f32 %v266_v50  ;;  %v8051_v50 = vld [vmem:[#allocation104_spill] sm:$0xff] }
 0x121   :  { %7982 = vst [vmem:[#allocation73_spill] sm:$0xff] %v6585_v10  ;;  %v6602_v18 = vmul.f32 0.6931472, %v7992_v2 }
 0x122   :  { %7984 = vst [vmem:[#allocation74_spill] sm:$0xff] %v6588_v46  ;;  %v7995_v46 = vld [vmem:[#allocation79_spill] sm:$0xff] }
 0x123   :  { %7986 = vst [vmem:[#allocation75_spill] sm:$0xff] %v6591_v34  ;;  %v6607_v58 = vmul.f32 0.6931472, %v7995_v46  ;;  %v6610_v34 = vmul.f32 0.6931472, %v7997_v38  ;;  %v6626_v46 = vpop.eup %5420  ;;  %v267_v38 = vld [vmem:[#allocation2 + $0x6c8] sm:$0xff] }
 0x124   :  { %7987 = vst [vmem:[#allocation167_spill] sm:$0xff] %v6593_v54  ;;  %v7999_v54 = vld [vmem:[#allocation81_spill] sm:$0xff]  ;;  %5442 = vlog2.f32 %v267_v38  ;;  %v8058_v38 = vld [vmem:[#allocation107_spill] sm:$0xff] }
 0x125   :  { %7989 = vst [vmem:[#allocation76_spill] sm:$0xff] %v6596_v6  ;;  %v6613_v10 = vmul.f32 0.6931472, %v7999_v54  ;;  %v6621_v6 = vmul.f32 0.6931472, %v8004_v63  ;;  %v268_v63 = vld [vmem:[#allocation2 + $0x6d0] sm:$0xff] }
 0x126   :  { %7991 = vst [vmem:[#allocation77_spill] sm:$0xff] %v6599_v22  ;;  %v8002_v22 = vld [vmem:[#allocation82_spill] sm:$0xff]  ;;  %5444 = vlog2.f32 %v268_v63  ;;  %v8063_v63 = vld [vmem:[#allocation109_spill] sm:$0xff] }
 0x127   :  { %7993 = vst [vmem:[#allocation78_spill] sm:$0xff] %v6602_v18  ;;  %v6618_v2 = vmul.f32 0.6931472, %v8002_v22  ;;  %v6637_v22 = vpop.eup %5422 }
 0x128   :  { %7994 = vst [vmem:[#allocation168_spill] sm:$0xff] %v6604_v30  ;;  %v8006_v30 = vld [vmem:[#allocation84_spill] sm:$0xff] }
 0x129   :  { %7996 = vst [vmem:[#allocation79_spill] sm:$0xff] %v6607_v58  ;;  %v6624_v18 = vmul.f32 0.6931472, %v8006_v30 }
 0x12a   :  { %7998 = vst [vmem:[#allocation80_spill] sm:$0xff] %v6610_v34  ;;  %v8009_v34 = vld [vmem:[#allocation85_spill] sm:$0xff] }
 0x12b   :  { %8000 = vst [vmem:[#allocation81_spill] sm:$0xff] %v6613_v10  ;;  %v6629_v54 = vmul.f32 0.6931472, %v8009_v34  ;;  %v6632_v10 = vmul.f32 0.6931472, %v8011_v20  ;;  %v6648_v34 = vpop.eup %5424  ;;  %v269_v20 = vld [vmem:[#allocation2 + $0x6d8] sm:$0xff] }
 0x12c   :  { %8001 = vst [vmem:[#allocation169_spill] sm:$0xff] %v6615_v61  ;;  %v8013_v61 = vld [vmem:[#allocation87_spill] sm:$0xff]  ;;  %5446 = vlog2.f32 %v269_v20  ;;  %v6731_v20 = vmul.f32 0.6931472, %v6146_v24  ;;  %v278_v24 = vld [vmem:[#allocation2 + $0x720] sm:$0xff] }
 0x12d   :  { %8003 = vst [vmem:[#allocation82_spill] sm:$0xff] %v6618_v2  ;;  %v6635_v58 = vmul.f32 0.6931472, %v8013_v61  ;;  %v8020_v2 = vld [vmem:[#allocation90_spill] sm:$0xff] }
 0x12e   :  { %8005 = vst [vmem:[#allocation83_spill] sm:$0xff] %v6621_v6  ;;  %v8016_v6 = vld [vmem:[#allocation88_spill] sm:$0xff] }
 0x12f   :  { %8007 = vst [vmem:[#allocation84_spill] sm:$0xff] %v6624_v18  ;;  %v6640_v30 = vmul.f32 0.6931472, %v8016_v6  ;;  %v6643_v18 = vmul.f32 0.6931472, %v8018_v59  ;;  %v6659_v6 = vpop.eup %5426  ;;  %v270_v59 = vld [vmem:[#allocation2 + $0x6e0] sm:$0xff] }
 0x130   :  { %8008 = vst [vmem:[#allocation170_spill] sm:$0xff] %v6626_v46  ;;  %v6646_v46 = vmul.f32 0.6931472, %v8020_v2  ;;  %5448 = vlog2.f32 %v270_v59  ;;  %v6742_v59 = vmul.f32 0.6931472, %v6170_v0 }
 0x131   :  { %8010 = vst [vmem:[#allocation85_spill] sm:$0xff] %v6629_v54  ;;  %v8023_v54 = vld [vmem:[#allocation91_spill] sm:$0xff]  ;;  %v6761_v0 = vmul.f32 0.6931472, %v6210_v16 }
 0x132   :  { %8012 = vst [vmem:[#allocation86_spill] sm:$0xff] %v6632_v10  ;;  %v6651_v61 = vmul.f32 0.6931472, %v8023_v54  ;;  %v6670_v54 = vpop.eup %5428 }
 0x133   :  { %8014 = vst [vmem:[#allocation87_spill] sm:$0xff] %v6635_v58  ;;  %v6654_v58 = vmul.f32 0.6931472, %v8025_v62  ;;  %v271_v62 = vld [vmem:[#allocation2 + $0x6e8] sm:$0xff] }
 0x134   :  { %8015 = vst [vmem:[#allocation171_spill] sm:$0xff] %v6637_v22  ;;  %v8027_v22 = vld [vmem:[#allocation93_spill] sm:$0xff]  ;;  %5450 = vlog2.f32 %v271_v62  ;;  %v6753_v62 = vmul.f32 0.6931472, %v6194_v52  ;;  %v6772_v52 = vmul.f32 0.6931472, %v6234_v13  ;;  %v4645_v13 = vadd.f32 %v6181_v19, %v6149_v32 }
 0x135   :  { %8017 = vst [vmem:[#allocation88_spill] sm:$0xff] %v6640_v30  ;;  %v6657_v10 = vmul.f32 0.6931472, %v8027_v22 }
 0x136   :  { %8019 = vst [vmem:[#allocation89_spill] sm:$0xff] %v6643_v18  ;;  %v8030_v18 = vld [vmem:[#allocation94_spill] sm:$0xff]  ;;  %v4646_v19 = vadd.f32 %v4645_v13, %v6213_v35  ;;  %v6829_v13 = vmul.f32 0.6931472, %v6306_v47  ;;  %v287_v47 = vld [vmem:[#allocation2 + $0x768] sm:$0xff] }
 0x137   :  { %8021 = vst [vmem:[#allocation90_spill] sm:$0xff] %v6646_v46  ;;  %v6662_v2 = vmul.f32 0.6931472, %v8030_v18  ;;  %v6665_v46 = vmul.f32 0.6931472, %v8032_v12  ;;  %v6681_v18 = vpop.eup %5430  ;;  %v272_v12 = vld [vmem:[#allocation2 + $0x6f0] sm:$0xff] }
 0x138   :  { %8022 = vst [vmem:[#allocation172_spill] sm:$0xff] %v6648_v34  ;;  %v8034_v34 = vld [vmem:[#allocation96_spill] sm:$0xff]  ;;  %5452 = vlog2.f32 %v272_v12  ;;  %v6767_v12 = vmul.f32 0.6931472, %v6226_v9  ;;  %v8073_v9 = vld [vmem:[#allocation111_spill] sm:$0xff]  ;;  %v4647_v35 = vadd.f32 %v4646_v19, %v6245_v51 }
 0x139   :  { %8024 = vst [vmem:[#allocation91_spill] sm:$0xff] %v6651_v61  ;;  %v6668_v30 = vmul.f32 0.6931472, %v8034_v34  ;;  %v8041_v61 = vld [vmem:[#allocation99_spill] sm:$0xff] }
 0x13a   :  { %8026 = vst [vmem:[#allocation92_spill] sm:$0xff] %v6654_v58  ;;  %v8037_v58 = vld [vmem:[#allocation97_spill] sm:$0xff]  ;;  %v4648_v51 = vadd.f32 %v4647_v35, %v6277_v3  ;;  %v8083_v35 = vld [vmem:[#allocation142_spill] sm:$0xff] }
 0x13b   :  { %8028 = vst [vmem:[#allocation93_spill] sm:$0xff] %v6657_v10  ;;  %v6673_v22 = vmul.f32 0.6931472, %v8037_v58  ;;  %v6676_v10 = vmul.f32 0.6931472, %v8039_v14  ;;  %v6692_v58 = vpop.eup %5432  ;;  %v273_v14 = vld [vmem:[#allocation2 + $0x6f8] sm:$0xff] }
 0x13c   :  { %8029 = vst [vmem:[#allocation173_spill] sm:$0xff] %v6659_v6  ;;  %v6679_v6 = vmul.f32 0.6931472, %v8041_v61  ;;  %5454 = vlog2.f32 %v273_v14  ;;  %v6778_v14 = vmul.f32 0.6931472, %v6250_v11  ;;  %v8079_v3 = vld [vmem:[#allocation133_spill] sm:$0xff] }
 0x13d   :  { %8031 = vst [vmem:[#allocation94_spill] sm:$0xff] %v6662_v2  ;;  %v6792_v11 = vmul.f32 0.6931472, %v6266_v29 }
 0x13e   :  { %8033 = vst [vmem:[#allocation95_spill] sm:$0xff] %v6665_v46  ;;  %v8044_v46 = vld [vmem:[#allocation100_spill] sm:$0xff] }
 0x13f   :  { %8035 = vst [vmem:[#allocation96_spill] sm:$0xff] %v6668_v30  ;;  %v6684_v34 = vmul.f32 0.6931472, %v8044_v46  ;;  %v6687_v30 = vmul.f32 0.6931472, %v8046_v42  ;;  %v6703_v46 = vpop.eup %5434  ;;  %v274_v42 = vld [vmem:[#allocation2 + $0x700] sm:$0xff] }
 0x140   :  { %8036 = vst [vmem:[#allocation174_spill] sm:$0xff] %v6670_v54  ;;  %v8048_v54 = vld [vmem:[#allocation102_spill] sm:$0xff]  ;;  %5456 = vlog2.f32 %v274_v42  ;;  %v4599_v42 = vadd.f32 %v6176_v17, %v8073_v9  ;;  %v6801_v17 = vmul.f32 0.6931472, %v6274_v31  ;;  %v6808_v9 = vmul.f32 0.6931472, %v6282_v27 }
 0x141   :  { %8038 = vst [vmem:[#allocation97_spill] sm:$0xff] %v6673_v22  ;;  %v6690_v2 = vmul.f32 0.6931472, %v8048_v54  ;;  %v283_v31 = vld [vmem:[#allocation2 + $0x748] sm:$0xff]  ;;  %v284_v27 = vld [vmem:[#allocation2 + $0x750] sm:$0xff] }
 0x142   :  { %8040 = vst [vmem:[#allocation98_spill] sm:$0xff] %v6676_v10  ;;  %v8050_v10 = vld [vmem:[#allocation103_spill] sm:$0xff]  ;;  %v4600_v32 = vadd.f32 %v4599_v42, %v6208_v33 }
 0x143   :  { %8042 = vst [vmem:[#allocation99_spill] sm:$0xff] %v6679_v6  ;;  %v6695_v61 = vmul.f32 0.6931472, %v8050_v10  ;;  %v6698_v6 = vmul.f32 0.6931472, %v8051_v50  ;;  %v6714_v10 = vpop.eup %5436  ;;  %v275_v50 = vld [vmem:[#allocation2 + $0x708] sm:$0xff] }
 0x144   :  { %8043 = vst [vmem:[#allocation175_spill] sm:$0xff] %v6681_v18  ;;  %v8053_v18 = vld [vmem:[#allocation105_spill] sm:$0xff]  ;;  %5458 = vlog2.f32 %v275_v50  ;;  %v8074_v50 = vld [vmem:[#allocation112_spill] sm:$0xff]  ;;  %v4601_v33 = vadd.f32 %v4600_v32, %v6240_v49  ;;  %v4649_v32 = vadd.f32 %v4648_v51, %v8079_v3 }
 0x145   :  { %8045 = vst [vmem:[#allocation100_spill] sm:$0xff] %v6684_v34  ;;  %v6701_v22 = vmul.f32 0.6931472, %v8053_v18  ;;  %v6709_v34 = vmul.f32 0.6931472, %v8058_v38  ;;  %v276_v38 = vld [vmem:[#allocation2 + $0x710] sm:$0xff] }
 0x146   :  { %8047 = vst [vmem:[#allocation101_spill] sm:$0xff] %v6687_v30  ;;  %v8056_v30 = vld [vmem:[#allocation106_spill] sm:$0xff]  ;;  %5460 = vlog2.f32 %v276_v38  ;;  %v4602_v49 = vadd.f32 %v4601_v33, %v6272_v1  ;;  %v290_v3 = vld [vmem:[#allocation2 + $0x780] sm:$0xff] }
 0x147   :  { %8049 = vst [vmem:[#allocation102_spill] sm:$0xff] %v6692_v58  ;;  %v6706_v54 = vmul.f32 0.6931472, %v8056_v30  ;;  %v6712_v58 = vmul.f32 0.6931472, %v6133_v44  ;;  %v6725_v30 = vpop.eup %5438 }
 0x148   :  { %8052 = vst [vmem:[#allocation103_spill] sm:$0xff] %v6698_v6  ;;  %v8061_v6 = vld [vmem:[#allocation108_spill] sm:$0xff]  ;;  %v4603_v1 = vadd.f32 %v4602_v49, %v6304_v26  ;;  %v8084_v26 = vld [vmem:[#allocation141_spill] sm:$0xff] }
 0x149   :  { %8054 = vst [vmem:[#allocation104_spill] sm:$0xff] %v6701_v22  ;;  %v6717_v18 = vmul.f32 0.6931472, %v8061_v6  ;;  %v6720_v22 = vmul.f32 0.6931472, %v8063_v63  ;;  %v6736_v6 = vpop.eup %5440  ;;  %v277_v63 = vld [vmem:[#allocation2 + $0x718] sm:$0xff] }
 0x14a   :  { %8055 = vst [vmem:[#allocation105_spill] sm:$0xff] %v6703_v46  ;;  %v6723_v46 = vmul.f32 0.6931472, %v6139_v4  ;;  %v6739_v4 = vmul.f32 0.6931472, %v6162_v56  ;;  %5462 = vlog2.f32 %v277_v63  ;;  %v282_v63 = vld [vmem:[#allocation2 + $0x740] sm:$0xff] }
 0x14b   :  { %8057 = vst [vmem:[#allocation106_spill] sm:$0xff] %v6706_v54  ;;  %5464 = vlog2.f32 %v278_v24  ;;  %v6815_v24 = vmul.f32 0.6931472, %v6290_v41  ;;  %v285_v41 = vld [vmem:[#allocation2 + $0x758] sm:$0xff]  ;;  %v8111_v54 = vld [vmem:[#allocation150_spill] sm:$0xff] }
 0x14c   :  { %8059 = vst [vmem:[#allocation107_spill] sm:$0xff] %v6709_v34  ;;  %v8064_v34 = vld [vmem:[#allocation110_spill] sm:$0xff] }
 0x14d   :  { %8060 = vst [vmem:[#allocation176_spill] sm:$0xff] %v6712_v58  ;;  %v6728_v44 = vmul.f32 0.6931472, %v8064_v34  ;;  %v6734_v58 = vmul.f32 0.6931472, %v6154_v40  ;;  %v6747_v34 = vpop.eup %5442 }
 0x14e   :  { %8062 = vst [vmem:[#allocation108_spill] sm:$0xff] %v6717_v18  ;;  %v6745_v18 = vmul.f32 0.6931472, %v6178_v28  ;;  %v6750_v40 = vmul.f32 0.6931472, %v6186_v36  ;;  %v6758_v56 = vpop.eup %5444 }
 0x14f   :  { %8065 = vst [vmem:[#allocation109_spill] sm:$0xff] %v6734_v58  ;;  %v6756_v58 = vmul.f32 0.6931472, %v6202_v48  ;;  %v6764_v28 = vmul.f32 0.6931472, %v6218_v60  ;;  %v6769_v36 = vpop.eup %5446  ;;  %v279_v60 = vld [vmem:[#allocation2 + $0x728] sm:$0xff] }
 0x150   :  { %8066 = vst [vmem:[#allocation110_spill] sm:$0xff] %v6739_v4  ;;  %v6775_v48 = vmul.f32 0.6931472, %v6242_v15  ;;  %v6780_v16 = vpop.eup %5448  ;;  %v280_v15 = vld [vmem:[#allocation2 + $0x730] sm:$0xff]  ;;  %5466 = vlog2.f32 %v279_v60  ;;  %v6822_v60 = vmul.f32 0.6931472, %v6298_v45 }
 0x151   :  { %8067 = vst [vmem:[#allocation177_spill] sm:$0xff] %v6742_v59  ;;  %v281_v59 = vld [vmem:[#allocation2 + $0x738] sm:$0xff]  ;;  %5468 = vlog2.f32 %v280_v15  ;;  %v286_v45 = vld [vmem:[#allocation2 + $0x760] sm:$0xff] }
 0x152   :  { %8068 = vst [vmem:[#allocation178_spill] sm:$0xff] %v6745_v18  ;;  %v6783_v18 = vmul.f32 0.6931472, %v6258_v25  ;;  %v4737_v25 = vadd.f32 %v6189_v23, %v6157_v8  ;;  %5470 = vlog2.f32 %v281_v59  ;;  %v6836_v59 = vmul.f32 0.6931472, %v6314_v43  ;;  %v288_v43 = vld [vmem:[#allocation2 + $0x770] sm:$0xff] }
 0x153   :  { %8069 = vst [vmem:[#allocation179_spill] sm:$0xff] %v6764_v28  ;;  %5472 = vlog2.f32 %v282_v63  ;;  %v8080_v63 = vld [vmem:[#allocation139_spill] sm:$0xff] }
 0x154   :  { %8070 = vst [vmem:[#allocation180_spill] sm:$0xff] %v6767_v12  ;;  %5474 = vlog2.f32 %v283_v31 }
 0x155   :  { %8071 = vst [vmem:[#allocation181_spill] sm:$0xff] %v6772_v52  ;;  %v6789_v52 = vpop.eup %5450  ;;  %5476 = vlog2.f32 %v284_v27  ;;  %v6857_v27 = vmul.f32 0.6931472, %v8083_v35  ;;  %v291_v35 = vld [vmem:[#allocation2 + $0x788] sm:$0xff] }
 0x156   :  { %8072 = vst [vmem:[#allocation182_spill] sm:$0xff] %v6775_v48  ;;  %v4691_v48 = vadd.f32 %v6184_v21, %v8074_v50  ;;  %v6798_v38 = vpop.eup %5452  ;;  %v4738_v21 = vadd.f32 %v4737_v25, %v6221_v39  ;;  %v6843_v25 = vmul.f32 0.6931472, %v6322_v57  ;;  %5478 = vlog2.f32 %v285_v41  ;;  %v289_v57 = vld [vmem:[#allocation2 + $0x778] sm:$0xff] }
 0x157   :  { %v6805_v29 = vpop.eup %5454  ;;  %8075 = vst [vmem:[#allocation111_spill] sm:$0xff] %v6808_v9  ;;  %5480 = vlog2.f32 %v286_v45 }
 0x158   :  { %v4692_v8 = vadd.f32 %v4691_v48, %v6216_v37  ;;  %v6812_v23 = vpop.eup %5456  ;;  %8076 = vst [vmem:[#allocation112_spill] sm:$0xff] %v6815_v24  ;;  %v4739_v39 = vadd.f32 %v4738_v21, %v6253_v55  ;;  %v8082_v21 = vld [vmem:[#allocation135_spill] sm:$0xff]  ;;  %5482 = vlog2.f32 %v287_v47 }
 0x159   :  { %v6819_v42 = vpop.eup %5458  ;;  %8077 = vst [vmem:[#allocation183_spill] sm:$0xff] %v6822_v60  ;;  %v8090_v60 = vld [vmem:[#allocation145_spill] sm:$0xff]  ;;  %5484 = vlog2.f32 %v288_v43 }
 0x15a   :  { %v4693_v37 = vadd.f32 %v4692_v8, %v6248_v53  ;;  %v6826_v48 = vpop.eup %5460  ;;  %8078 = vst [vmem:[#allocation184_spill] sm:$0xff] %v6829_v13  ;;  %v4740_v55 = vadd.f32 %v4739_v39, %v6285_v7  ;;  %v6850_v8 = vmul.f32 0.6931472, %v8080_v63  ;;  %v8085_v39 = vld [vmem:[#allocation143_spill] sm:$0xff]  ;;  %v8086_v63 = vld [vmem:[#allocation144_spill] sm:$0xff]  ;;  %5486 = vlog2.f32 %v289_v57 }
 0x15b   :  { %v6833_v15 = vpop.eup %5462  ;;  %v4650_v49 = vadd.f32 %v4649_v32, %v8085_v39  ;;  %v6864_v41 = vmul.f32 0.6931472, %v8086_v63  ;;  %v6871_v45 = vmul.f32 0.6931472, %v8090_v60  ;;  %v292_v63 = vld [vmem:[#allocation2 + $0x790] sm:$0xff]  ;;  %v293_v60 = vld [vmem:[#allocation2 + $0x798] sm:$0xff]  ;;  %5488 = vlog2.f32 %v290_v3 }
 0x15c   :  { %v4694_v53 = vadd.f32 %v4693_v37, %v6280_v5  ;;  %v6840_v50 = vpop.eup %5464  ;;  %v8081_v5 = vld [vmem:[#allocation134_spill] sm:$0xff]  ;;  %v4741_v31 = vadd.f32 %v4740_v55, %v8082_v21  ;;  %v4604_v37 = vadd.f32 %v4603_v1, %v8084_v26  ;;  %v8093_v26 = vld [vmem:[#allocation15_spill] sm:$0xff]  ;;  %5490 = vlog2.f32 %v291_v35 }
 0x15d   :  { %v6847_v19 = vpop.eup %5466  ;;  %8087 = vst [vmem:[#allocation133_spill] sm:$0xff] %v6864_v41  ;;  %v8092_v1 = vld [vmem:[#allocation14_spill] sm:$0xff]  ;;  %v4651_v39 = vadd.f32 %v4650_v49, %v8093_v26  ;;  %5492 = vlog2.f32 %v292_v63  ;;  %v6906_v35 = vmul.f32 0.6931472, %v8111_v54  ;;  %v298_v54 = vld [vmem:[#allocation2 + $0x7c0] sm:$0xff] }
 0x15e   :  { %v4695_v7 = vadd.f32 %v4694_v53, %v8081_v5  ;;  %v6854_v33 = vpop.eup %5468  ;;  %v8088_v53 = vld [vmem:[#allocation8_spill] sm:$0xff]  ;;  %v8089_v5 = vld [vmem:[#allocation9_spill] sm:$0xff]  ;;  %8091 = vst [vmem:[#allocation139_spill] sm:$0xff] %v6871_v45  ;;  %v4605_v32 = vadd.f32 %v4604_v37, %v8092_v1  ;;  %v8094_v41 = vld [vmem:[#allocation146_spill] sm:$0xff]  ;;  %5494 = vlog2.f32 %v293_v60 }
 0x15f   :  { %v6861_v51 = vpop.eup %5470  ;;  %v4742_v21 = vadd.f32 %v4741_v31, %v8089_v5  ;;  %v6878_v47 = vmul.f32 0.6931472, %v8094_v41  ;;  %v8098_v45 = vld [vmem:[#allocation147_spill] sm:$0xff]  ;;  %v8100_v37 = vld [vmem:[#allocation22_spill] sm:$0xff]  ;;  %v294_v41 = vld [vmem:[#allocation2 + $0x7a0] sm:$0xff]  ;;  %8112 = vst [vmem:[#allocation144_spill] sm:$0xff] %v6906_v35 }
 0x160   :  { %v4696_v55 = vadd.f32 %v4695_v7, %v8088_v53  ;;  %v6868_v13 = vpop.eup %5472  ;;  %v8096_v7 = vld [vmem:[#allocation16_spill] sm:$0xff]  ;;  %v8097_v53 = vld [vmem:[#allocation17_spill] sm:$0xff]  ;;  %v6885_v43 = vmul.f32 0.6931472, %v8098_v45  ;;  %v4606_v49 = vadd.f32 %v4605_v32, %v8100_v37  ;;  %v8101_v1 = vld [vmem:[#allocation23_spill] sm:$0xff]  ;;  %5496 = vlog2.f32 %v294_v41 }
 0x161   :  { %v6875_v24 = vpop.eup %5474  ;;  %8095 = vst [vmem:[#allocation134_spill] sm:$0xff] %v6878_v47  ;;  %v4743_v5 = vadd.f32 %v4742_v21, %v8097_v53  ;;  %v4652_v26 = vadd.f32 %v4651_v39, %v8101_v1  ;;  %v8103_v47 = vld [vmem:[#allocation148_spill] sm:$0xff]  ;;  %v295_v45 = vld [vmem:[#allocation2 + $0x7a8] sm:$0xff]  ;;  %v8108_v32 = vld [vmem:[#allocation30_spill] sm:$0xff] }
 0x162   :  { %v4697_v31 = vadd.f32 %v4696_v55, %v8096_v7  ;;  %v6882_v9 = vpop.eup %5476  ;;  %8099 = vst [vmem:[#allocation135_spill] sm:$0xff] %v6885_v43  ;;  %v6892_v57 = vmul.f32 0.6931472, %v8103_v47  ;;  %v8104_v55 = vld [vmem:[#allocation24_spill] sm:$0xff]  ;;  %v8105_v7 = vld [vmem:[#allocation25_spill] sm:$0xff]  ;;  %v4607_v39 = vadd.f32 %v4606_v49, %v8108_v32  ;;  %v8109_v37 = vld [vmem:[#allocation31_spill] sm:$0xff]  ;;  %5498 = vlog2.f32 %v295_v45 }
 0x163   :  { %v6889_v12 = vpop.eup %5478  ;;  %v4744_v53 = vadd.f32 %v4743_v5, %v8105_v7  ;;  %v8107_v43 = vld [vmem:[#allocation149_spill] sm:$0xff]  ;;  %v4653_v1 = vadd.f32 %v4652_v26, %v8109_v37  ;;  %v296_v47 = vld [vmem:[#allocation2 + $0x7b0] sm:$0xff]  ;;  %v8119_v32 = vld [vmem:[#allocation39_spill] sm:$0xff] }
 0x164   :  { %8102 = vst [vmem:[#allocation142_spill] sm:$0xff] %v6889_v12  ;;  %v4698_v21 = vadd.f32 %v4697_v31, %v8104_v55  ;;  %v6896_v28 = vpop.eup %5480  ;;  %v6899_v3 = vmul.f32 0.6931472, %v8107_v43  ;;  %v8113_v31 = vld [vmem:[#allocation32_spill] sm:$0xff]  ;;  %v8114_v55 = vld [vmem:[#allocation33_spill] sm:$0xff]  ;;  %v297_v43 = vld [vmem:[#allocation2 + $0x7b8] sm:$0xff]  ;;  %5500 = vlog2.f32 %v296_v47 }
 0x165   :  { %8106 = vst [vmem:[#allocation141_spill] sm:$0xff] %v6896_v28  ;;  %v6903_v4 = vpop.eup %5482  ;;  %v4745_v7 = vadd.f32 %v4744_v53, %v8114_v55  ;;  %v8116_v12 = vld [vmem:[#allocation151_spill] sm:$0xff]  ;;  %v8118_v49 = vld [vmem:[#allocation38_spill] sm:$0xff]  ;;  %v4654_v37 = vadd.f32 %v4653_v1, %v8119_v32  ;;  %v8121_v35 = vld [vmem:[#allocation152_spill] sm:$0xff]  ;;  %5502 = vlog2.f32 %v297_v43 }
 0x166   :  { %8110 = vst [vmem:[#allocation143_spill] sm:$0xff] %v6903_v4  ;;  %v4699_v5 = vadd.f32 %v4698_v21, %v8113_v31  ;;  %v6910_v28 = vpop.eup %5484  ;;  %v6913_v63 = vmul.f32 0.6931472, %v8116_v12  ;;  %v4608_v26 = vadd.f32 %v4607_v39, %v8118_v49  ;;  %v6920_v60 = vmul.f32 0.6931472, %v8121_v35  ;;  %v8123_v21 = vld [vmem:[#allocation40_spill] sm:$0xff] }
 0x167   :  { %8115 = vst [vmem:[#allocation8_spill] sm:$0xff] %v6910_v28  ;;  %v6917_v4 = vpop.eup %5486  ;;  %v8124_v31 = vld [vmem:[#allocation41_spill] sm:$0xff]  ;;  %v8128_v39 = vld [vmem:[#allocation46_spill] sm:$0xff]  ;;  %v8129_v49 = vld [vmem:[#allocation47_spill] sm:$0xff]  ;;  %5504 = vlog2.f32 %v298_v54 }
 0x168   :  { %8117 = vst [vmem:[#allocation9_spill] sm:$0xff] %v6913_v63  ;;  %v4700_v53 = vadd.f32 %v4699_v5, %v8123_v21  ;;  %v4746_v55 = vadd.f32 %v4745_v7, %v8124_v31  ;;  %v6924_v28 = vpop.eup %5488  ;;  %v299_v12 = vld [vmem:[#allocation2 + $0x7c8] sm:$0xff]  ;;  %v4609_v1 = vadd.f32 %v4608_v26, %v8128_v39  ;;  %v4655_v32 = vadd.f32 %v4654_v37, %v8129_v49  ;;  %v300_v35 = vld [vmem:[#allocation2 + $0x7d0] sm:$0xff]  ;;  %v8133_v5 = vld [vmem:[#allocation48_spill] sm:$0xff] }
 0x169   :  { %8120 = vst [vmem:[#allocation145_spill] sm:$0xff] %v6917_v4  ;;  %v8126_v63 = vld [vmem:[#allocation153_spill] sm:$0xff]  ;;  %v6931_v4 = vpop.eup %5490  ;;  %v8138_v26 = vld [vmem:[#allocation54_spill] sm:$0xff]  ;;  %v8139_v39 = vld [vmem:[#allocation55_spill] sm:$0xff]  ;;  %5506 = vlog2.f32 %v299_v12 }
 0x16a   :  { %8122 = vst [vmem:[#allocation14_spill] sm:$0xff] %v6920_v60  ;;  %v6927_v41 = vmul.f32 0.6931472, %v8126_v63  ;;  %v8131_v60 = vld [vmem:[#allocation154_spill] sm:$0xff]  ;;  %v4701_v7 = vadd.f32 %v4700_v53, %v8133_v5  ;;  %v8134_v21 = vld [vmem:[#allocation49_spill] sm:$0xff]  ;;  %v301_v63 = vld [vmem:[#allocation2 + $0x7d8] sm:$0xff]  ;;  %v4610_v37 = vadd.f32 %v4609_v1, %v8138_v26  ;;  %v4656_v49 = vadd.f32 %v4655_v32, %v8139_v39 }
 0x16b   :  { %8125 = vst [vmem:[#allocation15_spill] sm:$0xff] %v6924_v28  ;;  %v6934_v45 = vmul.f32 0.6931472, %v8131_v60  ;;  %v4747_v31 = vadd.f32 %v4746_v55, %v8134_v21  ;;  %v6938_v28 = vpop.eup %5492  ;;  %v302_v60 = vld [vmem:[#allocation2 + $0x7e0] sm:$0xff]  ;;  %v8144_v5 = vld [vmem:[#allocation57_spill] sm:$0xff]  ;;  %5508 = vlog2.f32 %v300_v35  ;;  %v8148_v1 = vld [vmem:[#allocation62_spill] sm:$0xff] }
 0x16c   :  { %8127 = vst [vmem:[#allocation146_spill] sm:$0xff] %v6927_v41  ;;  %v8136_v41 = vld [vmem:[#allocation155_spill] sm:$0xff]  ;;  %v8143_v53 = vld [vmem:[#allocation56_spill] sm:$0xff]  ;;  %v4611_v32 = vadd.f32 %v4610_v37, %v8148_v1  ;;  %5510 = vlog2.f32 %v301_v63  ;;  %v8158_v37 = vld [vmem:[#allocation70_spill] sm:$0xff] }
 0x16d   :  { %8130 = vst [vmem:[#allocation16_spill] sm:$0xff] %v6931_v4  ;;  %v6941_v47 = vmul.f32 0.6931472, %v8136_v41  ;;  %v6945_v4 = vpop.eup %5494  ;;  %v4702_v55 = vadd.f32 %v4701_v7, %v8143_v53  ;;  %v4748_v21 = vadd.f32 %v4747_v31, %v8144_v5  ;;  %v303_v41 = vld [vmem:[#allocation2 + $0x7e8] sm:$0xff]  ;;  %v8149_v26 = vld [vmem:[#allocation63_spill] sm:$0xff]  ;;  %v8153_v7 = vld [vmem:[#allocation64_spill] sm:$0xff]  ;;  %5512 = vlog2.f32 %v302_v60 }
 0x16e   :  { %8132 = vst [vmem:[#allocation17_spill] sm:$0xff] %v6934_v45  ;;  %v8141_v45 = vld [vmem:[#allocation156_spill] sm:$0xff]  ;;  %v4657_v39 = vadd.f32 %v4656_v49, %v8149_v26  ;;  %v8154_v53 = vld [vmem:[#allocation65_spill] sm:$0xff]  ;;  %v4612_v49 = vadd.f32 %v4611_v32, %v8158_v37  ;;  %v8159_v1 = vld [vmem:[#allocation71_spill] sm:$0xff]  ;;  %5514 = vlog2.f32 %v303_v41 }
 0x16f   :  { %8135 = vst [vmem:[#allocation147_spill] sm:$0xff] %v6938_v28  ;;  %v6948_v43 = vmul.f32 0.6931472, %v8141_v45  ;;  %v6952_v28 = vpop.eup %5496  ;;  %v304_v45 = vld [vmem:[#allocation2 + $0x7f0] sm:$0xff]  ;;  %v4703_v31 = vadd.f32 %v4702_v55, %v8153_v7  ;;  %v4749_v5 = vadd.f32 %v4748_v21, %v8154_v53  ;;  %v8163_v55 = vld [vmem:[#allocation72_spill] sm:$0xff]  ;;  %v8164_v7 = vld [vmem:[#allocation73_spill] sm:$0xff] }
 0x170   :  { %8137 = vst [vmem:[#allocation22_spill] sm:$0xff] %v6941_v47  ;;  %v8146_v47 = vld [vmem:[#allocation157_spill] sm:$0xff]  ;;  %v4658_v26 = vadd.f32 %v4657_v39, %v8159_v1  ;;  %5516 = vlog2.f32 %v304_v45  ;;  %v8168_v32 = vld [vmem:[#allocation78_spill] sm:$0xff]  ;;  %v8169_v37 = vld [vmem:[#allocation79_spill] sm:$0xff] }
 0x171   :  { %8140 = vst [vmem:[#allocation23_spill] sm:$0xff] %v6945_v4  ;;  %v6955_v54 = vmul.f32 0.6931472, %v8146_v47  ;;  %v6959_v4 = vpop.eup %5498  ;;  %v305_v47 = vld [vmem:[#allocation2 + $0x7f8] sm:$0xff]  ;;  %v4704_v21 = vadd.f32 %v4703_v31, %v8163_v55  ;;  %v4750_v53 = vadd.f32 %v4749_v5, %v8164_v7  ;;  %v4613_v39 = vadd.f32 %v4612_v49, %v8168_v32  ;;  %v8173_v31 = vld [vmem:[#allocation80_spill] sm:$0xff]  ;;  %v8174_v55 = vld [vmem:[#allocation81_spill] sm:$0xff] }
 0x172   :  { %8142 = vst [vmem:[#allocation148_spill] sm:$0xff] %v6948_v43  ;;  %v8151_v43 = vld [vmem:[#allocation158_spill] sm:$0xff]  ;;  %v4659_v1 = vadd.f32 %v4658_v26, %v8169_v37  ;;  %5518 = vlog2.f32 %v305_v47  ;;  %v8179_v32 = vld [vmem:[#allocation87_spill] sm:$0xff] }
 0x173   :  { %8145 = vst [vmem:[#allocation24_spill] sm:$0xff] %v6952_v28  ;;  %v6962_v12 = vmul.f32 0.6931472, %v8151_v43  ;;  %v6966_v28 = vpop.eup %5500  ;;  %v306_v43 = vld [vmem:[#allocation2 + $0x800] sm:$0xff]  ;;  %v4705_v5 = vadd.f32 %v4704_v21, %v8173_v31  ;;  %v4751_v7 = vadd.f32 %v4750_v53, %v8174_v55  ;;  %v8178_v49 = vld [vmem:[#allocation86_spill] sm:$0xff]  ;;  %v8184_v31 = vld [vmem:[#allocation89_spill] sm:$0xff] }
 0x174   :  { %8147 = vst [vmem:[#allocation25_spill] sm:$0xff] %v6955_v54  ;;  %v8156_v54 = vld [vmem:[#allocation159_spill] sm:$0xff]  ;;  %5520 = vlog2.f32 %v306_v43  ;;  %v4614_v26 = vadd.f32 %v4613_v39, %v8178_v49  ;;  %v4660_v37 = vadd.f32 %v4659_v1, %v8179_v32  ;;  %v8183_v21 = vld [vmem:[#allocation88_spill] sm:$0xff]  ;;  %v8188_v39 = vld [vmem:[#allocation94_spill] sm:$0xff] }
 0x175   :  { %8150 = vst [vmem:[#allocation149_spill] sm:$0xff] %v6959_v4  ;;  %v6969_v35 = vmul.f32 0.6931472, %v8156_v54  ;;  %v6973_v4 = vpop.eup %5502  ;;  %v307_v54 = vld [vmem:[#allocation2 + $0x808] sm:$0xff]  ;;  %v4706_v53 = vadd.f32 %v4705_v5, %v8183_v21  ;;  %v4752_v55 = vadd.f32 %v4751_v7, %v8184_v31  ;;  %v8189_v49 = vld [vmem:[#allocation95_spill] sm:$0xff]  ;;  %v8191_v5 = vld [vmem:[#allocation96_spill] sm:$0xff] }
 0x176   :  { %8152 = vst [vmem:[#allocation30_spill] sm:$0xff] %v6962_v12  ;;  %v8161_v12 = vld [vmem:[#allocation160_spill] sm:$0xff]  ;;  %5522 = vlog2.f32 %v307_v54  ;;  %v4615_v1 = vadd.f32 %v4614_v26, %v8188_v39  ;;  %v4661_v32 = vadd.f32 %v4660_v37, %v8189_v49  ;;  %v8192_v21 = vld [vmem:[#allocation97_spill] sm:$0xff] }
 0x177   :  { %8155 = vst [vmem:[#allocation31_spill] sm:$0xff] %v6966_v28  ;;  %v6976_v63 = vmul.f32 0.6931472, %v8161_v12  ;;  %v6980_v28 = vpop.eup %5504  ;;  %v308_v12 = vld [vmem:[#allocation2 + $0x810] sm:$0xff]  ;;  %v4707_v7 = vadd.f32 %v4706_v53, %v8191_v5  ;;  %v4753_v31 = vadd.f32 %v4752_v55, %v8192_v21  ;;  %v8196_v49 = vld [vmem:[#allocation168_spill] sm:$0xff]  ;;  %v8198_v53 = vld [vmem:[#allocation103_spill] sm:$0xff] }
 0x178   :  { %8157 = vst [vmem:[#allocation150_spill] sm:$0xff] %v6969_v35  ;;  %v8166_v35 = vld [vmem:[#allocation161_spill] sm:$0xff]  ;;  %5524 = vlog2.f32 %v308_v12  ;;  %v4616_v26 = vadd.f32 %v4615_v1, %v6690_v2  ;;  %v4662_v37 = vadd.f32 %v4661_v32, %v6695_v61  ;;  %v8199_v5 = vld [vmem:[#allocation104_spill] sm:$0xff]  ;;  %v316_v32 = vld [vmem:[#allocation2 + $0x850] sm:$0xff] }
 0x179   :  { %8160 = vst [vmem:[#allocation32_spill] sm:$0xff] %v6973_v4  ;;  %v6983_v60 = vmul.f32 0.6931472, %v8166_v35  ;;  %v6987_v4 = vpop.eup %5506  ;;  %v309_v35 = vld [vmem:[#allocation2 + $0x818] sm:$0xff]  ;;  %v4708_v55 = vadd.f32 %v4707_v7, %v8198_v53  ;;  %v4754_v21 = vadd.f32 %v4753_v31, %v8199_v5 }
 0x17a   :  { %8162 = vst [vmem:[#allocation33_spill] sm:$0xff] %v6976_v63  ;;  %v8171_v63 = vld [vmem:[#allocation162_spill] sm:$0xff]  ;;  %5526 = vlog2.f32 %v309_v35  ;;  %v7032_v35 = vmul.f32 0.6931472, %v8196_v49  ;;  %v4617_v2 = vadd.f32 %v4616_v26, %v6720_v22  ;;  %v4663_v61 = vadd.f32 %v4662_v37, %v6723_v46  ;;  %v8204_v7 = vld [vmem:[#allocation171_spill] sm:$0xff]  ;;  %v318_v37 = vld [vmem:[#allocation2 + $0x860] sm:$0xff] }
 0x17b   :  { %8165 = vst [vmem:[#allocation151_spill] sm:$0xff] %v6980_v28  ;;  %v6990_v41 = vmul.f32 0.6931472, %v8171_v63  ;;  %v6994_v28 = vpop.eup %5508  ;;  %v310_v63 = vld [vmem:[#allocation2 + $0x820] sm:$0xff]  ;;  %v8202_v49 = vld [vmem:[#allocation170_spill] sm:$0xff]  ;;  %v4709_v31 = vadd.f32 %v4708_v55, %v6728_v44  ;;  %v4755_v46 = vadd.f32 %v4754_v21, %v6731_v20 }
 0x17c   :  { %8167 = vst [vmem:[#allocation38_spill] sm:$0xff] %v6983_v60  ;;  %v8176_v60 = vld [vmem:[#allocation163_spill] sm:$0xff]  ;;  %5528 = vlog2.f32 %v310_v63  ;;  %v7049_v53 = vmul.f32 0.6931472, %v8204_v7  ;;  %v4618_v22 = vadd.f32 %v4617_v2, %v6750_v40  ;;  %v4664_v44 = vadd.f32 %v4663_v61, %v6753_v62 }
 0x17d   :  { %8170 = vst [vmem:[#allocation39_spill] sm:$0xff] %v6987_v4  ;;  %v6997_v45 = vmul.f32 0.6931472, %v8176_v60  ;;  %v7001_v4 = vpop.eup %5510  ;;  %v311_v60 = vld [vmem:[#allocation2 + $0x828] sm:$0xff]  ;;  %v4710_v21 = vadd.f32 %v4709_v31, %v6756_v58  ;;  %v7084_v62 = vmul.f32 0.6931472, %v6714_v10 }
 0x17e   :  { %8172 = vst [vmem:[#allocation152_spill] sm:$0xff] %v6990_v41  ;;  %v8181_v41 = vld [vmem:[#allocation164_spill] sm:$0xff]  ;;  %5530 = vlog2.f32 %v311_v60  ;;  %v7046_v60 = vmul.f32 0.6931472, %v8202_v49  ;;  %v8207_v49 = vld [vmem:[#allocation173_spill] sm:$0xff]  ;;  %v4619_v20 = vadd.f32 %v4618_v22, %v6778_v14  ;;  %v4756_v14 = vadd.f32 %v4755_v46, %v6761_v0 }
 0x17f   :  { %8175 = vst [vmem:[#allocation40_spill] sm:$0xff] %v6994_v28  ;;  %v7004_v47 = vmul.f32 0.6931472, %v8181_v41  ;;  %v7008_v28 = vpop.eup %5512  ;;  %v312_v41 = vld [vmem:[#allocation2 + $0x830] sm:$0xff]  ;;  %v7062_v7 = vmul.f32 0.6931472, %v8207_v49  ;;  %v4711_v46 = vadd.f32 %v4710_v21, %v6792_v11 }
 0x180   :  { %8177 = vst [vmem:[#allocation41_spill] sm:$0xff] %v6997_v45  ;;  %v8186_v45 = vld [vmem:[#allocation165_spill] sm:$0xff]  ;;  %5532 = vlog2.f32 %v312_v41  ;;  %v8206_v41 = vld [vmem:[#allocation172_spill] sm:$0xff]  ;;  %v8210_v49 = vld [vmem:[#allocation102_spill] sm:$0xff]  ;;  %v7092_v58 = vmul.f32 0.6931472, %v6736_v6  ;;  %v4620_v0 = vadd.f32 %v4619_v20, %v6836_v59 }
 0x181   :  { %8180 = vst [vmem:[#allocation153_spill] sm:$0xff] %v7001_v4  ;;  %v7011_v43 = vmul.f32 0.6931472, %v8186_v45  ;;  %v7015_v4 = vpop.eup %5514  ;;  %v313_v45 = vld [vmem:[#allocation2 + $0x838] sm:$0xff]  ;;  %v322_v22 = vld [vmem:[#allocation2 + $0x880] sm:$0xff]  ;;  %v324_v6 = vld [vmem:[#allocation2 + $0x890] sm:$0xff] }
 0x182   :  { %8182 = vst [vmem:[#allocation46_spill] sm:$0xff] %v7004_v47  ;;  %v8190_v47 = vld [vmem:[#allocation166_spill] sm:$0xff]  ;;  %5534 = vlog2.f32 %v313_v45  ;;  %v7101_v10 = vmul.f32 0.6931472, %v6758_v56  ;;  %v7114_v56 = vmul.f32 0.6931472, %v6780_v16  ;;  %v4757_v16 = vadd.f32 %v4756_v14, %v6801_v17 }
 0x183   :  { %8185 = vst [vmem:[#allocation47_spill] sm:$0xff] %v7008_v28  ;;  %v7018_v54 = vmul.f32 0.6931472, %v8190_v47  ;;  %v7022_v28 = vpop.eup %5516  ;;  %v314_v47 = vld [vmem:[#allocation2 + $0x840] sm:$0xff]  ;;  %v8208_v45 = vld [vmem:[#allocation174_spill] sm:$0xff]  ;;  %v4621_v17 = vadd.f32 %v4620_v0, %v6892_v57  ;;  %v4712_v14 = vadd.f32 %v4711_v46, %v6850_v8 }
 0x184   :  { %8187 = vst [vmem:[#allocation154_spill] sm:$0xff] %v7011_v43  ;;  %v8194_v43 = vld [vmem:[#allocation167_spill] sm:$0xff]  ;;  %v7029_v39 = vpop.eup %5518  ;;  %5536 = vlog2.f32 %v314_v47  ;;  %v320_v47 = vld [vmem:[#allocation2 + $0x870] sm:$0xff]  ;;  %v7128_v11 = vmul.f32 0.6931472, %v6812_v23 }
 0x185   :  { %8193 = vst [vmem:[#allocation48_spill] sm:$0xff] %v7022_v28  ;;  %v7025_v12 = vmul.f32 0.6931472, %v8194_v43  ;;  %v7036_v28 = vpop.eup %5520  ;;  %v315_v43 = vld [vmem:[#allocation2 + $0x848] sm:$0xff]  ;;  %v7134_v20 = vmul.f32 0.6931472, %v6819_v42 }
 0x186   :  { %8197 = vst [vmem:[#allocation155_spill] sm:$0xff] %v7032_v35  ;;  %v7043_v1 = vpop.eup %5522  ;;  %5538 = vlog2.f32 %v315_v43  ;;  %v8212_v43 = vld [vmem:[#allocation105_spill] sm:$0xff]  ;;  %v328_v23 = vld [vmem:[#allocation2 + $0x8b0] sm:$0xff]  ;;  %v7164_v8 = vmul.f32 0.6931472, %v6868_v13 }
 0x187   :  { %8195 = vst [vmem:[#allocation49_spill] sm:$0xff] %v7025_v12  ;;  %v8200_v12 = vld [vmem:[#allocation169_spill] sm:$0xff]  ;;  %v7052_v5 = vpop.eup %5524  ;;  %5540 = vlog2.f32 %v316_v32  ;;  %v7081_v35 = vmul.f32 0.6931472, %v8212_v43  ;;  %v7089_v32 = vmul.f32 0.6931472, %v6725_v30 }
 0x188   :  { %v7039_v63 = vmul.f32 0.6931472, %v8200_v12  ;;  %8203 = vst [vmem:[#allocation55_spill] sm:$0xff] %v7046_v60  ;;  %v317_v12 = vld [vmem:[#allocation2 + $0x858] sm:$0xff]  ;;  %v7059_v26 = vpop.eup %5526  ;;  %v323_v43 = vld [vmem:[#allocation2 + $0x888] sm:$0xff]  ;;  %v332_v13 = vld [vmem:[#allocation2 + $0x8d0] sm:$0xff] }
 0x189   :  { %8205 = vst [vmem:[#allocation156_spill] sm:$0xff] %v7049_v53  ;;  %v7065_v53 = vmul.f32 0.6931472, %v8208_v45  ;;  %v7068_v55 = vpop.eup %5528  ;;  %v8209_v60 = vld [vmem:[#allocation175_spill] sm:$0xff]  ;;  %v7078_v45 = vmul.f32 0.6931472, %v8210_v49  ;;  %5542 = vlog2.f32 %v317_v12  ;;  %v4665_v12 = vadd.f32 %v4664_v44, %v6783_v18 }
 0x18a   :  { %8201 = vst [vmem:[#allocation54_spill] sm:$0xff] %v7039_v63  ;;  %v7055_v63 = vmul.f32 0.6931472, %v8206_v41  ;;  %v319_v41 = vld [vmem:[#allocation2 + $0x868] sm:$0xff]  ;;  %v7071_v40 = vmul.f32 0.6931472, %v8209_v60  ;;  %v7075_v2 = vpop.eup %5530  ;;  %5544 = vlog2.f32 %v318_v37 }
 0x18b   :  { %8211 = vst [vmem:[#allocation56_spill] sm:$0xff] %v7078_v45  ;;  %v7086_v61 = vpop.eup %5532  ;;  %v321_v60 = vld [vmem:[#allocation2 + $0x878] sm:$0xff]  ;;  %v7098_v49 = vmul.f32 0.6931472, %v6747_v34  ;;  %5546 = vlog2.f32 %v319_v41  ;;  %v7107_v37 = vmul.f32 0.6931472, %v6769_v36  ;;  %v4666_v21 = vadd.f32 %v4665_v12, %v6843_v25 }
 0x18c   :  { %8213 = vst [vmem:[#allocation57_spill] sm:$0xff] %v7081_v35  ;;  %v7095_v31 = vpop.eup %5534  ;;  %5548 = vlog2.f32 %v320_v47  ;;  %v7117_v41 = vmul.f32 0.6931472, %v6789_v52  ;;  %v7120_v18 = vmul.f32 0.6931472, %v6798_v38  ;;  %v325_v36 = vld [vmem:[#allocation2 + $0x898] sm:$0xff] }
 0x18d   :  { %8214 = vst [vmem:[#allocation157_spill] sm:$0xff] %v7084_v62  ;;  %v7104_v30 = vpop.eup %5536  ;;  %5550 = vlog2.f32 %v321_v60  ;;  %v7125_v47 = vmul.f32 0.6931472, %v6805_v29  ;;  %v326_v52 = vld [vmem:[#allocation2 + $0x8a0] sm:$0xff]  ;;  %v7137_v38 = vmul.f32 0.6931472, %v6826_v48  ;;  %v4667_v46 = vadd.f32 %v4666_v21, %v6899_v3 }
 0x18e   :  { %8215 = vst [vmem:[#allocation62_spill] sm:$0xff] %v7089_v32  ;;  %v7111_v34 = vpop.eup %5538  ;;  %5552 = vlog2.f32 %v322_v22  ;;  %v327_v60 = vld [vmem:[#allocation2 + $0x8a8] sm:$0xff]  ;;  %v7143_v22 = vmul.f32 0.6931472, %v6833_v15  ;;  %v7150_v48 = vmul.f32 0.6931472, %v6840_v50  ;;  %v4758_v50 = vadd.f32 %v4757_v16, %v6857_v27 }
 0x18f   :  { %8216 = vst [vmem:[#allocation63_spill] sm:$0xff] %v7114_v56  ;;  %v7122_v44 = vpop.eup %5540  ;;  %5554 = vlog2.f32 %v323_v43  ;;  %v7153_v43 = vmul.f32 0.6931472, %v6847_v19  ;;  %v7156_v25 = vmul.f32 0.6931472, %v6854_v33  ;;  %v329_v15 = vld [vmem:[#allocation2 + $0x8b8] sm:$0xff] }
 0x190   :  { %8217 = vst [vmem:[#allocation158_spill] sm:$0xff] %v7117_v41  ;;  %v7131_v59 = vpop.eup %5542  ;;  %5556 = vlog2.f32 %v324_v6  ;;  %v7161_v6 = vmul.f32 0.6931472, %v6861_v51  ;;  %v330_v19 = vld [vmem:[#allocation2 + $0x8c0] sm:$0xff]  ;;  %v7170_v0 = vmul.f32 0.6931472, %v6875_v24 }
 0x191   :  { %8218 = vst [vmem:[#allocation64_spill] sm:$0xff] %v7120_v18  ;;  %v7140_v29 = vpop.eup %5544  ;;  %5558 = vlog2.f32 %v325_v36  ;;  %v7173_v33 = vmul.f32 0.6931472, %v6882_v9  ;;  %v331_v36 = vld [vmem:[#allocation2 + $0x8c8] sm:$0xff]  ;;  %v8226_v27 = vld [vmem:[#allocation148_spill] sm:$0xff]  ;;  %v8243_v41 = vld [vmem:[#allocation23_spill] sm:$0xff] }
 0x192   :  { %8219 = vst [vmem:[#allocation65_spill] sm:$0xff] %v7125_v47  ;;  %v7147_v42 = vpop.eup %5546  ;;  %5560 = vlog2.f32 %v326_v52  ;;  %v4622_v16 = vadd.f32 %v4621_v17, %v8226_v27  ;;  %v8228_v18 = vld [vmem:[#allocation141_spill] sm:$0xff]  ;;  %v8232_v3 = vld [vmem:[#allocation8_spill] sm:$0xff]  ;;  %v8236_v17 = vld [vmem:[#allocation15_spill] sm:$0xff] }
 0x193   :  { %8220 = vst [vmem:[#allocation159_spill] sm:$0xff] %v7150_v48  ;;  %v7158_v12 = vpop.eup %5548  ;;  %5562 = vlog2.f32 %v327_v60  ;;  %v7186_v9 = vmul.f32 0.6931472, %v8228_v18  ;;  %v8230_v60 = vld [vmem:[#allocation143_spill] sm:$0xff]  ;;  %v7192_v21 = vmul.f32 0.6931472, %v8232_v3 }
 0x194   :  { %8221 = vst [vmem:[#allocation70_spill] sm:$0xff] %v7153_v43  ;;  %v7167_v57 = vpop.eup %5550  ;;  %5564 = vlog2.f32 %v328_v23  ;;  %v7189_v32 = vmul.f32 0.6931472, %v8230_v60  ;;  %v8234_v23 = vld [vmem:[#allocation145_spill] sm:$0xff]  ;;  %v334_v60 = vld [vmem:[#allocation2 + $0x8e0] sm:$0xff]  ;;  %v8240_v3 = vld [vmem:[#allocation147_spill] sm:$0xff] }
 0x195   :  { %8222 = vst [vmem:[#allocation71_spill] sm:$0xff] %v7156_v25  ;;  %v7176_v51 = vpop.eup %5552  ;;  %v8227_v25 = vld [vmem:[#allocation144_spill] sm:$0xff]  ;;  %5566 = vlog2.f32 %v329_v15  ;;  %v7197_v43 = vmul.f32 0.6931472, %v8234_v23  ;;  %v7209_v15 = vmul.f32 0.6931472, %v8240_v3 }
 0x196   :  { %8223 = vst [vmem:[#allocation160_spill] sm:$0xff] %v7161_v6  ;;  %v8224_v6 = vld [vmem:[#allocation142_spill] sm:$0xff]  ;;  %v4713_v47 = vadd.f32 %v4712_v14, %v8227_v25  ;;  %v7183_v24 = vpop.eup %5554  ;;  %v7200_v14 = vmul.f32 0.6931472, %v8236_v17  ;;  %5568 = vlog2.f32 %v330_v19  ;;  %v8237_v25 = vld [vmem:[#allocation9_spill] sm:$0xff]  ;;  %v8247_v45 = vld [vmem:[#allocation24_spill] sm:$0xff] }
 0x197   :  { %v7179_v52 = vmul.f32 0.6931472, %v8224_v6  ;;  %8229 = vst [vmem:[#allocation73_spill] sm:$0xff] %v7186_v9  ;;  %v7194_v62 = vpop.eup %5556  ;;  %v333_v6 = vld [vmem:[#allocation2 + $0x8d8] sm:$0xff]  ;;  %v4759_v18 = vadd.f32 %v4758_v50, %v8237_v25  ;;  %5570 = vlog2.f32 %v331_v36  ;;  %v336_v17 = vld [vmem:[#allocation2 + $0x8f0] sm:$0xff]  ;;  %v8249_v36 = vld [vmem:[#allocation149_spill] sm:$0xff] }
 0x198   :  { %8231 = vst [vmem:[#allocation161_spill] sm:$0xff] %v7189_v32  ;;  %v7203_v27 = vpop.eup %5558  ;;  %v8238_v32 = vld [vmem:[#allocation16_spill] sm:$0xff]  ;;  %v7215_v19 = vmul.f32 0.6931472, %v8243_v41  ;;  %5572 = vlog2.f32 %v332_v13  ;;  %v8245_v50 = vld [vmem:[#allocation46_spill] sm:$0xff]  ;;  %v337_v41 = vld [vmem:[#allocation2 + $0x8f8] sm:$0xff] }
 0x199   :  { %8225 = vst [vmem:[#allocation72_spill] sm:$0xff] %v7179_v52  ;;  %v7206_v9 = vmul.f32 0.6931472, %v8238_v32  ;;  %v7212_v23 = vpop.eup %5560  ;;  %v4623_v25 = vadd.f32 %v4622_v16, %v8245_v50  ;;  %v8246_v56 = vld [vmem:[#allocation30_spill] sm:$0xff]  ;;  %v7222_v3 = vmul.f32 0.6931472, %v8247_v45  ;;  %5574 = vlog2.f32 %v333_v6 }
 0x19a   :  { %8233 = vst [vmem:[#allocation78_spill] sm:$0xff] %v7192_v21  ;;  %v8242_v21 = vld [vmem:[#allocation25_spill] sm:$0xff]  ;;  %v4714_v35 = vadd.f32 %v4713_v47, %v8246_v56  ;;  %v7219_v32 = vpop.eup %5562  ;;  %v8253_v13 = vld [vmem:[#allocation32_spill] sm:$0xff]  ;;  %v8255_v16 = vld [vmem:[#allocation151_spill] sm:$0xff]  ;;  %5576 = vlog2.f32 %v334_v60 }
 0x19b   :  { %8235 = vst [vmem:[#allocation79_spill] sm:$0xff] %v7197_v43  ;;  %v4668_v48 = vadd.f32 %v4667_v46, %v8242_v21  ;;  %v335_v43 = vld [vmem:[#allocation2 + $0x8e8] sm:$0xff]  ;;  %v8251_v46 = vld [vmem:[#allocation31_spill] sm:$0xff]  ;;  %v7236_v56 = vmul.f32 0.6931472, %v8255_v16  ;;  %v8257_v47 = vld [vmem:[#allocation150_spill] sm:$0xff] }
 0x19c   :  { %8239 = vst [vmem:[#allocation162_spill] sm:$0xff] %v7206_v9  ;;  %v7228_v21 = vmul.f32 0.6931472, %v8251_v46  ;;  %v7230_v9 = vpop.eup %5564  ;;  %v4760_v45 = vadd.f32 %v4759_v18, %v8257_v47  ;;  %v8260_v46 = vld [vmem:[#allocation40_spill] sm:$0xff]  ;;  %5578 = vlog2.f32 %v335_v43  ;;  %v340_v16 = vld [vmem:[#allocation2 + $0x910] sm:$0xff]  ;;  %v4624_v18 = vadd.f32 %v4623_v25, %v7055_v63 }
 0x19d   :  { %8241 = vst [vmem:[#allocation80_spill] sm:$0xff] %v7209_v15  ;;  %v7225_v15 = vmul.f32 0.6931472, %v8249_v36  ;;  %v7239_v50 = vpop.eup %5566  ;;  %v338_v36 = vld [vmem:[#allocation2 + $0x900] sm:$0xff]  ;;  %v7245_v6 = vmul.f32 0.6931472, %v8260_v46  ;;  %5580 = vlog2.f32 %v336_v17  ;;  %v4715_v47 = vadd.f32 %v4714_v35, %v7018_v54 }
 0x19e   :  { %8244 = vst [vmem:[#allocation81_spill] sm:$0xff] %v7215_v19  ;;  %v7233_v19 = vmul.f32 0.6931472, %v8253_v13  ;;  %v7248_v13 = vpop.eup %5568  ;;  %v7261_v43 = vmul.f32 0.6931472, %v7015_v4  ;;  %5582 = vlog2.f32 %v337_v41  ;;  %v8268_v35 = vld [vmem:[#allocation49_spill] sm:$0xff] }
 0x19f   :  { %8248 = vst [vmem:[#allocation163_spill] sm:$0xff] %v7222_v3  ;;  %v7269_v17 = vmul.f32 0.6931472, %v7029_v39  ;;  %v7272_v54 = vmul.f32 0.6931472, %v7036_v28  ;;  %5584 = vlog2.f32 %v338_v36  ;;  %v4761_v63 = vadd.f32 %v4760_v45, %v8268_v35  ;;  %v342_v4 = vld [vmem:[#allocation2 + $0x920] sm:$0xff] }
 0x1a0   :  { %8250 = vst [vmem:[#allocation86_spill] sm:$0xff] %v7225_v15  ;;  %v8258_v15 = vld [vmem:[#allocation39_spill] sm:$0xff]  ;;  %v7281_v41 = vmul.f32 0.6931472, %v7052_v5  ;;  %v344_v28 = vld [vmem:[#allocation2 + $0x930] sm:$0xff]  ;;  %v4625_v45 = vadd.f32 %v4624_v18, %v7092_v58  ;;  %v4716_v35 = vadd.f32 %v4715_v47, %v7065_v53 }
 0x1a1   :  { %8252 = vst [vmem:[#allocation87_spill] sm:$0xff] %v7228_v21  ;;  %v7242_v3 = vmul.f32 0.6931472, %v8258_v15  ;;  %v8262_v21 = vld [vmem:[#allocation154_spill] sm:$0xff]  ;;  %v7255_v15 = vpop.eup %5570  ;;  %v7287_v36 = vmul.f32 0.6931472, %v7059_v26 }
 0x1a2   :  { %8254 = vst [vmem:[#allocation164_spill] sm:$0xff] %v7233_v19  ;;  %v4669_v52 = vadd.f32 %v4668_v48, %v8262_v21  ;;  %v339_v19 = vld [vmem:[#allocation2 + $0x908] sm:$0xff]  ;;  %v8265_v48 = vld [vmem:[#allocation48_spill] sm:$0xff]  ;;  %v7294_v5 = vmul.f32 0.6931472, %v7068_v55  ;;  %v345_v26 = vld [vmem:[#allocation2 + $0x938] sm:$0xff]  ;;  %v4762_v55 = vadd.f32 %v4761_v63, %v7071_v40  ;;  %v4626_v40 = vadd.f32 %v4625_v45, %v7128_v11 }
 0x1a3   :  { %8256 = vst [vmem:[#allocation88_spill] sm:$0xff] %v7236_v56  ;;  %v8263_v56 = vld [vmem:[#allocation153_spill] sm:$0xff]  ;;  %v7264_v21 = vmul.f32 0.6931472, %v8265_v48  ;;  %5586 = vlog2.f32 %v339_v19  ;;  %v7297_v19 = vmul.f32 0.6931472, %v7075_v2  ;;  %v4717_v63 = vadd.f32 %v4716_v35, %v7101_v10 }
 0x1a4   :  { %8259 = vst [vmem:[#allocation89_spill] sm:$0xff] %v7242_v3  ;;  %v7251_v60 = vmul.f32 0.6931472, %v8263_v56  ;;  %v8264_v3 = vld [vmem:[#allocation47_spill] sm:$0xff]  ;;  %v4670_v48 = vadd.f32 %v4669_v52, %v7062_v7  ;;  %5588 = vlog2.f32 %v340_v16  ;;  %v7300_v7 = vmul.f32 0.6931472, %v7086_v61 }
 0x1a5   :  { %8261 = vst [vmem:[#allocation165_spill] sm:$0xff] %v7245_v6  ;;  %v7258_v46 = vmul.f32 0.6931472, %v8264_v3  ;;  %v7266_v6 = vpop.eup %5572  ;;  %v341_v56 = vld [vmem:[#allocation2 + $0x918] sm:$0xff]  ;;  %v7278_v3 = vmul.f32 0.6931472, %v7043_v1  ;;  %v4763_v10 = vadd.f32 %v4762_v55, %v7107_v37  ;;  %v4627_v37 = vadd.f32 %v4626_v40, %v7164_v8 }
 0x1a6   :  { %8266 = vst [vmem:[#allocation94_spill] sm:$0xff] %v7264_v21  ;;  %v7275_v25 = vpop.eup %5574  ;;  %5590 = vlog2.f32 %v341_v56  ;;  %v7305_v16 = vmul.f32 0.6931472, %v7095_v31  ;;  %v7308_v53 = vmul.f32 0.6931472, %v7104_v30  ;;  %v346_v2 = vld [vmem:[#allocation2 + $0x940] sm:$0xff]  ;;  %v4671_v47 = vadd.f32 %v4670_v48, %v7098_v49 }
 0x1a7   :  { %8267 = vst [vmem:[#allocation95_spill] sm:$0xff] %v7269_v17  ;;  %v7284_v39 = vpop.eup %5576  ;;  %v343_v17 = vld [vmem:[#allocation2 + $0x928] sm:$0xff]  ;;  %5592 = vlog2.f32 %v342_v4  ;;  %v7314_v18 = vmul.f32 0.6931472, %v7111_v34  ;;  %v7317_v61 = vmul.f32 0.6931472, %v7122_v44  ;;  %v4718_v55 = vadd.f32 %v4717_v63, %v7137_v38 }
 0x1a8   :  { %v7291_v1 = vpop.eup %5578  ;;  %8269 = vst [vmem:[#allocation166_spill] sm:$0xff] %v7300_v7  ;;  %5594 = vlog2.f32 %v343_v17  ;;  %v347_v56 = vld [vmem:[#allocation2 + $0x948] sm:$0xff]  ;;  %v7321_v30 = vmul.f32 0.6931472, %v7131_v59  ;;  %v7326_v34 = vmul.f32 0.6931472, %v7140_v29  ;;  %v4672_v45 = vadd.f32 %v4671_v47, %v7134_v20 }
 0x1a9   :  { %v7302_v52 = vpop.eup %5580  ;;  %8270 = vst [vmem:[#allocation96_spill] sm:$0xff] %v7305_v16  ;;  %v348_v16 = vld [vmem:[#allocation2 + $0x950] sm:$0xff]  ;;  %5596 = vlog2.f32 %v344_v28  ;;  %v7329_v44 = vmul.f32 0.6931472, %v7147_v42  ;;  %v7332_v49 = vmul.f32 0.6931472, %v7158_v12  ;;  %v4764_v38 = vadd.f32 %v4763_v10, %v7143_v22 }
 0x1aa   :  { %v7311_v58 = vpop.eup %5582  ;;  %5598 = vlog2.f32 %v345_v26  ;;  %v349_v48 = vld [vmem:[#allocation2 + $0x958] sm:$0xff]  ;;  %v7335_v59 = vmul.f32 0.6931472, %v7167_v57  ;;  %v7338_v11 = vmul.f32 0.6931472, %v7176_v51  ;;  %v350_v28 = vld [vmem:[#allocation2 + $0x960] sm:$0xff]  ;;  %v4673_v40 = vadd.f32 %v4672_v45, %v7170_v0 }
 0x1ab   :  { %v5585_v31 = vpop.eup %5584  ;;  %8271 = vst [vmem:[#allocation97_spill] sm:$0xff] %v7332_v49  ;;  %5600 = vlog2.f32 %v346_v2  ;;  %v7342_v42 = vmul.f32 0.6931472, %v7183_v24  ;;  %v7345_v12 = vmul.f32 0.6931472, %v7194_v62  ;;  %v351_v57 = vld [vmem:[#allocation2 + $0x968] sm:$0xff]  ;;  %v4628_v22 = vadd.f32 %v4627_v37, %v7200_v14 }
 0x1ac   :  { %v5587_v4 = vpop.eup %5586  ;;  %8272 = vst [vmem:[#allocation167_spill] sm:$0xff] %v7335_v59  ;;  %5602 = vlog2.f32 %v347_v56  ;;  %v352_v26 = vld [vmem:[#allocation2 + $0x970] sm:$0xff]  ;;  %v7349_v51 = vmul.f32 0.6931472, %v7203_v27  ;;  %v7354_v24 = vmul.f32 0.6931472, %v7212_v23  ;;  %v4719_v10 = vadd.f32 %v4718_v55, %v7173_v33 }
 0x1ad   :  { %v5589_v17 = vpop.eup %5588  ;;  %5604 = vlog2.f32 %v348_v16  ;;  %v7357_v62 = vmul.f32 0.6931472, %v7219_v32  ;;  %v7360_v20 = vmul.f32 0.6931472, %v7230_v9  ;;  %v353_v56 = vld [vmem:[#allocation2 + $0x978] sm:$0xff]  ;;  %v354_v16 = vld [vmem:[#allocation2 + $0x980] sm:$0xff] }
 0x1ae   :  { %v5591_v29 = vpop.eup %5590  ;;  %5606 = vlog2.f32 %v349_v48  ;;  %v7363_v27 = vmul.f32 0.6931472, %v7239_v50  ;;  %v7366_v8 = vmul.f32 0.6931472, %v7248_v13  ;;  %v7370_v32 = vmul.f32 0.6931472, %v7255_v15 }
 0x1af   :  { %v5593_v35 = vpop.eup %5592  ;;  %8273 = vst [vmem:[#allocation168_spill] sm:$0xff] %v7360_v20  ;;  %5608 = vlog2.f32 %v350_v28  ;;  %v7373_v9 = vmul.f32 0.6931472, %v7266_v6  ;;  %v355_v50 = vld [vmem:[#allocation2 + $0x988] sm:$0xff]  ;;  %v356_v48 = vld [vmem:[#allocation2 + $0x990] sm:$0xff]  ;;  %v8279_v33 = vld [vmem:[#allocation72_spill] sm:$0xff] }
 0x1b0   :  { %v5595_v2 = vpop.eup %5594  ;;  %8274 = vst [vmem:[#allocation103_spill] sm:$0xff] %v7363_v27  ;;  %5610 = vlog2.f32 %v351_v57  ;;  %v7377_v13 = vmul.f32 0.6931472, %v7275_v25  ;;  %v7382_v15 = vmul.f32 0.6931472, %v7284_v39  ;;  %v357_v57 = vld [vmem:[#allocation2 + $0x998] sm:$0xff]  ;;  %v4765_v14 = vadd.f32 %v4764_v38, %v8279_v33 }
 0x1b1   :  { %v5597_v47 = vpop.eup %5596  ;;  %5612 = vlog2.f32 %v352_v26  ;;  %v7385_v6 = vmul.f32 0.6931472, %v7291_v1  ;;  %v7388_v0 = vmul.f32 0.6931472, %v7302_v52  ;;  %v7391_v25 = vmul.f32 0.6931472, %v7311_v58 }
 0x1b2   :  { %v5599_v23 = vpop.eup %5598  ;;  %8275 = vst [vmem:[#allocation104_spill] sm:$0xff] %v7382_v15  ;;  %5614 = vlog2.f32 %v353_v56  ;;  %v7393_v26 = vmul.f32 0.6931472, %v5585_v31  ;;  %v358_v39 = vld [vmem:[#allocation2 + $0x9a0] sm:$0xff]  ;;  %v7396_v55 = vmul.f32 0.6931472, %v5587_v4 }
 0x1b3   :  { %v5601_v63 = vpop.eup %5600  ;;  %8276 = vst [vmem:[#allocation169_spill] sm:$0xff] %v7385_v6  ;;  %5616 = vlog2.f32 %v354_v16  ;;  %v7398_v1 = vmul.f32 0.6931472, %v5589_v17  ;;  %v8280_v52 = vld [vmem:[#allocation162_spill] sm:$0xff]  ;;  %v359_v27 = vld [vmem:[#allocation2 + $0x9a8] sm:$0xff]  ;;  %v8281_v58 = vld [vmem:[#allocation88_spill] sm:$0xff] }
 0x1b4   :  { %v5603_v28 = vpop.eup %5602  ;;  %8277 = vst [vmem:[#allocation170_spill] sm:$0xff] %v7388_v0  ;;  %5618 = vlog2.f32 %v355_v50  ;;  %v4674_v0 = vadd.f32 %v4673_v40, %v8280_v52  ;;  %v360_v20 = vld [vmem:[#allocation2 + $0x9b0] sm:$0xff]  ;;  %v7401_v59 = vmul.f32 0.6931472, %v5591_v29  ;;  %v4629_v31 = vadd.f32 %v4628_v22, %v8281_v58  ;;  %v8282_v16 = vld [vmem:[#allocation80_spill] sm:$0xff]  ;;  %v361_v40 = vld [vmem:[#allocation2 + $0x9b8] sm:$0xff] }
 0x1b5   :  { %v5605_v45 = vpop.eup %5604  ;;  %8278 = vst [vmem:[#allocation171_spill] sm:$0xff] %v7391_v25  ;;  %5620 = vlog2.f32 %v356_v48  ;;  %v4720_v25 = vadd.f32 %v4719_v10, %v8282_v16  ;;  %v7405_v33 = vmul.f32 0.6931472, %v5593_v35  ;;  %v7407_v4 = vmul.f32 0.6931472, %v5595_v2  ;;  %v8286_v52 = vld [vmem:[#allocation81_spill] sm:$0xff] }
 0x1b6   :  { %v5607_v37 = vpop.eup %5606  ;;  %v7409_v17 = vmul.f32 0.6931472, %v5597_v47  ;;  %5622 = vlog2.f32 %v357_v57  ;;  %v4766_v49 = vadd.f32 %v4765_v14, %v8286_v52  ;;  %v8287_v29 = vld [vmem:[#allocation113_spill] sm:$0xff]  ;;  %v8289_v21 = vld [vmem:[#allocation114_spill] sm:$0xff]  ;;  %v362_v16 = vld [vmem:[#allocation2 + $0x9c0] sm:$0xff]  ;;  %v4630_v14 = vadd.f32 %v4629_v31, %v7272_v54 }
 0x1b7   :  { %v5609_v56 = vpop.eup %5608  ;;  %8283 = vst [vmem:[#allocation172_spill] sm:$0xff] %v7405_v33  ;;  %5624 = vlog2.f32 %v358_v39  ;;  %v8288_v7 = vld [vmem:[#allocation117_spill] sm:$0xff]  ;;  %v8290_v22 = vld [vmem:[#allocation118_spill] sm:$0xff]  ;;  %v7416_v35 = vmul.f32 0.6931472, %v5599_v23 }
 0x1b8   :  { %v5611_v38 = vpop.eup %5610  ;;  %8284 = vst [vmem:[#allocation173_spill] sm:$0xff] %v7407_v4  ;;  %v4783_v48 = vadd.f32 %v8288_v7, %v8287_v29  ;;  %v4829_v58 = vadd.f32 %v8290_v22, %v8289_v21  ;;  %v7418_v2 = vmul.f32 0.6931472, %v5601_v63  ;;  %5626 = vlog2.f32 %v359_v27  ;;  %v8292_v47 = vld [vmem:[#allocation89_spill] sm:$0xff]  ;;  %v8295_v23 = vld [vmem:[#allocation122_spill] sm:$0xff] }
 0x1b9   :  { %8285 = vst [vmem:[#allocation174_spill] sm:$0xff] %v7409_v17  ;;  %v5613_v50 = vpop.eup %5612  ;;  %v4675_v57 = vadd.f32 %v4674_v0, %v8292_v47  ;;  %v363_v4 = vld [vmem:[#allocation2 + $0x9c8] sm:$0xff]  ;;  %5628 = vlog2.f32 %v360_v20  ;;  %v7424_v21 = vmul.f32 0.6931472, %v5603_v28  ;;  %v7426_v22 = vmul.f32 0.6931472, %v5605_v45 }
 0x1ba   :  { %v5615_v10 = vpop.eup %5614  ;;  %8291 = vst [vmem:[#allocation175_spill] sm:$0xff] %v7416_v35  ;;  %v8293_v39 = vld [vmem:[#allocation165_spill] sm:$0xff]  ;;  %5630 = vlog2.f32 %v361_v40  ;;  %v4830_v63 = vadd.f32 %v4829_v58, %v8295_v23  ;;  %v364_v0 = vld [vmem:[#allocation2 + $0x9d0] sm:$0xff]  ;;  %v7431_v47 = vmul.f32 0.6931472, %v5607_v37  ;;  %v4767_v54 = vadd.f32 %v4766_v49, %v7251_v60  ;;  %v8298_v40 = vld [vmem:[#allocation115_spill] sm:$0xff] }
 0x1bb   :  { %v5617_v17 = vpop.eup %5616  ;;  %v4721_v52 = vadd.f32 %v4720_v25, %v8293_v39  ;;  %v8294_v7 = vld [vmem:[#allocation121_spill] sm:$0xff]  ;;  %5632 = vlog2.f32 %v362_v16  ;;  %v4676_v28 = vadd.f32 %v4675_v57, %v7278_v3  ;;  %v8297_v45 = vld [vmem:[#allocation126_spill] sm:$0xff]  ;;  %v366_v35 = vld [vmem:[#allocation2 + $0x9e0] sm:$0xff]  ;;  %v4631_v37 = vadd.f32 %v4630_v14, %v7308_v53 }
 0x1bc   :  { %v4784_v29 = vadd.f32 %v4783_v48, %v8294_v7  ;;  %v5619_v33 = vpop.eup %5618  ;;  %v8296_v20 = vld [vmem:[#allocation125_spill] sm:$0xff]  ;;  %v365_v48 = vld [vmem:[#allocation2 + $0x9d8] sm:$0xff]  ;;  %5634 = vlog2.f32 %v363_v4  ;;  %v4831_v39 = vadd.f32 %v4830_v63, %v8297_v45  ;;  %v8301_v49 = vld [vmem:[#allocation116_spill] sm:$0xff]  ;;  %v7446_v4 = vmul.f32 0.6931472, %v5609_v56 }
 0x1bd   :  { %v7429_v27 = vpop.eup %5620  ;;  %v8299_v7 = vld [vmem:[#allocation119_spill] sm:$0xff]  ;;  %v4722_v16 = vadd.f32 %v4721_v52, %v7281_v41  ;;  %v8300_v6 = vld [vmem:[#allocation129_spill] sm:$0xff]  ;;  %v7448_v3 = vmul.f32 0.6931472, %v5611_v38  ;;  %5636 = vlog2.f32 %v364_v0  ;;  %v8303_v57 = vld [vmem:[#allocation130_spill] sm:$0xff]  ;;  %v4768_v41 = vadd.f32 %v4767_v54, %v7287_v36 }
 0x1be   :  { %v4785_v25 = vadd.f32 %v4784_v29, %v8296_v20  ;;  %v5623_v31 = vpop.eup %5622  ;;  %v4875_v58 = vadd.f32 %v8299_v7, %v8298_v40  ;;  %v8302_v29 = vld [vmem:[#allocation120_spill] sm:$0xff]  ;;  %v4832_v63 = vadd.f32 %v4831_v39, %v8303_v57  ;;  %v367_v40 = vld [vmem:[#allocation2 + $0x9e8] sm:$0xff]  ;;  %v7453_v53 = vmul.f32 0.6931472, %v5613_v50  ;;  %v8307_v7 = vld [vmem:[#allocation123_spill] sm:$0xff] }
 0x1bf   :  { %v5625_v23 = vpop.eup %5624  ;;  %v4921_v20 = vadd.f32 %v8302_v29, %v8301_v49  ;;  %5638 = vlog2.f32 %v365_v48  ;;  %v4677_v56 = vadd.f32 %v4676_v28, %v7314_v18  ;;  %v8306_v38 = vld [vmem:[#allocation137_spill] sm:$0xff]  ;;  %v4632_v50 = vadd.f32 %v4631_v37, %v7338_v11  ;;  %v8308_v57 = vld [vmem:[#allocation10_spill] sm:$0xff]  ;;  %v8309_v54 = vld [vmem:[#allocation124_spill] sm:$0xff] }
 0x1c0   :  { %v4786_v60 = vadd.f32 %v4785_v25, %v8300_v6  ;;  %v7444_v15 = vpop.eup %5626  ;;  %8304 = vst [vmem:[#allocation102_spill] sm:$0xff] %v7453_v53  ;;  %v8305_v6 = vld [vmem:[#allocation136_spill] sm:$0xff]  ;;  %5640 = vlog2.f32 %v366_v35  ;;  %v4833_v0 = vadd.f32 %v4832_v63, %v8306_v38  ;;  %v4876_v39 = vadd.f32 %v4875_v58, %v8307_v7  ;;  %v371_v29 = vld [vmem:[#allocation2 + $0xa08] sm:$0xff]  ;;  %v8310_v18 = vld [vmem:[#allocation11_spill] sm:$0xff] }
 0x1c1   :  { %v7451_v45 = vpop.eup %5628  ;;  %v370_v25 = vld [vmem:[#allocation2 + $0xa00] sm:$0xff]  ;;  %v4723_v48 = vadd.f32 %v4722_v16, %v7317_v61  ;;  %v7466_v53 = vmul.f32 0.6931472, %v5615_v10  ;;  %v7468_v35 = vmul.f32 0.6931472, %v5617_v17  ;;  %5642 = vlog2.f32 %v367_v40  ;;  %v372_v63 = vld [vmem:[#allocation2 + $0xa10] sm:$0xff] }
 0x1c2   :  { %v4787_v14 = vadd.f32 %v4786_v60, %v8305_v6  ;;  %v7457_v52 = vpop.eup %5630  ;;  %v4922_v60 = vadd.f32 %v4921_v20, %v8309_v54  ;;  %v4834_v28 = vadd.f32 %v4833_v0, %v8310_v18  ;;  %v7471_v58 = vmul.f32 0.6931472, %v5619_v33  ;;  %v8311_v37 = vld [vmem:[#allocation18_spill] sm:$0xff]  ;;  %v8312_v10 = vld [vmem:[#allocation19_spill] sm:$0xff]  ;;  %v378_v18 = vld [vmem:[#allocation2 + $0xa40] sm:$0xff] }
 0x1c3   :  { %v5633_v49 = vpop.eup %5632  ;;  %5644 = vlog2.f32 %v370_v25  ;;  %v4769_v11 = vadd.f32 %v4768_v41, %v7321_v30  ;;  %v4678_v20 = vadd.f32 %v4677_v56, %v7342_v42  ;;  %v8313_v17 = vld [vmem:[#allocation127_spill] sm:$0xff]  ;;  %v4633_v0 = vadd.f32 %v4632_v50, %v7366_v8  ;;  %v8314_v25 = vld [vmem:[#allocation26_spill] sm:$0xff]  ;;  %v8315_v30 = vld [vmem:[#allocation128_spill] sm:$0xff] }
 0x1c4   :  { %v4788_v36 = vadd.f32 %v4787_v14, %v8308_v57  ;;  %v5635_v6 = vpop.eup %5634  ;;  %v373_v14 = vld [vmem:[#allocation2 + $0xa18] sm:$0xff]  ;;  %5646 = vlog2.f32 %v371_v29  ;;  %v4835_v38 = vadd.f32 %v4834_v28, %v8312_v10  ;;  %v4877_v7 = vadd.f32 %v4876_v39, %v8313_v17  ;;  %v374_v57 = vld [vmem:[#allocation2 + $0xa20] sm:$0xff]  ;;  %v8317_v8 = vld [vmem:[#allocation34_spill] sm:$0xff] }
 0x1c5   :  { %v5637_v16 = vpop.eup %5636  ;;  %v4724_v33 = vadd.f32 %v4723_v48, %v7345_v12  ;;  %v4923_v41 = vadd.f32 %v4922_v60, %v8315_v30  ;;  %v7485_v29 = vmul.f32 0.6931472, %v7429_v27  ;;  %v7487_v42 = vmul.f32 0.6931472, %v5623_v31  ;;  %v8316_v56 = vld [vmem:[#allocation27_spill] sm:$0xff]  ;;  %v379_v60 = vld [vmem:[#allocation2 + $0xa48] sm:$0xff] }
 0x1c6   :  { %v4789_v61 = vadd.f32 %v4788_v36, %v8311_v37  ;;  %v5639_v40 = vpop.eup %5638  ;;  %5648 = vlog2.f32 %v372_v63  ;;  %v4836_v39 = vadd.f32 %v4835_v38, %v8316_v56  ;;  %v7490_v28 = vmul.f32 0.6931472, %v5625_v23  ;;  %v8318_v37 = vld [vmem:[#allocation35_spill] sm:$0xff]  ;;  %v380_v38 = vld [vmem:[#allocation2 + $0xa50] sm:$0xff]  ;;  %v375_v56 = vld [vmem:[#allocation2 + $0xa28] sm:$0xff] }
 0x1c7   :  { %v7482_v36 = vpop.eup %5640  ;;  %5650 = vlog2.f32 %v373_v14  ;;  %v4770_v12 = vadd.f32 %v4769_v11, %v7349_v51  ;;  %v4679_v27 = vadd.f32 %v4678_v20, %v7370_v32  ;;  %v4634_v23 = vadd.f32 %v4633_v0, %v7393_v26  ;;  %v8320_v17 = vld [vmem:[#allocation42_spill] sm:$0xff]  ;;  %v8321_v11 = vld [vmem:[#allocation132_spill] sm:$0xff]  ;;  %v8322_v32 = vld [vmem:[#allocation43_spill] sm:$0xff] }
 0x1c8   :  { %v4790_v54 = vadd.f32 %v4789_v61, %v8314_v25  ;;  %v7494_v48 = vpop.eup %5642  ;;  %5652 = vlog2.f32 %v374_v57  ;;  %v4837_v31 = vadd.f32 %v4836_v39, %v8318_v37  ;;  %v8319_v61 = vld [vmem:[#allocation131_spill] sm:$0xff]  ;;  %v4725_v14 = vadd.f32 %v4724_v33, %v7373_v9  ;;  %v8323_v0 = vld [vmem:[#allocation50_spill] sm:$0xff] }
 0x1c9   :  { %v4878_v63 = vadd.f32 %v4877_v7, %v8319_v61  ;;  %v5645_v10 = vpop.eup %5644  ;;  %v4924_v25 = vadd.f32 %v4923_v41, %v8321_v11  ;;  %v7504_v30 = vmul.f32 0.6931472, %v7444_v15  ;;  %v4472_v57 = vmul.f32 0.6931472, %v5633_v49  ;;  %v8324_v39 = vld [vmem:[#allocation51_spill] sm:$0xff]  ;;  %v8325_v15 = vld [vmem:[#allocation138_spill] sm:$0xff] }
 0x1ca   :  { %v4791_v50 = vadd.f32 %v4790_v54, %v8317_v8  ;;  %v5647_v54 = vpop.eup %5646  ;;  %5654 = vlog2.f32 %v378_v18  ;;  %v4838_v20 = vadd.f32 %v4837_v31, %v8322_v32  ;;  %v7507_v7 = vmul.f32 0.6931472, %v5635_v6  ;;  %v381_v18 = vld [vmem:[#allocation2 + $0xa58] sm:$0xff]  ;;  %v8326_v31 = vld [vmem:[#allocation58_spill] sm:$0xff]  ;;  %v8327_v61 = vld [vmem:[#allocation140_spill] sm:$0xff] }
 0x1cb   :  { %5656 = vlog2.f32 %v379_v60  ;;  %v4771_v26 = vadd.f32 %v4770_v12, %v7377_v13  ;;  %v4680_v41 = vadd.f32 %v4679_v27, %v7396_v55  ;;  %v4635_v37 = vadd.f32 %v4634_v23, %v7418_v2  ;;  %v8328_v55 = vld [vmem:[#allocation59_spill] sm:$0xff]  ;;  %v8329_v23 = vld [vmem:[#allocation66_spill] sm:$0xff]  ;;  %v383_v32 = vld [vmem:[#allocation2 + $0xa68] sm:$0xff] }
 0x1cc   :  { %v4792_v51 = vadd.f32 %v4791_v50, %v8320_v17  ;;  %v5649_v33 = vpop.eup %5648  ;;  %5658 = vlog2.f32 %v380_v38  ;;  %v4839_v8 = vadd.f32 %v4838_v20, %v8324_v39  ;;  %v4879_v50 = vadd.f32 %v4878_v63, %v8325_v15  ;;  %v8330_v20 = vld [vmem:[#allocation67_spill] sm:$0xff] }
 0x1cd   :  { %v5651_v49 = vpop.eup %5650  ;;  %v4726_v6 = vadd.f32 %v4725_v14, %v7398_v1  ;;  %v4925_v13 = vadd.f32 %v4924_v25, %v8327_v61  ;;  %v4476_v17 = vmul.f32 0.6931472, %v5637_v16  ;;  %v7520_v38 = vmul.f32 0.6931472, %v5639_v40  ;;  %v8331_v40 = vld [vmem:[#allocation12_spill] sm:$0xff]  ;;  %v8335_v61 = vld [vmem:[#allocation82_spill] sm:$0xff] }
 0x1ce   :  { %v4793_v9 = vadd.f32 %v4792_v51, %v8323_v0  ;;  %v7518_v12 = vpop.eup %5652  ;;  %5660 = vlog2.f32 %v375_v56  ;;  %v4840_v27 = vadd.f32 %v4839_v8, %v8328_v55  ;;  %v382_v51 = vld [vmem:[#allocation2 + $0xa60] sm:$0xff]  ;;  %v4488_v63 = vmul.f32 0.6931472, %v5645_v10 }
 0x1cf   :  { %v7523_v11 = vmul.f32 0.6931472, %v5647_v54  ;;  %v4772_v2 = vadd.f32 %v4771_v26, %v7401_v59  ;;  %5662 = vlog2.f32 %v381_v18  ;;  %v4681_v25 = vadd.f32 %v4680_v41, %v7424_v21  ;;  %v8332_v54 = vld [vmem:[#allocation74_spill] sm:$0xff]  ;;  %v8333_v59 = vld [vmem:[#allocation13_spill] sm:$0xff]  ;;  %v8334_v21 = vld [vmem:[#allocation75_spill] sm:$0xff] }
 0x1d0   :  { %v4794_v60 = vadd.f32 %v4793_v9, %v8326_v31  ;;  %v5655_v14 = vpop.eup %5654  ;;  %v4841_v16 = vadd.f32 %v4840_v27, %v8330_v20  ;;  %v4880_v0 = vadd.f32 %v4879_v50, %v8331_v40  ;;  %v386_v9 = vld [vmem:[#allocation2 + $0xa80] sm:$0xff]  ;;  %v4636_v39 = vadd.f32 %v4635_v37, %v7468_v35  ;;  %v388_v27 = vld [vmem:[#allocation2 + $0xa90] sm:$0xff]  ;;  %v8340_v40 = vld [vmem:[#allocation91_spill] sm:$0xff] }
 0x1d1   :  { %v5657_v56 = vpop.eup %5656  ;;  %v4727_v10 = vadd.f32 %v4726_v6, %v7426_v22  ;;  %v4926_v26 = vadd.f32 %v4925_v13, %v8333_v59  ;;  %v4492_v31 = vmul.f32 0.6931472, %v5649_v33  ;;  %5664 = vlog2.f32 %v382_v51  ;;  %v387_v22 = vld [vmem:[#allocation2 + $0xa88] sm:$0xff]  ;;  %v8336_v6 = vld [vmem:[#allocation83_spill] sm:$0xff]  ;;  %v8337_v33 = vld [vmem:[#allocation20_spill] sm:$0xff] }
 0x1d2   :  { %v4795_v1 = vadd.f32 %v4794_v60, %v8329_v23  ;;  %v5659_v15 = vpop.eup %5658  ;;  %v7534_v60 = vmul.f32 0.6931472, %v5651_v49  ;;  %v4842_v41 = vadd.f32 %v4841_v16, %v8334_v21  ;;  %v4504_v18 = vmul.f32 0.6931472, %v5655_v14  ;;  %v390_v59 = vld [vmem:[#allocation2 + $0xaa0] sm:$0xff] }
 0x1d3   :  { %5666 = vlog2.f32 %v383_v32  ;;  %v4773_v50 = vadd.f32 %v4772_v2, %v7431_v47  ;;  %v4682_v37 = vadd.f32 %v4681_v25, %v7471_v58  ;;  %v4881_v49 = vadd.f32 %v4880_v0, %v8337_v33  ;;  %v8339_v32 = vld [vmem:[#allocation21_spill] sm:$0xff]  ;;  %v389_v25 = vld [vmem:[#allocation2 + $0xa98] sm:$0xff]  ;;  %v8345_v21 = vld [vmem:[#allocation36_spill] sm:$0xff] }
 0x1d4   :  { %v4796_v8 = vadd.f32 %v4795_v1, %v8332_v54  ;;  %v7539_v35 = vpop.eup %5660  ;;  %5668 = vlog2.f32 %v386_v9  ;;  %v4843_v13 = vadd.f32 %v4842_v41, %v8336_v6  ;;  %v4637_v51 = vadd.f32 %v4636_v39, %v4472_v57  ;;  %v8338_v1 = vld [vmem:[#allocation90_spill] sm:$0xff]  ;;  %v8341_v54 = vld [vmem:[#allocation28_spill] sm:$0xff]  ;;  %v8343_v39 = vld [vmem:[#allocation29_spill] sm:$0xff] }
 0x1d5   :  { %v4728_v23 = vadd.f32 %v4727_v10, %v7485_v29  ;;  %v4927_v47 = vadd.f32 %v4926_v26, %v8339_v32  ;;  %v5663_v2 = vpop.eup %5662  ;;  %v4506_v20 = vmul.f32 0.6931472, %v5657_v56  ;;  %v7547_v16 = vmul.f32 0.6931472, %v5659_v15  ;;  %v8344_v26 = vld [vmem:[#allocation99_spill] sm:$0xff]  ;;  %v8349_v32 = vld [vmem:[#allocation44_spill] sm:$0xff] }
 0x1d6   :  { %v4797_v55 = vadd.f32 %v4796_v8, %v8335_v61  ;;  %v4844_v9 = vadd.f32 %v4843_v13, %v8340_v40  ;;  %v4882_v58 = vadd.f32 %v4881_v49, %v8341_v54  ;;  %5670 = vlog2.f32 %v387_v22  ;;  %v8342_v8 = vld [vmem:[#allocation98_spill] sm:$0xff]  ;;  %v8347_v13 = vld [vmem:[#allocation37_spill] sm:$0xff] }
 0x1d7   :  { %v4774_v0 = vadd.f32 %v4773_v50, %v7487_v42  ;;  %v4928_v29 = vadd.f32 %v4927_v47, %v8343_v39  ;;  %v7554_v10 = vpop.eup %5664  ;;  %5672 = vlog2.f32 %v388_v27  ;;  %v4683_v56 = vadd.f32 %v4682_v37, %v7507_v7  ;;  %v8346_v42 = vld [vmem:[#allocation106_spill] sm:$0xff]  ;;  %v394_v37 = vld [vmem:[#allocation2 + $0xac0] sm:$0xff]  ;;  %v8350_v40 = vld [vmem:[#allocation109_spill] sm:$0xff] }
 0x1d8   :  { %v4798_v14 = vadd.f32 %v4797_v55, %v8338_v1  ;;  %v4845_v15 = vadd.f32 %v4844_v9, %v8344_v26  ;;  %v4883_v41 = vadd.f32 %v4882_v58, %v8345_v21  ;;  %v391_v55 = vld [vmem:[#allocation2 + $0xaa8] sm:$0xff]  ;;  %v4638_v22 = vadd.f32 %v4637_v51, %v4488_v63  ;;  %v8354_v26 = vld [vmem:[#allocation179_spill] sm:$0xff] }
 0x1d9   :  { %v7559_v61 = vpop.eup %5666  ;;  %v4729_v6 = vadd.f32 %v4728_v23, %v4476_v17  ;;  %v4929_v33 = vadd.f32 %v4928_v29, %v8347_v13  ;;  %v4510_v1 = vmul.f32 0.6931472, %v5663_v2  ;;  %5674 = vlog2.f32 %v389_v25  ;;  %v8351_v54 = vld [vmem:[#allocation45_spill] sm:$0xff]  ;;  %v8352_v23 = vld [vmem:[#allocation110_spill] sm:$0xff]  ;;  %v8353_v2 = vld [vmem:[#allocation52_spill] sm:$0xff] }
 0x1da   :  { %v4799_v57 = vadd.f32 %v4798_v14, %v8342_v8  ;;  %v5669_v49 = vpop.eup %5668  ;;  %v8348_v14 = vld [vmem:[#allocation107_spill] sm:$0xff]  ;;  %v4884_v7 = vadd.f32 %v4883_v41, %v8349_v32  ;;  %5676 = vlog2.f32 %v390_v59  ;;  %v4775_v47 = vadd.f32 %v4774_v0, %v7520_v38  ;;  %v395_v17 = vld [vmem:[#allocation2 + $0xac8] sm:$0xff]  ;;  %v8361_v32 = vld [vmem:[#allocation68_spill] sm:$0xff] }
 0x1db   :  { %v4846_v27 = vadd.f32 %v4845_v15, %v8348_v14  ;;  %v4930_v63 = vadd.f32 %v4929_v33, %v8351_v54  ;;  %5678 = vlog2.f32 %v391_v55  ;;  %v4684_v51 = vadd.f32 %v4683_v56, %v7523_v11  ;;  %v8355_v15 = vld [vmem:[#allocation53_spill] sm:$0xff]  ;;  %v397_v21 = vld [vmem:[#allocation2 + $0xad8] sm:$0xff] }
 0x1dc   :  { %v4800_v50 = vadd.f32 %v4799_v57, %v8346_v42  ;;  %v4885_v25 = vadd.f32 %v4884_v7, %v8353_v2  ;;  %v5671_v8 = vpop.eup %5670  ;;  %v396_v57 = vld [vmem:[#allocation2 + $0xad0] sm:$0xff]  ;;  %v4639_v39 = vadd.f32 %v4638_v22, %v4504_v18  ;;  %v4730_v29 = vadd.f32 %v4729_v6, %v4492_v31  ;;  %v8356_v42 = vld [vmem:[#allocation180_spill] sm:$0xff]  ;;  %v8358_v13 = vld [vmem:[#allocation111_spill] sm:$0xff] }
 0x1dd   :  { %v4847_v58 = vadd.f32 %v4846_v27, %v8352_v23  ;;  %v4931_v38 = vadd.f32 %v4930_v63, %v8355_v15  ;;  %v5673_v0 = vpop.eup %5672  ;;  %v4520_v41 = vmul.f32 0.6931472, %v5669_v49  ;;  %5680 = vlog2.f32 %v394_v37  ;;  %v8359_v14 = vld [vmem:[#allocation61_spill] sm:$0xff]  ;;  %v8360_v6 = vld [vmem:[#allocation112_spill] sm:$0xff]  ;;  %v8366_v15 = vld [vmem:[#allocation14_spill] sm:$0xff] }
 0x1de   :  { %v4801_v9 = vadd.f32 %v4800_v50, %v8350_v40  ;;  %v8357_v50 = vld [vmem:[#allocation60_spill] sm:$0xff]  ;;  %5682 = vlog2.f32 %v395_v17  ;;  %v4776_v56 = vadd.f32 %v4775_v47, %v7534_v60  ;;  %v4685_v22 = vadd.f32 %v4684_v51, %v4506_v20  ;;  %v8363_v63 = vld [vmem:[#allocation69_spill] sm:$0xff]  ;;  %v8364_v20 = vld [vmem:[#allocation139_spill] sm:$0xff] }
 0x1df   :  { %v4848_v55 = vadd.f32 %v4847_v58, %v8356_v42  ;;  %v4886_v11 = vadd.f32 %v4885_v25, %v8357_v50  ;;  %v4932_v18 = vadd.f32 %v4931_v38, %v8359_v14  ;;  %v5675_v31 = vpop.eup %5674  ;;  %5684 = vlog2.f32 %v396_v57  ;;  %v402_v37 = vld [vmem:[#allocation2 + $0xb00] sm:$0xff]  ;;  %v403_v17 = vld [vmem:[#allocation2 + $0xb08] sm:$0xff]  ;;  %v404_v57 = vld [vmem:[#allocation2 + $0xb10] sm:$0xff] }
 0x1e0   :  { %v4802_v59 = vadd.f32 %v4801_v9, %v8354_v26  ;;  %v7580_v49 = vpop.eup %5676  ;;  %v4522_v40 = vmul.f32 0.6931472, %v5671_v8  ;;  %5686 = vlog2.f32 %v397_v21  ;;  %v8362_v9 = vld [vmem:[#allocation133_spill] sm:$0xff]  ;;  %v4524_v23 = vmul.f32 0.6931472, %v5673_v0  ;;  %v8365_v2 = vld [vmem:[#allocation76_spill] sm:$0xff] }
 0x1e1   :  { %v4849_v27 = vadd.f32 %v4848_v55, %v8360_v6  ;;  %v4887_v7 = vadd.f32 %v4886_v11, %v8361_v32  ;;  %v4933_v60 = vadd.f32 %v4932_v18, %v8363_v63  ;;  %v7584_v47 = vpop.eup %5678  ;;  %v4731_v58 = vadd.f32 %v4730_v29, %v7547_v16  ;;  %v8367_v38 = vld [vmem:[#allocation77_spill] sm:$0xff]  ;;  %v405_v55 = vld [vmem:[#allocation2 + $0xb18] sm:$0xff]  ;;  %v8368_v11 = vld [vmem:[#allocation146_spill] sm:$0xff] }
 0x1e2   :  { %v4803_v33 = vadd.f32 %v4802_v59, %v8358_v13  ;;  %v4640_v26 = vadd.f32 %v4639_v39, %v4520_v41  ;;  %v4777_v59 = vadd.f32 %v4776_v56, %v4510_v1  ;;  %v4526_v50 = vmul.f32 0.6931472, %v5675_v31  ;;  %v8369_v0 = vld [vmem:[#allocation84_spill] sm:$0xff]  ;;  %v8370_v18 = vld [vmem:[#allocation33_spill] sm:$0xff]  ;;  %v8374_v63 = vld [vmem:[#allocation155_spill] sm:$0xff] }
 0x1e3   :  { %v4850_v51 = vadd.f32 %v4849_v27, %v8364_v20  ;;  %v4888_v25 = vadd.f32 %v4887_v7, %v8365_v2  ;;  %v4934_v21 = vadd.f32 %v4933_v60, %v8367_v38  ;;  %v5681_v42 = vpop.eup %5680  ;;  %5688 = vlog2.f32 %v402_v37  ;;  %v398_v29 = vld [vmem:[#allocation2 + $0xae0] sm:$0xff]  ;;  %v8371_v39 = vld [vmem:[#allocation85_spill] sm:$0xff]  ;;  %v8372_v27 = vld [vmem:[#allocation38_spill] sm:$0xff] }
 0x1e4   :  { %v4804_v54 = vadd.f32 %v4803_v33, %v8362_v9  ;;  %v5683_v16 = vpop.eup %5682  ;;  %5690 = vlog2.f32 %v403_v17  ;;  %v4686_v14 = vadd.f32 %v4685_v22, %v4522_v40  ;;  %v4732_v56 = vadd.f32 %v4731_v58, %v4524_v23  ;;  %v8373_v7 = vld [vmem:[#allocation92_spill] sm:$0xff]  ;;  %v8375_v20 = vld [vmem:[#allocation93_spill] sm:$0xff]  ;;  %v412_v23 = vld [vmem:[#allocation2 + $0xb50] sm:$0xff] }
 0x1e5   :  { %v4851_v13 = vadd.f32 %v4850_v51, %v8368_v11  ;;  %v4889_v33 = vadd.f32 %v4888_v25, %v8369_v0  ;;  %v4935_v1 = vadd.f32 %v4934_v21, %v8371_v39  ;;  %v5685_v41 = vpop.eup %5684  ;;  %5692 = vlog2.f32 %v404_v57  ;;  %v410_v9 = vld [vmem:[#allocation2 + $0xb40] sm:$0xff]  ;;  %v411_v22 = vld [vmem:[#allocation2 + $0xb48] sm:$0xff]  ;;  %v8376_v51 = vld [vmem:[#allocation54_spill] sm:$0xff] }
 0x1e6   :  { %v4805_v8 = vadd.f32 %v4804_v54, %v8366_v15  ;;  %v5687_v37 = vpop.eup %5686  ;;  %v4536_v54 = vmul.f32 0.6931472, %v5681_v42  ;;  %5694 = vlog2.f32 %v405_v55  ;;  %v4538_v40 = vmul.f32 0.6931472, %v5683_v16  ;;  %v8377_v25 = vld [vmem:[#allocation100_spill] sm:$0xff]  ;;  %v8379_v21 = vld [vmem:[#allocation101_spill] sm:$0xff] }
 0x1e7   :  { %v4852_v32 = vadd.f32 %v4851_v13, %v8372_v27  ;;  %v4890_v31 = vadd.f32 %v4889_v33, %v8373_v7  ;;  %v4936_v17 = vadd.f32 %v4935_v1, %v8375_v20  ;;  %5696 = vlog2.f32 %v398_v29  ;;  %v413_v55 = vld [vmem:[#allocation2 + $0xb58] sm:$0xff]  ;;  %v8380_v0 = vld [vmem:[#allocation57_spill] sm:$0xff]  ;;  %v8383_v27 = vld [vmem:[#allocation108_spill] sm:$0xff] }
 0x1e8   :  { %v4806_v6 = vadd.f32 %v4805_v8, %v8370_v18  ;;  %v4540_v58 = vmul.f32 0.6931472, %v5685_v41  ;;  %v4778_v15 = vadd.f32 %v4777_v59, %v4526_v50  ;;  %v8378_v8 = vld [vmem:[#allocation56_spill] sm:$0xff]  ;;  %v4542_v13 = vmul.f32 0.6931472, %v5687_v37  ;;  %v8382_v39 = vld [vmem:[#allocation63_spill] sm:$0xff] }
 0x1e9   :  { %v4853_v2 = vadd.f32 %v4852_v32, %v8376_v51  ;;  %v4891_v57 = vadd.f32 %v4890_v31, %v8377_v25  ;;  %v4937_v11 = vadd.f32 %v4936_v17, %v8379_v21  ;;  %v5689_v42 = vpop.eup %5688  ;;  %5698 = vlog2.f32 %v410_v9  ;;  %v8381_v18 = vld [vmem:[#allocation176_spill] sm:$0xff]  ;;  %v8384_v32 = vld [vmem:[#allocation158_spill] sm:$0xff]  ;;  %v8385_v31 = vld [vmem:[#allocation177_spill] sm:$0xff] }
 0x1ea   :  { %v4807_v60 = vadd.f32 %v4806_v6, %v8374_v63  ;;  %v5691_v29 = vpop.eup %5690  ;;  %5700 = vlog2.f32 %v411_v22  ;;  %v4641_v6 = vadd.f32 %v4640_v26, %v4536_v54  ;;  %v4687_v50 = vadd.f32 %v4686_v14, %v4538_v40  ;;  %v418_v9 = vld [vmem:[#allocation2 + $0xb80] sm:$0xff]  ;;  %v8386_v20 = vld [vmem:[#allocation159_spill] sm:$0xff]  ;;  %v8387_v51 = vld [vmem:[#allocation178_spill] sm:$0xff] }
 0x1eb   :  { %v4854_v33 = vadd.f32 %v4853_v2, %v8380_v0  ;;  %v4892_v16 = vadd.f32 %v4891_v57, %v8381_v18  ;;  %v4938_v41 = vadd.f32 %v4937_v11, %v8383_v27  ;;  %v5693_v59 = vpop.eup %5692  ;;  %5702 = vlog2.f32 %v412_v23  ;;  %v419_v54 = vld [vmem:[#allocation2 + $0xb88] sm:$0xff]  ;;  %v8388_v57 = vld [vmem:[#allocation70_spill] sm:$0xff]  ;;  %v8394_v27 = vld [vmem:[#allocation163_spill] sm:$0xff] }
 0x1ec   :  { %v4808_v38 = vadd.f32 %v4807_v60, %v8378_v8  ;;  %v5695_v37 = vpop.eup %5694  ;;  %5704 = vlog2.f32 %v413_v55  ;;  %v4733_v60 = vadd.f32 %v4732_v56, %v4540_v58  ;;  %v4552_v2 = vmul.f32 0.6931472, %v5689_v42  ;;  %v8389_v14 = vld [vmem:[#allocation181_spill] sm:$0xff]  ;;  %v420_v8 = vld [vmem:[#allocation2 + $0xb90] sm:$0xff] }
 0x1ed   :  { %v4855_v7 = vadd.f32 %v4854_v33, %v8384_v32  ;;  %v4893_v63 = vadd.f32 %v4892_v16, %v8385_v31  ;;  %v4939_v22 = vadd.f32 %v4938_v41, %v8387_v51  ;;  %v7611_v26 = vpop.eup %5696  ;;  %v4779_v25 = vadd.f32 %v4778_v15, %v4542_v13  ;;  %v8390_v11 = vld [vmem:[#allocation73_spill] sm:$0xff]  ;;  %v8391_v55 = vld [vmem:[#allocation182_spill] sm:$0xff]  ;;  %v421_v33 = vld [vmem:[#allocation2 + $0xb98] sm:$0xff] }
 0x1ee   :  { %v4809_v1 = vadd.f32 %v4808_v38, %v8382_v39  ;;  %v4554_v38 = vmul.f32 0.6931472, %v5691_v29  ;;  %v4556_v21 = vmul.f32 0.6931472, %v5693_v59  ;;  %v4558_v18 = vmul.f32 0.6931472, %v5695_v37 }
 0x1ef   :  { %v4856_v23 = vadd.f32 %v4855_v7, %v8388_v57  ;;  %v4894_v40 = vadd.f32 %v4893_v63, %v8389_v14  ;;  %v4940_v56 = vadd.f32 %v4939_v22, %v8391_v55  ;;  %v5699_v58 = vpop.eup %5698  ;;  %5706 = vlog2.f32 %v418_v9  ;;  %v8392_v16 = vld [vmem:[#allocation161_spill] sm:$0xff]  ;;  %v8395_v41 = vld [vmem:[#allocation184_spill] sm:$0xff]  ;;  %v8396_v31 = vld [vmem:[#allocation86_spill] sm:$0xff] }
 0x1f0   :  { %v4810_v17 = vadd.f32 %v4809_v1, %v8386_v20  ;;  %v8393_v1 = vld [vmem:[#allocation183_spill] sm:$0xff]  ;;  %v5701_v15 = vpop.eup %5700  ;;  %v7620_v13 = vmul.f32 0.6931472, %v7451_v45  ;;  %5708 = vlog2.f32 %v419_v54  ;;  %v4642_v7 = vadd.f32 %v4641_v6, %v4552_v2  ;;  %v8397_v37 = vld [vmem:[#allocation134_spill] sm:$0xff]  ;;  %v399_v57 = vld [vmem:[#allocation2 + $0xae8] sm:$0xff] }
 0x1f1   :  { %v4857_v39 = vadd.f32 %v4856_v23, %v8392_v16  ;;  %v4895_v42 = vadd.f32 %v4894_v40, %v8393_v1  ;;  %v4941_v59 = vadd.f32 %v4940_v56, %v8395_v41  ;;  %v5703_v32 = vpop.eup %5702  ;;  %5710 = vlog2.f32 %v420_v8  ;;  %v8398_v22 = vld [vmem:[#allocation135_spill] sm:$0xff]  ;;  %v8399_v40 = vld [vmem:[#allocation17_spill] sm:$0xff]  ;;  %v406_v8 = vld [vmem:[#allocation2 + $0xb20] sm:$0xff] }
 0x1f2   :  { %v4811_v0 = vadd.f32 %v4810_v17, %v8390_v11  ;;  %v5705_v20 = vpop.eup %5704  ;;  %5712 = vlog2.f32 %v421_v33  ;;  %v4688_v17 = vadd.f32 %v4687_v50, %v4554_v38  ;;  %v4734_v54 = vadd.f32 %v4733_v60, %v4556_v21  ;;  %v8400_v55 = vld [vmem:[#allocation22_spill] sm:$0xff]  ;;  %v8401_v16 = vld [vmem:[#allocation152_spill] sm:$0xff]  ;;  %v8402_v21 = vld [vmem:[#allocation41_spill] sm:$0xff] }
 0x1f3   :  { %v4858_v63 = vadd.f32 %v4857_v39, %v8396_v31  ;;  %v4896_v9 = vadd.f32 %v4895_v42, %v8397_v37  ;;  %v4942_v45 = vadd.f32 %v4941_v59, %v8398_v22  ;;  %v4780_v23 = vadd.f32 %v4779_v25, %v4558_v18  ;;  %v8403_v42 = vld [vmem:[#allocation55_spill] sm:$0xff]  ;;  %v8404_v59 = vld [vmem:[#allocation156_spill] sm:$0xff]  ;;  %v8405_v37 = vld [vmem:[#allocation157_spill] sm:$0xff] }
 0x1f4   :  { %v4812_v29 = vadd.f32 %v4811_v0, %v8394_v27  ;;  %v4568_v6 = vmul.f32 0.6931472, %v5699_v58  ;;  %v4570_v2 = vmul.f32 0.6931472, %v5701_v15  ;;  %v4572_v50 = vmul.f32 0.6931472, %v5703_v32 }
 0x1f5   :  { %v4859_v14 = vadd.f32 %v4858_v63, %v7261_v43  ;;  %v4897_v11 = vadd.f32 %v4896_v9, %v8399_v40  ;;  %v4943_v56 = vadd.f32 %v4942_v45, %v8400_v55  ;;  %v5707_v33 = vpop.eup %5706  ;;  %v4574_v38 = vmul.f32 0.6931472, %v5705_v20  ;;  %v407_v32 = vld [vmem:[#allocation2 + $0xb28] sm:$0xff]  ;;  %v8407_v45 = vld [vmem:[#allocation62_spill] sm:$0xff]  ;;  %v8409_v40 = vld [vmem:[#allocation64_spill] sm:$0xff] }
 0x1f6   :  { %v4813_v51 = vadd.f32 %v4812_v29, %v7258_v46  ;;  %v5709_v60 = vpop.eup %5708  ;;  %v4480_v25 = vmul.f32 0.6931472, %v7482_v36  ;;  %5714 = vlog2.f32 %v399_v57  ;;  %v4689_v29 = vadd.f32 %v4688_v17, %v4570_v2  ;;  %v415_v55 = vld [vmem:[#allocation2 + $0xb68] sm:$0xff] }
 0x1f7   :  { %v4860_v46 = vadd.f32 %v4859_v14, %v7297_v19  ;;  %v4898_v39 = vadd.f32 %v4897_v11, %v8401_v16  ;;  %v4944_v58 = vadd.f32 %v4943_v56, %v8402_v21  ;;  %v5711_v18 = vpop.eup %5710  ;;  %5716 = vlog2.f32 %v406_v8  ;;  %v8408_v14 = vld [vmem:[#allocation169_spill] sm:$0xff]  ;;  %v422_v16 = vld [vmem:[#allocation2 + $0xba0] sm:$0xff] }
 0x1f8   :  { %v4814_v0 = vadd.f32 %v4813_v51, %v7294_v5  ;;  %v4482_v5 = vmul.f32 0.6931472, %v7494_v48  ;;  %v5713_v27 = vpop.eup %5712  ;;  %v4643_v19 = vadd.f32 %v4642_v7, %v4568_v6  ;;  %v4735_v31 = vadd.f32 %v4734_v54, %v4572_v50  ;;  %v414_v48 = vld [vmem:[#allocation2 + $0xb60] sm:$0xff]  ;;  %v8411_v6 = vld [vmem:[#allocation65_spill] sm:$0xff] }
 0x1f9   :  { %v4861_v1 = vadd.f32 %v4860_v46, %v7329_v44  ;;  %v4899_v15 = vadd.f32 %v4898_v39, %v8403_v42  ;;  %v4945_v36 = vadd.f32 %v4944_v58, %v8404_v59  ;;  %v4584_v20 = vmul.f32 0.6931472, %v5707_v33  ;;  %v8406_v44 = vld [vmem:[#allocation104_spill] sm:$0xff]  ;;  %v8412_v33 = vld [vmem:[#allocation173_spill] sm:$0xff]  ;;  %v8415_v42 = vld [vmem:[#allocation78_spill] sm:$0xff] }
 0x1fa   :  { %v4815_v43 = vadd.f32 %v4814_v0, %v7326_v34  ;;  %v4781_v34 = vadd.f32 %v4780_v23, %v4574_v38  ;;  %v4586_v51 = vmul.f32 0.6931472, %v5709_v60  ;;  %v4588_v7 = vmul.f32 0.6931472, %v5711_v18  ;;  %v8413_v38 = vld [vmem:[#allocation71_spill] sm:$0xff] }
 0x1fb   :  { %v4862_v63 = vadd.f32 %v4861_v1, %v7357_v62  ;;  %v4900_v9 = vadd.f32 %v4899_v15, %v8405_v37  ;;  %v4946_v57 = vadd.f32 %v4945_v36, %v8407_v45  ;;  %v4590_v17 = vmul.f32 0.6931472, %v5713_v27  ;;  %v8410_v62 = vld [vmem:[#allocation172_spill] sm:$0xff]  ;;  %v423_v36 = vld [vmem:[#allocation2 + $0xba8] sm:$0xff] }
 0x1fc   :  { %v4816_v41 = vadd.f32 %v4815_v43, %v7354_v24  ;;  %v5715_v8 = vpop.eup %5714  ;;  %v4496_v54 = vmul.f32 0.6931472, %v7518_v12  ;;  %5718 = vlog2.f32 %v407_v32  ;;  %v4498_v56 = vmul.f32 0.6931472, %v7539_v35  ;;  %v8414_v12 = vld [vmem:[#allocation160_spill] sm:$0xff] }
 0x1fd   :  { %v4863_v24 = vadd.f32 %v4862_v63, %v8408_v14  ;;  %v4901_v11 = vadd.f32 %v4900_v9, %v8409_v40  ;;  %v4947_v2 = vadd.f32 %v4946_v57, %v8411_v6  ;;  %v5717_v0 = vpop.eup %5716  ;;  %5720 = vlog2.f32 %v414_v48  ;;  %v8418_v63 = vld [vmem:[#allocation164_spill] sm:$0xff]  ;;  %v8423_v6 = vld [vmem:[#allocation97_spill] sm:$0xff] }
 0x1fe   :  { %v4817_v22 = vadd.f32 %v4816_v41, %v8406_v44  ;;  %v4644_v39 = vadd.f32 %v4643_v19, %v4584_v20  ;;  %v4690_v60 = vadd.f32 %v4689_v29, %v4586_v51  ;;  %v4736_v58 = vadd.f32 %v4735_v31, %v4588_v7  ;;  %v8416_v41 = vld [vmem:[#allocation79_spill] sm:$0xff]  ;;  %v8419_v20 = vld [vmem:[#allocation94_spill] sm:$0xff]  ;;  %v8422_v40 = vld [vmem:[#allocation96_spill] sm:$0xff] }
 0x1ff   :  { %v4864_v50 = vadd.f32 %v4863_v24, %v8412_v33  ;;  %v4902_v46 = vadd.f32 %v4901_v11, %v8413_v38  ;;  %v4948_v21 = vadd.f32 %v4947_v2, %v8414_v12  ;;  %v4782_v18 = vadd.f32 %v4781_v34, %v4590_v17  ;;  %v8417_v29 = vld [vmem:[#allocation87_spill] sm:$0xff]  ;;  %v368_v34 = vld [vmem:[#allocation2 + $0x9f0] sm:$0xff] }
 0x200   :  { %v4818_v23 = vadd.f32 %v4817_v22, %v8410_v62  ;;  %v4512_v35 = vmul.f32 0.6931472, %v7554_v10  ;;  %5722 = vlog2.f32 %v415_v55  ;;  %v4514_v19 = vmul.f32 0.6931472, %v7559_v61  ;;  %v369_v10 = vld [vmem:[#allocation2 + $0x9f8] sm:$0xff]  ;;  %v376_v51 = vld [vmem:[#allocation2 + $0xa30] sm:$0xff] }
 0x201   :  { %v4865_v1 = vadd.f32 %v4864_v50, %v7448_v3  ;;  %v4903_v15 = vadd.f32 %v4902_v46, %v8415_v42  ;;  %v4949_v59 = vadd.f32 %v4948_v21, %v8416_v41  ;;  %5724 = vlog2.f32 %v422_v16  ;;  %v8420_v22 = vld [vmem:[#allocation95_spill] sm:$0xff]  ;;  %4975 = vst [vmem:[#allocation5] sm:$0xff] %v4644_v39  ;;  %v8421_v7 = vld [vmem:[#allocation166_spill] sm:$0xff]  ;;  %v8425_v39 = vld [vmem:[#allocation168_spill] sm:$0xff] }
 0x202   :  { %v4819_v43 = vadd.f32 %v4818_v23, %v7446_v4  ;;  %v5719_v31 = vpop.eup %5718  ;;  %v4528_v44 = vmul.f32 0.6931472, %v7580_v49  ;;  %5726 = vlog2.f32 %v423_v36  ;;  %v4530_v57 = vmul.f32 0.6931472, %v7584_v47  ;;  %4976 = vst [vmem:[#allocation5 + $0x8] sm:$0xff] %v4690_v60  ;;  %v385_v47 = vld [vmem:[#allocation2 + $0xa78] sm:$0xff] }
 0x203   :  { %v4866_v4 = vadd.f32 %v4865_v1, %v7504_v30  ;;  %v4904_v32 = vadd.f32 %v4903_v15, %v8417_v29  ;;  %v4950_v37 = vadd.f32 %v4949_v59, %v8418_v63  ;;  %v5721_v9 = vpop.eup %5720  ;;  %v377_v30 = vld [vmem:[#allocation2 + $0xa38] sm:$0xff]  ;;  %5728 = vlog2.f32 %v368_v34  ;;  %4977 = vst [vmem:[#allocation5 + $0x10] sm:$0xff] %v4736_v58  ;;  %v392_v38 = vld [vmem:[#allocation2 + $0xab0] sm:$0xff] }
 0x204   :  { %v4820_v27 = vadd.f32 %v4819_v43, %v7490_v28  ;;  %5730 = vlog2.f32 %v369_v10  ;;  %v4546_v62 = vmul.f32 0.6931472, %v5715_v8  ;;  %4978 = vst [vmem:[#allocation5 + $0x18] sm:$0xff] %v4782_v18  ;;  %v4560_v55 = vmul.f32 0.6931472, %v5717_v0  ;;  %v8424_v33 = vld [vmem:[#allocation167_spill] sm:$0xff] }
 0x205   :  { %v4867_v48 = vadd.f32 %v4866_v4, %v4482_v5  ;;  %v4905_v28 = vadd.f32 %v4904_v32, %v8419_v20  ;;  %v4951_v45 = vadd.f32 %v4950_v37, %v8420_v22  ;;  %v4544_v5 = vmul.f32 0.6931472, %v7611_v26  ;;  %v393_v12 = vld [vmem:[#allocation2 + $0xab8] sm:$0xff]  ;;  %v400_v42 = vld [vmem:[#allocation2 + $0xaf0] sm:$0xff] }
 0x206   :  { %v4821_v3 = vadd.f32 %v4820_v27, %v4480_v25  ;;  %v5723_v14 = vpop.eup %5722  ;;  %5732 = vlog2.f32 %v376_v51  ;;  %v4470_v26 = vmul.f32 0.6931472, %v7457_v52  ;;  %v4562_v46 = vmul.f32 0.6931472, %v5719_v31  ;;  %v8426_v58 = vld [vmem:[#allocation103_spill] sm:$0xff]  ;;  %v408_v32 = vld [vmem:[#allocation2 + $0xb30] sm:$0xff] }
 0x207   :  { %v4868_v25 = vadd.f32 %v4867_v48, %v4498_v56  ;;  %v4906_v17 = vadd.f32 %v4905_v28, %v8421_v7  ;;  %v4952_v49 = vadd.f32 %v4951_v45, %v8422_v40  ;;  %v5725_v11 = vpop.eup %5724  ;;  %5734 = vlog2.f32 %v377_v30  ;;  %v401_v52 = vld [vmem:[#allocation2 + $0xaf8] sm:$0xff]  ;;  %v416_v51 = vld [vmem:[#allocation2 + $0xb70] sm:$0xff] }
 0x208   :  { %v4822_v61 = vadd.f32 %v4821_v3, %v4496_v54  ;;  %v384_v54 = vld [vmem:[#allocation2 + $0xa70] sm:$0xff]  ;;  %v5727_v43 = vpop.eup %5726  ;;  %v4576_v8 = vmul.f32 0.6931472, %v5721_v9  ;;  %v4578_v0 = vmul.f32 0.6931472, %v5723_v14  ;;  %v409_v9 = vld [vmem:[#allocation2 + $0xb38] sm:$0xff] }
 0x209   :  { %v4869_v23 = vadd.f32 %v4868_v25, %v4514_v19  ;;  %v4907_v2 = vadd.f32 %v4906_v17, %v8423_v6  ;;  %v4953_v50 = vadd.f32 %v4952_v49, %v8424_v33  ;;  %5736 = vlog2.f32 %v384_v54  ;;  %v5729_v1 = vpop.eup %5728  ;;  %v8428_v19 = vld [vmem:[#allocation171_spill] sm:$0xff]  ;;  %v8429_v3 = vld [vmem:[#allocation174_spill] sm:$0xff] }
 0x20a   :  { %v4823_v24 = vadd.f32 %v4822_v61, %v4512_v35  ;;  %5738 = vlog2.f32 %v385_v47  ;;  %v8427_v35 = vld [vmem:[#allocation170_spill] sm:$0xff]  ;;  %v5731_v41 = vpop.eup %5730  ;;  %v4592_v59 = vmul.f32 0.6931472, %v5725_v11  ;;  %v4594_v31 = vmul.f32 0.6931472, %v5727_v43  ;;  %v8430_v20 = vld [vmem:[#allocation175_spill] sm:$0xff] }
 0x20b   :  { %v4870_v16 = vadd.f32 %v4869_v23, %v4530_v57  ;;  %v4908_v60 = vadd.f32 %v4907_v2, %v8425_v39  ;;  %v4954_v18 = vadd.f32 %v4953_v50, %v8426_v58  ;;  %5740 = vlog2.f32 %v392_v38  ;;  %v8431_v22 = vld [vmem:[#allocation102_spill] sm:$0xff]  ;;  %v417_v57 = vld [vmem:[#allocation2 + $0xb78] sm:$0xff] }
 0x20c   :  { %v4824_v56 = vadd.f32 %v4823_v24, %v4528_v44  ;;  %v5733_v29 = vpop.eup %5732  ;;  %5742 = vlog2.f32 %v393_v12  ;;  %v4484_v10 = vmul.f32 0.6931472, %v5729_v1  ;;  %v4486_v44 = vmul.f32 0.6931472, %v5731_v41 }
 0x20d   :  { %v4871_v15 = vadd.f32 %v4870_v16, %v4546_v62  ;;  %v4909_v27 = vadd.f32 %v4908_v60, %v8427_v35  ;;  %v4955_v4 = vadd.f32 %v4954_v18, %v8428_v19  ;;  %v5735_v37 = vpop.eup %5734  ;;  %5744 = vlog2.f32 %v400_v42 }
 0x20e   :  { %v4825_v21 = vadd.f32 %v4824_v56, %v4544_v5  ;;  %5746 = vlog2.f32 %v401_v52  ;;  %v4500_v25 = vmul.f32 0.6931472, %v5733_v29  ;;  %v424_v5 = vld [vmem:[#allocation2 + $0xbb0] sm:$0xff]  ;;  %v4502_v24 = vmul.f32 0.6931472, %v5735_v37 }
 0x20f   :  { %v4872_v34 = vadd.f32 %v4871_v15, %v4562_v46  ;;  %v4910_v63 = vadd.f32 %v4909_v27, %v8429_v3  ;;  %v4956_v28 = vadd.f32 %v4955_v4, %v8430_v20  ;;  %v5737_v30 = vpop.eup %5736  ;;  %5748 = vlog2.f32 %v408_v32 }
 0x210   :  { %v4826_v36 = vadd.f32 %v4825_v21, %v4560_v55  ;;  %v5739_v14 = vpop.eup %5738  ;;  %5750 = vlog2.f32 %v409_v9  ;;  %v4516_v23 = vmul.f32 0.6931472, %v5737_v30  ;;  %v5815_v33 = vmov 1.0  }
 0x211   :  { %v4873_v61 = vadd.f32 %v4872_v34, %v4578_v0  ;;  %v4911_v45 = vadd.f32 %v4910_v63, %v8431_v22  ;;  %v4957_v17 = vadd.f32 %v4956_v28, %v7466_v53  ;;  %v5741_v11 = vpop.eup %5740  ;;  %5752 = vlog2.f32 %v416_v51 }
 0x212   :  { %v4827_v48 = vadd.f32 %v4826_v36, %v4576_v8  ;;  %v5743_v62 = vpop.eup %5742  ;;  %5754 = vlog2.f32 %v417_v57  ;;  %v4518_v47 = vmul.f32 0.6931472, %v5739_v14  ;;  %v4532_v56 = vmul.f32 0.6931472, %v5741_v11 }
 0x213   :  { %v4874_v40 = vadd.f32 %v4873_v61, %v4594_v31  ;;  %v4912_v49 = vadd.f32 %v4911_v45, %v7620_v13  ;;  %v4958_v54 = vadd.f32 %v4957_v17, %v4470_v26  ;;  %v5745_v2 = vpop.eup %5744  ;;  %5756 = vlog2.f32 %v424_v5 }
 0x214   :  { %v4828_v7 = vadd.f32 %v4827_v48, %v4592_v59  ;;  %v5747_v53 = vpop.eup %5746  ;;  %5758 = vlog2.f32 %v5815_v33  ;;  %v4534_v13 = vmul.f32 0.6931472, %v5743_v62  ;;  %v4548_v26 = vmul.f32 0.6931472, %v5745_v2 }
 0x215   :  { %v4913_v6 = vadd.f32 %v4912_v49, %v4484_v10  ;;  %v4959_v55 = vadd.f32 %v4958_v54, %v4486_v44  ;;  %4980 = vst [vmem:[#allocation5 + $0x28] sm:$0xff] %v4874_v40  ;;  %v5749_v38 = vpop.eup %5748  ;;  %v4550_v43 = vmul.f32 0.6931472, %v5747_v53 }
 0x216   :  { %4979 = vst [vmem:[#allocation5 + $0x20] sm:$0xff] %v4828_v7  ;;  %v5751_v16 = vpop.eup %5750  ;;  %v4564_v21 = vmul.f32 0.6931472, %v5749_v38 }
 0x217   :  { %v4914_v50 = vadd.f32 %v4913_v6, %v4500_v25  ;;  %v4960_v46 = vadd.f32 %v4959_v55, %v4502_v24  ;;  %v5753_v60 = vpop.eup %5752  ;;  %v4566_v1 = vmul.f32 0.6931472, %v5751_v16 }
 0x218   :  { %v5755_v8 = vpop.eup %5754  ;;  %v4580_v15 = vmul.f32 0.6931472, %v5753_v60 }
 0x219   :  { %v4915_v39 = vadd.f32 %v4914_v50, %v4516_v23  ;;  %v4961_v12 = vadd.f32 %v4960_v46, %v4518_v47  ;;  %v5757_v18 = vpop.eup %5756  ;;  %v4582_v27 = vmul.f32 0.6931472, %v5755_v8 }
 0x21a   :  { %v5759_v0 = vpop.eup %5758  ;;  %v4596_v52 = vmul.f32 0.6931472, %v5757_v18 }
 0x21b   :  { %v4916_v58 = vadd.f32 %v4915_v39, %v4532_v56  ;;  %v4962_v42 = vadd.f32 %v4961_v12, %v4534_v13  ;;  %v4598_v36 = vmul.f32 0.6931472, %v5759_v0 }
 0x21d   :  { %v4917_v35 = vadd.f32 %v4916_v58, %v4548_v26  ;;  %v4963_v41 = vadd.f32 %v4962_v42, %v4550_v43 }
 0x21f   :  { %v4918_v59 = vadd.f32 %v4917_v35, %v4564_v21  ;;  %v4964_v19 = vadd.f32 %v4963_v41, %v4566_v1 }
 0x221   :  { %v4919_v4 = vadd.f32 %v4918_v59, %v4580_v15  ;;  %v4965_v29 = vadd.f32 %v4964_v19, %v4582_v27 }
 0x223   :  { %v4920_v32 = vadd.f32 %v4919_v4, %v4596_v52  ;;  %v4966_v31 = vadd.f32 %v4965_v29, %v4598_v36 }
 0x225   :  { %4981 = vst [vmem:[#allocation5 + $0x30] sm:$0xff] %v4920_v32 }
 0x226   :  { %4982 = vst [vmem:[#allocation5 + $0x38] sm:$0xff] %v4966_v31 }
 0x227   :  { %4995 = dma.vmem_to_hbm [thread:$0]  %s4988_s13, 1024, %s4990_s16, [#allocation4], %s5813_s11, %s5813_s11, %s5814_s12  }
 0x228   :  { %5810 = dma.done.wait [#allocation4], 1024  }
 0x229   :  { %5811 = vsyncadd [#allocation4], 4294966272 }
 0x22a   :  { %5000 = vsyncpa [#allocation3], 1 }
 0x22b   :  { %5001 = vsyncpa [#allocation4], 1 }

</bundles_post_ra>
